<compile_context>
chip_gen: v7x
topology: tpu7x:2x2x1
jax: 0.10.0
libtpu: 0.0.40
codegen_flags: <defaults>
</compile_context>

<pallas_src>
import jax
import jax.numpy as jnp
from jax.experimental import pallas as pl
from jax.experimental.pallas import tpu as pltpu

_BN_EPS = 1e-5


# ----------------------------------------------------------------------------
# tiling helpers
# ----------------------------------------------------------------------------
def _pick_channel_tile(c):
    """Lane-dense output tile: 256/128 when divisible, else full extent."""
    if c % 256 == 0:
        return 256
    if c % 128 == 0:
        return 128
    return c


def _pick_row_band(h, w, target_rows=2048):
    """Largest divisor of H whose band (rows * W) stays under target_rows."""
    if h * w <= target_rows:
        return h
    best = 1
    for d in range(1, h + 1):
        if h % d == 0 and d * w <= target_rows:
            best = d
    return best


# ----------------------------------------------------------------------------
# Pallas kernels
# ----------------------------------------------------------------------------
def conv3x3_bn_stats(x_nhwc, w_taps, bias, out_dtype=jnp.float32):
    """3x3 conv (padding=1) + bias, fused with per-channel sum / sum^2 partials.

    x_nhwc : (N, H, W, Cin)  activation (cast to bf16 for the MXU)
    w_taps : (9, Cin, Cout)  per-tap weight matrices, tap index = dy*3 + dx
    bias   : (Cout,)
    Returns (y, psum, psumsq, geom):
      y      : (N*n_hb, rh*W, Cout) out_dtype  (row-banded conv output)
      psum   : (N*n_hb, 1, Cout)    f32 per-band per-channel sums of y
      psumsq : (N*n_hb, 1, Cout)    f32 per-band per-channel sums of y*y
    """
    N, H, W, Cin = x_nhwc.shape
    Cout = w_taps.shape[-1]
    rh = _pick_row_band(H, W)
    n_hb = H // rh
    NB = N * n_hb
    mrows = rh * W
    tn = _pick_channel_tile(Cout)
    n_nt = Cout // tn

    # One padded, row-banded bf16 copy (halo of one row per band, ~1.1x copy,
    # vs. the 9x im2col blow-up of the previous version).
    xpad = jnp.pad(x_nhwc, ((0, 0), (1, 1), (1, 1), (0, 0)))
    if n_hb == 1:
        xb = xpad[:, None]
    else:
        xb = jnp.stack([xpad[:, i * rh:i * rh + rh + 2] for i in range(n_hb)],
                       axis=1)
    xb = xb.reshape(NB, rh + 2, W + 2, Cin).astype(jnp.bfloat16)
    wb = w_taps.astype(jnp.bfloat16)
    b2 = bias.reshape(1, Cout).astype(jnp.float32)

    def kernel(x_ref, w_ref, b_ref, y_ref, s_ref, ss_ref):
        x = x_ref[0]                                   # (rh+2, W+2, Cin) bf16
        acc = jnp.zeros((mrows, tn), jnp.float32)
        for dy in range(3):                            # 9 shifted matmuls
            for dx in range(3):
                lhs = x[dy:dy + rh, dx:dx + W, :].reshape(mrows, Cin)
                acc = acc + jnp.dot(lhs, w_ref[dy * 3 + dx],
                                    preferred_element_type=jnp.float32)
        y = acc + b_ref[...]                           # bias (cancelled by BN,
        y_ref[0] = y.astype(y_ref.dtype)               #  kept for fidelity)
        s_ref[0] = jnp.sum(y, axis=0, keepdims=True)   # fused BN partials
        ss_ref[0] = jnp.sum(y * y, axis=0, keepdims=True)

    y, ps, pss = pl.pallas_call(
        kernel,
        out_shape=(jax.ShapeDtypeStruct((NB, mrows, Cout), out_dtype),
                   jax.ShapeDtypeStruct((NB, 1, Cout), jnp.float32),
                   jax.ShapeDtypeStruct((NB, 1, Cout), jnp.float32)),
        grid=(NB, n_nt),
        in_specs=[
            pl.BlockSpec((1, rh + 2, W + 2, Cin), lambda m, j: (m, 0, 0, 0)),
            pl.BlockSpec((9, Cin, tn), lambda m, j: (0, 0, j)),
            pl.BlockSpec((1, tn), lambda m, j: (0, j)),
        ],
        out_specs=(
            pl.BlockSpec((1, mrows, tn), lambda m, j: (m, 0, j)),
            pl.BlockSpec((1, 1, tn), lambda m, j: (m, 0, j)),
            pl.BlockSpec((1, 1, tn), lambda m, j: (m, 0, j)),
        ),
        compiler_params=pltpu.CompilerParams(
            dimension_semantics=("parallel", "parallel")),
    )(xb, wb, b2)
    geom = (N, H, W, rh, n_hb)
    return y, ps, pss, geom


def batchnorm_relu(y_banded, psum, psumsq, gamma, beta, count, out_dtype):
    """Training-mode BatchNorm (global batch stats, biased var) + ReLU."""
    NB, mrows, C = y_banded.shape
    tc = _pick_channel_tile(C)
    n_ct = C // tc
    s = jnp.sum(psum, axis=0)            # (1, C) global per-channel sum
    ss = jnp.sum(psumsq, axis=0)         # (1, C) global per-channel sum(x^2)
    g = gamma.reshape(1, C).astype(jnp.float32)
    b = beta.reshape(1, C).astype(jnp.float32)
    inv_count = 1.0 / float(count)

    def kernel(y_ref, s_ref, ss_ref, g_ref, b_ref, o_ref):
        mean = s_ref[...] * inv_count
        var = jnp.maximum(ss_ref[...] * inv_count - mean * mean, 0.0)
        inv = jax.lax.rsqrt(var + _BN_EPS)
        scale = g_ref[...] * inv
        shift = b_ref[...] - mean * scale
        y = y_ref[0].astype(jnp.float32)
        o_ref[0] = jnp.maximum(y * scale + shift, 0.0).astype(o_ref.dtype)

    return pl.pallas_call(
        kernel,
        out_shape=jax.ShapeDtypeStruct((NB, mrows, C), out_dtype),
        grid=(NB, n_ct),
        in_specs=[
            pl.BlockSpec((1, mrows, tc), lambda m, j: (m, 0, j)),
            pl.BlockSpec((1, tc), lambda m, j: (0, j)),
            pl.BlockSpec((1, tc), lambda m, j: (0, j)),
            pl.BlockSpec((1, tc), lambda m, j: (0, j)),
            pl.BlockSpec((1, tc), lambda m, j: (0, j)),
        ],
        out_specs=pl.BlockSpec((1, mrows, tc), lambda m, j: (m, 0, j)),
        compiler_params=pltpu.CompilerParams(
            dimension_semantics=("parallel", "parallel")),
    )(y_banded, s, ss, g, b)


def _unband(y_banded, geom, c):
    N, H, W, rh, n_hb = geom
    return y_banded.reshape(N, n_hb, rh, W, c).reshape(N, H, W, c)


# ----------------------------------------------------------------------------
# DoubleConv forward
# ----------------------------------------------------------------------------
def double_conv(params, x_nhwc):
    N, H, W, _ = x_nhwc.shape
    count = N * H * W
    cmid = params["w1"].shape[-1]
    cout = params["w2"].shape[-1]

    # conv1 -> BN1 -> ReLU  (intermediate activation stored bf16)
    y, ps, pss, geom = conv3x3_bn_stats(x_nhwc, params["w1"], params["b1"],
                                        out_dtype=jnp.bfloat16)
    y = batchnorm_relu(y, ps, pss, params["g1"], params["be1"], count,
                       out_dtype=jnp.bfloat16)
    y = _unband(y, geom, cmid)

    # conv2 -> BN2 -> ReLU  (final activation f32)
    y, ps, pss, geom = conv3x3_bn_stats(y, params["w2"], params["b2"],
                                        out_dtype=jnp.float32)
    y = batchnorm_relu(y, ps, pss, params["g2"], params["be2"], count,
                       out_dtype=jnp.float32)
    return _unband(y, geom, cout)


def double_conv_forward(params, x_nchw):
    x = jnp.transpose(x_nchw, (0, 2, 3, 1)).astype(jnp.float32)   # NCHW->NHWC
    y = double_conv(params, x)
    return jnp.transpose(y, (0, 3, 1, 2))                         # NHWC->NCHW


# ----------------------------------------------------------------------------
# Parameter init (deterministic, in-script)
# ----------------------------------------------------------------------------
def _init_conv3x3(key, cin, cout):
    kw, kb = jax.random.split(key)
    fan_in = cin * 9
    w = jax.random.normal(kw, (3, 3, cin, cout), jnp.float32) * (2.0 / fan_in) ** 0.5
    b = 0.01 * jax.random.normal(kb, (cout,), jnp.float32)
    return w.reshape(9, cin, cout), b          # tap-major layout (9, Cin, Cout)


def init_double_conv(key, in_channels, out_channels, mid_channels=None):
    if mid_channels is None:
        mid_channels = out_channels
    k = jax.random.split(key, 6)
    w1, b1 = _init_conv3x3(k[0], in_channels, mid_channels)
    w2, b2 = _init_conv3x3(k[1], mid_channels, out_channels)
    g1 = 1.0 + 0.1 * jax.random.normal(k[2], (mid_channels,), jnp.float32)
    be1 = 0.1 * jax.random.normal(k[3], (mid_channels,), jnp.float32)
    g2 = 1.0 + 0.1 * jax.random.normal(k[4], (out_channels,), jnp.float32)
    be2 = 0.1 * jax.random.normal(k[5], (out_channels,), jnp.float32)
    return dict(w1=w1, b1=b1, g1=g1, be1=be1, w2=w2, b2=b2, g2=g2, be2=be2)


if __name__ == "__main__":
    key = jax.random.PRNGKey(0)
    pkey, xkey = jax.random.split(key)

    in_channels, out_channels = 4, 16
    params = init_double_conv(pkey, in_channels, out_channels)

    x = jax.random.normal(xkey, (2, in_channels, 16, 16), jnp.float32)

    fwd = jax.jit(double_conv_forward)
    y = fwd(params, x)
    jax.block_until_ready(y)

    assert y.shape == (2, out_channels, 16, 16), y.shape
    assert bool(jnp.all(jnp.isfinite(y)))
    print("KERNEL_OK")
</pallas_src>

<mosaic_0001>
module attributes {stable_mosaic.version = 11 : i64} {
  func.func @kernel(%arg0: i32, %arg1: i32, %arg2: memref<1x256x16xbf16, #tpu.memory_space<vmem>>, %arg3: memref<1x16xf32, #tpu.memory_space<vmem>>, %arg4: memref<1x16xf32, #tpu.memory_space<vmem>>, %arg5: memref<1x16xf32, #tpu.memory_space<vmem>>, %arg6: memref<1x16xf32, #tpu.memory_space<vmem>>, %arg7: memref<1x256x16xbf16, #tpu.memory_space<vmem>>) attributes {dimension_semantics = [#tpu.dimension_semantics<parallel>, #tpu.dimension_semantics<parallel>], iteration_bounds = array<i64: 2, 1>, scalar_prefetch = 0 : i64, scratch_operands = 0 : i64, tpu.core_type = #tpu.core_type<tc>, window_params = [{transform_indices = @transform_0, window_bounds = array<i64: 1, 256, 16>}, {transform_indices = @transform_1, window_bounds = array<i64: 1, 16>}, {transform_indices = @transform_2, window_bounds = array<i64: 1, 16>}, {transform_indices = @transform_3, window_bounds = array<i64: 1, 16>}, {transform_indices = @transform_4, window_bounds = array<i64: 1, 16>}, {transform_indices = @transform_5, window_bounds = array<i64: 1, 256, 16>}]} {
    %c0 = arith.constant 0 : index
    %c0_0 = arith.constant 0 : index
    %0 = vector.load %arg3[%c0, %c0_0] : memref<1x16xf32, #tpu.memory_space<vmem>>, vector<1x16xf32>
    %cst = arith.constant 0.001953125 : f32
    %1 = vector.broadcast %cst : f32 to vector<1x16xf32>
    %2 = arith.mulf %0, %1 : vector<1x16xf32>
    %c0_1 = arith.constant 0 : index
    %c0_2 = arith.constant 0 : index
    %3 = vector.load %arg4[%c0_1, %c0_2] : memref<1x16xf32, #tpu.memory_space<vmem>>, vector<1x16xf32>
    %cst_3 = arith.constant 0.001953125 : f32
    %4 = vector.broadcast %cst_3 : f32 to vector<1x16xf32>
    %5 = arith.mulf %3, %4 : vector<1x16xf32>
    %6 = arith.mulf %2, %2 : vector<1x16xf32>
    %7 = arith.subf %5, %6 : vector<1x16xf32>
    %cst_4 = arith.constant 0.000000e+00 : f32
    %8 = vector.broadcast %cst_4 : f32 to vector<1x16xf32>
    %9 = arith.maximumf %7, %8 : vector<1x16xf32>
    %cst_5 = arith.constant 9.99999974E-6 : f32
    %10 = vector.broadcast %cst_5 : f32 to vector<1x16xf32>
    %11 = arith.addf %9, %10 : vector<1x16xf32>
    %12 = math.rsqrt %11 : vector<1x16xf32>
    %c0_6 = arith.constant 0 : index
    %c0_7 = arith.constant 0 : index
    %13 = vector.load %arg5[%c0_6, %c0_7] : memref<1x16xf32, #tpu.memory_space<vmem>>, vector<1x16xf32>
    %14 = arith.mulf %13, %12 : vector<1x16xf32>
    %c0_8 = arith.constant 0 : index
    %c0_9 = arith.constant 0 : index
    %15 = vector.load %arg6[%c0_8, %c0_9] : memref<1x16xf32, #tpu.memory_space<vmem>>, vector<1x16xf32>
    %16 = arith.mulf %2, %14 : vector<1x16xf32>
    %17 = arith.subf %15, %16 : vector<1x16xf32>
    %c0_10 = arith.constant 0 : index
    %c0_11 = arith.constant 0 : index
    %c0_12 = arith.constant 0 : index
    %18 = vector.load %arg2[%c0_10, %c0_11, %c0_12] : memref<1x256x16xbf16, #tpu.memory_space<vmem>>, vector<1x256x16xbf16>
    %19 = vector.shape_cast %18 : vector<1x256x16xbf16> to vector<256x16xbf16>
    %20 = arith.extf %19 : vector<256x16xbf16> to vector<256x16xf32>
    %21 = vector.broadcast %14 : vector<1x16xf32> to vector<256x16xf32>
    %22 = arith.mulf %20, %21 : vector<256x16xf32>
    %23 = vector.broadcast %17 : vector<1x16xf32> to vector<256x16xf32>
    %24 = arith.addf %22, %23 : vector<256x16xf32>
    %cst_13 = arith.constant 0.000000e+00 : f32
    %25 = vector.broadcast %cst_13 : f32 to vector<256x16xf32>
    %26 = arith.maximumf %24, %25 : vector<256x16xf32>
    %27 = arith.truncf %26 : vector<256x16xf32> to vector<256x16xbf16>
    %c0_14 = arith.constant 0 : index
    %c0_15 = arith.constant 0 : index
    %c0_16 = arith.constant 0 : index
    %28 = vector.load %arg7[%c0_14, %c0_15, %c0_16] : memref<1x256x16xbf16, #tpu.memory_space<vmem>>, vector<1x256x16xbf16>
    %29 = vector.shape_cast %28 : vector<1x256x16xbf16> to vector<256x16xbf16>
    %30 = vector.shape_cast %27 : vector<256x16xbf16> to vector<1x256x16xbf16>
    tpu.vector_store %arg7[%c0_14, %c0_15, %c0_16], %30 {strides = array<i32>} : memref<1x256x16xbf16, #tpu.memory_space<vmem>>, vector<1x256x16xbf16>,
    return
  }
  func.func @transform_0(%arg0: i32, %arg1: i32) -> (i32, i32, i32) {
    %c0_i32 = arith.constant 0 : i32
    %c0_i32_0 = arith.constant 0 : i32
    return %arg0, %c0_i32, %arg1 : i32, i32, i32
  }
  func.func @transform_1(%arg0: i32, %arg1: i32) -> (i32, i32) {
    %c0_i32 = arith.constant 0 : i32
    %c0_i32_0 = arith.constant 0 : i32
    return %c0_i32, %arg1 : i32, i32
  }
  func.func @transform_2(%arg0: i32, %arg1: i32) -> (i32, i32) {
    %c0_i32 = arith.constant 0 : i32
    %c0_i32_0 = arith.constant 0 : i32
    return %c0_i32, %arg1 : i32, i32
  }
  func.func @transform_3(%arg0: i32, %arg1: i32) -> (i32, i32) {
    %c0_i32 = arith.constant 0 : i32
    %c0_i32_0 = arith.constant 0 : i32
    return %c0_i32, %arg1 : i32, i32
  }
  func.func @transform_4(%arg0: i32, %arg1: i32) -> (i32, i32) {
    %c0_i32 = arith.constant 0 : i32
    %c0_i32_0 = arith.constant 0 : i32
    return %c0_i32, %arg1 : i32, i32
  }
  func.func @transform_5(%arg0: i32, %arg1: i32) -> (i32, i32, i32) {
    %c0_i32 = arith.constant 0 : i32
    %c0_i32_0 = arith.constant 0 : i32
    return %arg0, %c0_i32, %arg1 : i32, i32, i32
  }
}

module attributes {stable_mosaic.version = 11 : i64} {
  func.func @kernel(%arg0: i32, %arg1: i32, %arg2: memref<1x18x18x4xbf16, #tpu.memory_space<vmem>>, %arg3: memref<9x4x16xbf16, #tpu.memory_space<vmem>>, %arg4: memref<1x16xf32, #tpu.memory_space<vmem>>, %arg5: memref<1x256x16xbf16, #tpu.memory_space<vmem>>, %arg6: memref<1x1x16xf32, #tpu.memory_space<vmem>>, %arg7: memref<1x1x16xf32, #tpu.memory_space<vmem>>) attributes {dimension_semantics = [#tpu.dimension_semantics<parallel>, #tpu.dimension_semantics<parallel>], iteration_bounds = array<i64: 2, 1>, scalar_prefetch = 0 : i64, scratch_operands = 0 : i64, tpu.core_type = #tpu.core_type<tc>, window_params = [{transform_indices = @transform_0, window_bounds = array<i64: 1, 18, 18, 4>}, {transform_indices = @transform_1, window_bounds = array<i64: 9, 4, 16>}, {transform_indices = @transform_2, window_bounds = array<i64: 1, 16>}, {transform_indices = @transform_3, window_bounds = array<i64: 1, 256, 16>}, {transform_indices = @transform_4, window_bounds = array<i64: 1, 1, 16>}, {transform_indices = @transform_5, window_bounds = array<i64: 1, 1, 16>}]} {
    %c0 = arith.constant 0 : index
    %c0_0 = arith.constant 0 : index
    %c0_1 = arith.constant 0 : index
    %c0_2 = arith.constant 0 : index
    %0 = vector.load %arg2[%c0, %c0_0, %c0_1, %c0_2] : memref<1x18x18x4xbf16, #tpu.memory_space<vmem>>, vector<1x18x18x4xbf16>
    %1 = vector.shape_cast %0 : vector<1x18x18x4xbf16> to vector<18x18x4xbf16>
    %cst = arith.constant 0.000000e+00 : f32
    %2 = vector.broadcast %cst : f32 to vector<256x16xf32>
    %3 = vector.extract_strided_slice %1 {offsets = [0, 0, 0], sizes = [16, 16, 4], strides = [1, 1, 1]} : vector<18x18x4xbf16> to vector<16x16x4xbf16>
    %4 = vector.shape_cast %3 : vector<16x16x4xbf16> to vector<256x4xbf16>
    %c0_3 = arith.constant 0 : index
    %c0_4 = arith.constant 0 : index
    %c0_5 = arith.constant 0 : index
    %5 = vector.load %arg3[%c0_3, %c0_4, %c0_5] : memref<9x4x16xbf16, #tpu.memory_space<vmem>>, vector<1x4x16xbf16>
    %6 = vector.shape_cast %5 : vector<1x4x16xbf16> to vector<4x16xbf16>
    %cst_6 = arith.constant dense<0.000000e+00> : vector<256x16xf32>
    %7 = tpu.matmul %4, %6, %cst_6 {dimension_numbers = #tpu.dot_dimension_numbers<[1], [0], [0], [1], [0, 0, 1, 1], [], []>} : vector<256x4xbf16>, vector<4x16xbf16>, vector<256x16xf32> -> vector<256x16xf32>
    %8 = arith.addf %2, %7 : vector<256x16xf32>
    %9 = vector.extract_strided_slice %1 {offsets = [0, 1, 0], sizes = [16, 16, 4], strides = [1, 1, 1]} : vector<18x18x4xbf16> to vector<16x16x4xbf16>
    %10 = vector.shape_cast %9 : vector<16x16x4xbf16> to vector<256x4xbf16>
    %c1 = arith.constant 1 : index
    %c0_7 = arith.constant 0 : index
    %c0_8 = arith.constant 0 : index
    %11 = vector.load %arg3[%c1, %c0_7, %c0_8] : memref<9x4x16xbf16, #tpu.memory_space<vmem>>, vector<1x4x16xbf16>
    %12 = vector.shape_cast %11 : vector<1x4x16xbf16> to vector<4x16xbf16>
    %cst_9 = arith.constant dense<0.000000e+00> : vector<256x16xf32>
    %13 = tpu.matmul %10, %12, %cst_9 {dimension_numbers = #tpu.dot_dimension_numbers<[1], [0], [0], [1], [0, 0, 1, 1], [], []>} : vector<256x4xbf16>, vector<4x16xbf16>, vector<256x16xf32> -> vector<256x16xf32>
    %14 = arith.addf %8, %13 : vector<256x16xf32>
    %15 = vector.extract_strided_slice %1 {offsets = [0, 2, 0], sizes = [16, 16, 4], strides = [1, 1, 1]} : vector<18x18x4xbf16> to vector<16x16x4xbf16>
    %16 = vector.shape_cast %15 : vector<16x16x4xbf16> to vector<256x4xbf16>
    %c2 = arith.constant 2 : index
    %c0_10 = arith.constant 0 : index
    %c0_11 = arith.constant 0 : index
    %17 = vector.load %arg3[%c2, %c0_10, %c0_11] : memref<9x4x16xbf16, #tpu.memory_space<vmem>>, vector<1x4x16xbf16>
    %18 = vector.shape_cast %17 : vector<1x4x16xbf16> to vector<4x16xbf16>
    %cst_12 = arith.constant dense<0.000000e+00> : vector<256x16xf32>
    %19 = tpu.matmul %16, %18, %cst_12 {dimension_numbers = #tpu.dot_dimension_numbers<[1], [0], [0], [1], [0, 0, 1, 1], [], []>} : vector<256x4xbf16>, vector<4x16xbf16>, vector<256x16xf32> -> vector<256x16xf32>
    %20 = arith.addf %14, %19 : vector<256x16xf32>
    %21 = vector.extract_strided_slice %1 {offsets = [1, 0, 0], sizes = [16, 16, 4], strides = [1, 1, 1]} : vector<18x18x4xbf16> to vector<16x16x4xbf16>
    %22 = vector.shape_cast %21 : vector<16x16x4xbf16> to vector<256x4xbf16>
    %c3 = arith.constant 3 : index
    %c0_13 = arith.constant 0 : index
    %c0_14 = arith.constant 0 : index
    %23 = vector.load %arg3[%c3, %c0_13, %c0_14] : memref<9x4x16xbf16, #tpu.memory_space<vmem>>, vector<1x4x16xbf16>
    %24 = vector.shape_cast %23 : vector<1x4x16xbf16> to vector<4x16xbf16>
    %cst_15 = arith.constant dense<0.000000e+00> : vector<256x16xf32>
    %25 = tpu.matmul %22, %24, %cst_15 {dimension_numbers = #tpu.dot_dimension_numbers<[1], [0], [0], [1], [0, 0, 1, 1], [], []>} : vector<256x4xbf16>, vector<4x16xbf16>, vector<256x16xf32> -> vector<256x16xf32>
    %26 = arith.addf %20, %25 : vector<256x16xf32>
    %27 = vector.extract_strided_slice %1 {offsets = [1, 1, 0], sizes = [16, 16, 4], strides = [1, 1, 1]} : vector<18x18x4xbf16> to vector<16x16x4xbf16>
    %28 = vector.shape_cast %27 : vector<16x16x4xbf16> to vector<256x4xbf16>
    %c4 = arith.constant 4 : index
    %c0_16 = arith.constant 0 : index
    %c0_17 = arith.constant 0 : index
    %29 = vector.load %arg3[%c4, %c0_16, %c0_17] : memref<9x4x16xbf16, #tpu.memory_space<vmem>>, vector<1x4x16xbf16>
    %30 = vector.shape_cast %29 : vector<1x4x16xbf16> to vector<4x16xbf16>
    %cst_18 = arith.constant dense<0.000000e+00> : vector<256x16xf32>
    %31 = tpu.matmul %28, %30, %cst_18 {dimension_numbers = #tpu.dot_dimension_numbers<[1], [0], [0], [1], [0, 0, 1, 1], [], []>} : vector<256x4xbf16>, vector<4x16xbf16>, vector<256x16xf32> -> vector<256x16xf32>
    %32 = arith.addf %26, %31 : vector<256x16xf32>
    %33 = vector.extract_strided_slice %1 {offsets = [1, 2, 0], sizes = [16, 16, 4], strides = [1, 1, 1]} : vector<18x18x4xbf16> to vector<16x16x4xbf16>
    %34 = vector.shape_cast %33 : vector<16x16x4xbf16> to vector<256x4xbf16>
    %c5 = arith.constant 5 : index
    %c0_19 = arith.constant 0 : index
    %c0_20 = arith.constant 0 : index
    %35 = vector.load %arg3[%c5, %c0_19, %c0_20] : memref<9x4x16xbf16, #tpu.memory_space<vmem>>, vector<1x4x16xbf16>
    %36 = vector.shape_cast %35 : vector<1x4x16xbf16> to vector<4x16xbf16>
    %cst_21 = arith.constant dense<0.000000e+00> : vector<256x16xf32>
    %37 = tpu.matmul %34, %36, %cst_21 {dimension_numbers = #tpu.dot_dimension_numbers<[1], [0], [0], [1], [0, 0, 1, 1], [], []>} : vector<256x4xbf16>, vector<4x16xbf16>, vector<256x16xf32> -> vector<256x16xf32>
    %38 = arith.addf %32, %37 : vector<256x16xf32>
    %39 = vector.extract_strided_slice %1 {offsets = [2, 0, 0], sizes = [16, 16, 4], strides = [1, 1, 1]} : vector<18x18x4xbf16> to vector<16x16x4xbf16>
    %40 = vector.shape_cast %39 : vector<16x16x4xbf16> to vector<256x4xbf16>
    %c6 = arith.constant 6 : index
    %c0_22 = arith.constant 0 : index
    %c0_23 = arith.constant 0 : index
    %41 = vector.load %arg3[%c6, %c0_22, %c0_23] : memref<9x4x16xbf16, #tpu.memory_space<vmem>>, vector<1x4x16xbf16>
    %42 = vector.shape_cast %41 : vector<1x4x16xbf16> to vector<4x16xbf16>
    %cst_24 = arith.constant dense<0.000000e+00> : vector<256x16xf32>
    %43 = tpu.matmul %40, %42, %cst_24 {dimension_numbers = #tpu.dot_dimension_numbers<[1], [0], [0], [1], [0, 0, 1, 1], [], []>} : vector<256x4xbf16>, vector<4x16xbf16>, vector<256x16xf32> -> vector<256x16xf32>
    %44 = arith.addf %38, %43 : vector<256x16xf32>
    %45 = vector.extract_strided_slice %1 {offsets = [2, 1, 0], sizes = [16, 16, 4], strides = [1, 1, 1]} : vector<18x18x4xbf16> to vector<16x16x4xbf16>
    %46 = vector.shape_cast %45 : vector<16x16x4xbf16> to vector<256x4xbf16>
    %c7 = arith.constant 7 : index
    %c0_25 = arith.constant 0 : index
    %c0_26 = arith.constant 0 : index
    %47 = vector.load %arg3[%c7, %c0_25, %c0_26] : memref<9x4x16xbf16, #tpu.memory_space<vmem>>, vector<1x4x16xbf16>
    %48 = vector.shape_cast %47 : vector<1x4x16xbf16> to vector<4x16xbf16>
    %cst_27 = arith.constant dense<0.000000e+00> : vector<256x16xf32>
    %49 = tpu.matmul %46, %48, %cst_27 {dimension_numbers = #tpu.dot_dimension_numbers<[1], [0], [0], [1], [0, 0, 1, 1], [], []>} : vector<256x4xbf16>, vector<4x16xbf16>, vector<256x16xf32> -> vector<256x16xf32>
    %50 = arith.addf %44, %49 : vector<256x16xf32>
    %51 = vector.extract_strided_slice %1 {offsets = [2, 2, 0], sizes = [16, 16, 4], strides = [1, 1, 1]} : vector<18x18x4xbf16> to vector<16x16x4xbf16>
    %52 = vector.shape_cast %51 : vector<16x16x4xbf16> to vector<256x4xbf16>
    %c8 = arith.constant 8 : index
    %c0_28 = arith.constant 0 : index
    %c0_29 = arith.constant 0 : index
    %53 = vector.load %arg3[%c8, %c0_28, %c0_29] : memref<9x4x16xbf16, #tpu.memory_space<vmem>>, vector<1x4x16xbf16>
    %54 = vector.shape_cast %53 : vector<1x4x16xbf16> to vector<4x16xbf16>
    %cst_30 = arith.constant dense<0.000000e+00> : vector<256x16xf32>
    %55 = tpu.matmul %52, %54, %cst_30 {dimension_numbers = #tpu.dot_dimension_numbers<[1], [0], [0], [1], [0, 0, 1, 1], [], []>} : vector<256x4xbf16>, vector<4x16xbf16>, vector<256x16xf32> -> vector<256x16xf32>
    %56 = arith.addf %50, %55 : vector<256x16xf32>
    %c0_31 = arith.constant 0 : index
    %c0_32 = arith.constant 0 : index
    %57 = vector.load %arg4[%c0_31, %c0_32] : memref<1x16xf32, #tpu.memory_space<vmem>>, vector<1x16xf32>
    %58 = vector.broadcast %57 : vector<1x16xf32> to vector<256x16xf32>
    %59 = arith.addf %56, %58 : vector<256x16xf32>
    %60 = arith.truncf %59 : vector<256x16xf32> to vector<256x16xbf16>
    %c0_33 = arith.constant 0 : index
    %c0_34 = arith.constant 0 : index
    %c0_35 = arith.constant 0 : index
    %61 = vector.load %arg5[%c0_33, %c0_34, %c0_35] : memref<1x256x16xbf16, #tpu.memory_space<vmem>>, vector<1x256x16xbf16>
    %62 = vector.shape_cast %61 : vector<1x256x16xbf16> to vector<256x16xbf16>
    %63 = vector.shape_cast %60 : vector<256x16xbf16> to vector<1x256x16xbf16>
    tpu.vector_store %arg5[%c0_33, %c0_34, %c0_35], %63 {strides = array<i32>} : memref<1x256x16xbf16, #tpu.memory_space<vmem>>, vector<1x256x16xbf16>,
    %cst_36 = arith.constant dense<0.000000e+00> : vector<16xf32>
    %64 = vector.multi_reduction <add>, %59, %cst_36 [0] : vector<256x16xf32> to vector<16xf32>
    %65 = vector.shape_cast %64 : vector<16xf32> to vector<1x16xf32>
    %c0_37 = arith.constant 0 : index
    %c0_38 = arith.constant 0 : index
    %c0_39 = arith.constant 0 : index
    %66 = vector.load %arg6[%c0_37, %c0_38, %c0_39] : memref<1x1x16xf32, #tpu.memory_space<vmem>>, vector<1x1x16xf32>
    %67 = vector.shape_cast %66 : vector<1x1x16xf32> to vector<1x16xf32>
    %68 = vector.shape_cast %65 : vector<1x16xf32> to vector<1x1x16xf32>
    tpu.vector_store %arg6[%c0_37, %c0_38, %c0_39], %68 {strides = array<i32>} : memref<1x1x16xf32, #tpu.memory_space<vmem>>, vector<1x1x16xf32>,
    %69 = arith.mulf %59, %59 : vector<256x16xf32>
    %cst_40 = arith.constant dense<0.000000e+00> : vector<16xf32>
    %70 = vector.multi_reduction <add>, %69, %cst_40 [0] : vector<256x16xf32> to vector<16xf32>
    %71 = vector.shape_cast %70 : vector<16xf32> to vector<1x16xf32>
    %c0_41 = arith.constant 0 : index
    %c0_42 = arith.constant 0 : index
    %c0_43 = arith.constant 0 : index
    %72 = vector.load %arg7[%c0_41, %c0_42, %c0_43] : memref<1x1x16xf32, #tpu.memory_space<vmem>>, vector<1x1x16xf32>
    %73 = vector.shape_cast %72 : vector<1x1x16xf32> to vector<1x16xf32>
    %74 = vector.shape_cast %71 : vector<1x16xf32> to vector<1x1x16xf32>
    tpu.vector_store %arg7[%c0_41, %c0_42, %c0_43], %74 {strides = array<i32>} : memref<1x1x16xf32, #tpu.memory_space<vmem>>, vector<1x1x16xf32>,
    return
  }
  func.func @transform_0(%arg0: i32, %arg1: i32) -> (i32, i32, i32, i32) {
    %c0_i32 = arith.constant 0 : i32
    %c0_i32_0 = arith.constant 0 : i32
    %c0_i32_1 = arith.constant 0 : i32
    %c0_i32_2 = arith.constant 0 : i32
    return %arg0, %c0_i32, %c0_i32_0, %c0_i32_1 : i32, i32, i32, i32
  }
  func.func @transform_1(%arg0: i32, %arg1: i32) -> (i32, i32, i32) {
    %c0_i32 = arith.constant 0 : i32
    %c0_i32_0 = arith.constant 0 : i32
    %c0_i32_1 = arith.constant 0 : i32
    return %c0_i32, %c0_i32_0, %arg1 : i32, i32, i32
  }
  func.func @transform_2(%arg0: i32, %arg1: i32) -> (i32, i32) {
    %c0_i32 = arith.constant 0 : i32
    %c0_i32_0 = arith.constant 0 : i32
    return %c0_i32, %arg1 : i32, i32
  }
  func.func @transform_3(%arg0: i32, %arg1: i32) -> (i32, i32, i32) {
    %c0_i32 = arith.constant 0 : i32
    %c0_i32_0 = arith.constant 0 : i32
    return %arg0, %c0_i32, %arg1 : i32, i32, i32
  }
  func.func @transform_4(%arg0: i32, %arg1: i32) -> (i32, i32, i32) {
    %c0_i32 = arith.constant 0 : i32
    %c0_i32_0 = arith.constant 0 : i32
    return %arg0, %c0_i32, %arg1 : i32, i32, i32
  }
  func.func @transform_5(%arg0: i32, %arg1: i32) -> (i32, i32, i32) {
    %c0_i32 = arith.constant 0 : i32
    %c0_i32_0 = arith.constant 0 : i32
    return %arg0, %c0_i32, %arg1 : i32, i32, i32
  }
}

module attributes {stable_mosaic.version = 11 : i64} {
  func.func @kernel(%arg0: i32, %arg1: i32, %arg2: memref<1x18x18x16xbf16, #tpu.memory_space<vmem>>, %arg3: memref<9x16x16xbf16, #tpu.memory_space<vmem>>, %arg4: memref<1x16xf32, #tpu.memory_space<vmem>>, %arg5: memref<1x256x16xf32, #tpu.memory_space<vmem>>, %arg6: memref<1x1x16xf32, #tpu.memory_space<vmem>>, %arg7: memref<1x1x16xf32, #tpu.memory_space<vmem>>) attributes {dimension_semantics = [#tpu.dimension_semantics<parallel>, #tpu.dimension_semantics<parallel>], iteration_bounds = array<i64: 2, 1>, scalar_prefetch = 0 : i64, scratch_operands = 0 : i64, tpu.core_type = #tpu.core_type<tc>, window_params = [{transform_indices = @transform_0, window_bounds = array<i64: 1, 18, 18, 16>}, {transform_indices = @transform_1, window_bounds = array<i64: 9, 16, 16>}, {transform_indices = @transform_2, window_bounds = array<i64: 1, 16>}, {transform_indices = @transform_3, window_bounds = array<i64: 1, 256, 16>}, {transform_indices = @transform_4, window_bounds = array<i64: 1, 1, 16>}, {transform_indices = @transform_5, window_bounds = array<i64: 1, 1, 16>}]} {
    %c0 = arith.constant 0 : index
    %c0_0 = arith.constant 0 : index
    %c0_1 = arith.constant 0 : index
    %c0_2 = arith.constant 0 : index
    %0 = vector.load %arg2[%c0, %c0_0, %c0_1, %c0_2] : memref<1x18x18x16xbf16, #tpu.memory_space<vmem>>, vector<1x18x18x16xbf16>
    %1 = vector.shape_cast %0 : vector<1x18x18x16xbf16> to vector<18x18x16xbf16>
    %cst = arith.constant 0.000000e+00 : f32
    %2 = vector.broadcast %cst : f32 to vector<256x16xf32>
    %3 = vector.extract_strided_slice %1 {offsets = [0, 0, 0], sizes = [16, 16, 16], strides = [1, 1, 1]} : vector<18x18x16xbf16> to vector<16x16x16xbf16>
    %4 = vector.shape_cast %3 : vector<16x16x16xbf16> to vector<256x16xbf16>
    %c0_3 = arith.constant 0 : index
    %c0_4 = arith.constant 0 : index
    %c0_5 = arith.constant 0 : index
    %5 = vector.load %arg3[%c0_3, %c0_4, %c0_5] : memref<9x16x16xbf16, #tpu.memory_space<vmem>>, vector<1x16x16xbf16>
    %6 = vector.shape_cast %5 : vector<1x16x16xbf16> to vector<16x16xbf16>
    %cst_6 = arith.constant dense<0.000000e+00> : vector<256x16xf32>
    %7 = tpu.matmul %4, %6, %cst_6 {dimension_numbers = #tpu.dot_dimension_numbers<[1], [0], [0], [1], [0, 0, 1, 1], [], []>} : vector<256x16xbf16>, vector<16x16xbf16>, vector<256x16xf32> -> vector<256x16xf32>
    %8 = arith.addf %2, %7 : vector<256x16xf32>
    %9 = vector.extract_strided_slice %1 {offsets = [0, 1, 0], sizes = [16, 16, 16], strides = [1, 1, 1]} : vector<18x18x16xbf16> to vector<16x16x16xbf16>
    %10 = vector.shape_cast %9 : vector<16x16x16xbf16> to vector<256x16xbf16>
    %c1 = arith.constant 1 : index
    %c0_7 = arith.constant 0 : index
    %c0_8 = arith.constant 0 : index
    %11 = vector.load %arg3[%c1, %c0_7, %c0_8] : memref<9x16x16xbf16, #tpu.memory_space<vmem>>, vector<1x16x16xbf16>
    %12 = vector.shape_cast %11 : vector<1x16x16xbf16> to vector<16x16xbf16>
    %cst_9 = arith.constant dense<0.000000e+00> : vector<256x16xf32>
    %13 = tpu.matmul %10, %12, %cst_9 {dimension_numbers = #tpu.dot_dimension_numbers<[1], [0], [0], [1], [0, 0, 1, 1], [], []>} : vector<256x16xbf16>, vector<16x16xbf16>, vector<256x16xf32> -> vector<256x16xf32>
    %14 = arith.addf %8, %13 : vector<256x16xf32>
    %15 = vector.extract_strided_slice %1 {offsets = [0, 2, 0], sizes = [16, 16, 16], strides = [1, 1, 1]} : vector<18x18x16xbf16> to vector<16x16x16xbf16>
    %16 = vector.shape_cast %15 : vector<16x16x16xbf16> to vector<256x16xbf16>
    %c2 = arith.constant 2 : index
    %c0_10 = arith.constant 0 : index
    %c0_11 = arith.constant 0 : index
    %17 = vector.load %arg3[%c2, %c0_10, %c0_11] : memref<9x16x16xbf16, #tpu.memory_space<vmem>>, vector<1x16x16xbf16>
    %18 = vector.shape_cast %17 : vector<1x16x16xbf16> to vector<16x16xbf16>
    %cst_12 = arith.constant dense<0.000000e+00> : vector<256x16xf32>
    %19 = tpu.matmul %16, %18, %cst_12 {dimension_numbers = #tpu.dot_dimension_numbers<[1], [0], [0], [1], [0, 0, 1, 1], [], []>} : vector<256x16xbf16>, vector<16x16xbf16>, vector<256x16xf32> -> vector<256x16xf32>
    %20 = arith.addf %14, %19 : vector<256x16xf32>
    %21 = vector.extract_strided_slice %1 {offsets = [1, 0, 0], sizes = [16, 16, 16], strides = [1, 1, 1]} : vector<18x18x16xbf16> to vector<16x16x16xbf16>
    %22 = vector.shape_cast %21 : vector<16x16x16xbf16> to vector<256x16xbf16>
    %c3 = arith.constant 3 : index
    %c0_13 = arith.constant 0 : index
    %c0_14 = arith.constant 0 : index
    %23 = vector.load %arg3[%c3, %c0_13, %c0_14] : memref<9x16x16xbf16, #tpu.memory_space<vmem>>, vector<1x16x16xbf16>
    %24 = vector.shape_cast %23 : vector<1x16x16xbf16> to vector<16x16xbf16>
    %cst_15 = arith.constant dense<0.000000e+00> : vector<256x16xf32>
    %25 = tpu.matmul %22, %24, %cst_15 {dimension_numbers = #tpu.dot_dimension_numbers<[1], [0], [0], [1], [0, 0, 1, 1], [], []>} : vector<256x16xbf16>, vector<16x16xbf16>, vector<256x16xf32> -> vector<256x16xf32>
    %26 = arith.addf %20, %25 : vector<256x16xf32>
    %27 = vector.extract_strided_slice %1 {offsets = [1, 1, 0], sizes = [16, 16, 16], strides = [1, 1, 1]} : vector<18x18x16xbf16> to vector<16x16x16xbf16>
    %28 = vector.shape_cast %27 : vector<16x16x16xbf16> to vector<256x16xbf16>
    %c4 = arith.constant 4 : index
    %c0_16 = arith.constant 0 : index
    %c0_17 = arith.constant 0 : index
    %29 = vector.load %arg3[%c4, %c0_16, %c0_17] : memref<9x16x16xbf16, #tpu.memory_space<vmem>>, vector<1x16x16xbf16>
    %30 = vector.shape_cast %29 : vector<1x16x16xbf16> to vector<16x16xbf16>
    %cst_18 = arith.constant dense<0.000000e+00> : vector<256x16xf32>
    %31 = tpu.matmul %28, %30, %cst_18 {dimension_numbers = #tpu.dot_dimension_numbers<[1], [0], [0], [1], [0, 0, 1, 1], [], []>} : vector<256x16xbf16>, vector<16x16xbf16>, vector<256x16xf32> -> vector<256x16xf32>
    %32 = arith.addf %26, %31 : vector<256x16xf32>
    %33 = vector.extract_strided_slice %1 {offsets = [1, 2, 0], sizes = [16, 16, 16], strides = [1, 1, 1]} : vector<18x18x16xbf16> to vector<16x16x16xbf16>
    %34 = vector.shape_cast %33 : vector<16x16x16xbf16> to vector<256x16xbf16>
    %c5 = arith.constant 5 : index
    %c0_19 = arith.constant 0 : index
    %c0_20 = arith.constant 0 : index
    %35 = vector.load %arg3[%c5, %c0_19, %c0_20] : memref<9x16x16xbf16, #tpu.memory_space<vmem>>, vector<1x16x16xbf16>
    %36 = vector.shape_cast %35 : vector<1x16x16xbf16> to vector<16x16xbf16>
    %cst_21 = arith.constant dense<0.000000e+00> : vector<256x16xf32>
    %37 = tpu.matmul %34, %36, %cst_21 {dimension_numbers = #tpu.dot_dimension_numbers<[1], [0], [0], [1], [0, 0, 1, 1], [], []>} : vector<256x16xbf16>, vector<16x16xbf16>, vector<256x16xf32> -> vector<256x16xf32>
    %38 = arith.addf %32, %37 : vector<256x16xf32>
    %39 = vector.extract_strided_slice %1 {offsets = [2, 0, 0], sizes = [16, 16, 16], strides = [1, 1, 1]} : vector<18x18x16xbf16> to vector<16x16x16xbf16>
    %40 = vector.shape_cast %39 : vector<16x16x16xbf16> to vector<256x16xbf16>
    %c6 = arith.constant 6 : index
    %c0_22 = arith.constant 0 : index
    %c0_23 = arith.constant 0 : index
    %41 = vector.load %arg3[%c6, %c0_22, %c0_23] : memref<9x16x16xbf16, #tpu.memory_space<vmem>>, vector<1x16x16xbf16>
    %42 = vector.shape_cast %41 : vector<1x16x16xbf16> to vector<16x16xbf16>
    %cst_24 = arith.constant dense<0.000000e+00> : vector<256x16xf32>
    %43 = tpu.matmul %40, %42, %cst_24 {dimension_numbers = #tpu.dot_dimension_numbers<[1], [0], [0], [1], [0, 0, 1, 1], [], []>} : vector<256x16xbf16>, vector<16x16xbf16>, vector<256x16xf32> -> vector<256x16xf32>
    %44 = arith.addf %38, %43 : vector<256x16xf32>
    %45 = vector.extract_strided_slice %1 {offsets = [2, 1, 0], sizes = [16, 16, 16], strides = [1, 1, 1]} : vector<18x18x16xbf16> to vector<16x16x16xbf16>
    %46 = vector.shape_cast %45 : vector<16x16x16xbf16> to vector<256x16xbf16>
    %c7 = arith.constant 7 : index
    %c0_25 = arith.constant 0 : index
    %c0_26 = arith.constant 0 : index
    %47 = vector.load %arg3[%c7, %c0_25, %c0_26] : memref<9x16x16xbf16, #tpu.memory_space<vmem>>, vector<1x16x16xbf16>
    %48 = vector.shape_cast %47 : vector<1x16x16xbf16> to vector<16x16xbf16>
    %cst_27 = arith.constant dense<0.000000e+00> : vector<256x16xf32>
    %49 = tpu.matmul %46, %48, %cst_27 {dimension_numbers = #tpu.dot_dimension_numbers<[1], [0], [0], [1], [0, 0, 1, 1], [], []>} : vector<256x16xbf16>, vector<16x16xbf16>, vector<256x16xf32> -> vector<256x16xf32>
    %50 = arith.addf %44, %49 : vector<256x16xf32>
    %51 = vector.extract_strided_slice %1 {offsets = [2, 2, 0], sizes = [16, 16, 16], strides = [1, 1, 1]} : vector<18x18x16xbf16> to vector<16x16x16xbf16>
    %52 = vector.shape_cast %51 : vector<16x16x16xbf16> to vector<256x16xbf16>
    %c8 = arith.constant 8 : index
    %c0_28 = arith.constant 0 : index
    %c0_29 = arith.constant 0 : index
    %53 = vector.load %arg3[%c8, %c0_28, %c0_29] : memref<9x16x16xbf16, #tpu.memory_space<vmem>>, vector<1x16x16xbf16>
    %54 = vector.shape_cast %53 : vector<1x16x16xbf16> to vector<16x16xbf16>
    %cst_30 = arith.constant dense<0.000000e+00> : vector<256x16xf32>
    %55 = tpu.matmul %52, %54, %cst_30 {dimension_numbers = #tpu.dot_dimension_numbers<[1], [0], [0], [1], [0, 0, 1, 1], [], []>} : vector<256x16xbf16>, vector<16x16xbf16>, vector<256x16xf32> -> vector<256x16xf32>
    %56 = arith.addf %50, %55 : vector<256x16xf32>
    %c0_31 = arith.constant 0 : index
    %c0_32 = arith.constant 0 : index
    %57 = vector.load %arg4[%c0_31, %c0_32] : memref<1x16xf32, #tpu.memory_space<vmem>>, vector<1x16xf32>
    %58 = vector.broadcast %57 : vector<1x16xf32> to vector<256x16xf32>
    %59 = arith.addf %56, %58 : vector<256x16xf32>
    %c0_33 = arith.constant 0 : index
    %c0_34 = arith.constant 0 : index
    %c0_35 = arith.constant 0 : index
    %60 = vector.load %arg5[%c0_33, %c0_34, %c0_35] : memref<1x256x16xf32, #tpu.memory_space<vmem>>, vector<1x256x16xf32>
    %61 = vector.shape_cast %60 : vector<1x256x16xf32> to vector<256x16xf32>
    %62 = vector.shape_cast %59 : vector<256x16xf32> to vector<1x256x16xf32>
    tpu.vector_store %arg5[%c0_33, %c0_34, %c0_35], %62 {strides = array<i32>} : memref<1x256x16xf32, #tpu.memory_space<vmem>>, vector<1x256x16xf32>,
    %cst_36 = arith.constant dense<0.000000e+00> : vector<16xf32>
    %63 = vector.multi_reduction <add>, %59, %cst_36 [0] : vector<256x16xf32> to vector<16xf32>
    %64 = vector.shape_cast %63 : vector<16xf32> to vector<1x16xf32>
    %c0_37 = arith.constant 0 : index
    %c0_38 = arith.constant 0 : index
    %c0_39 = arith.constant 0 : index
    %65 = vector.load %arg6[%c0_37, %c0_38, %c0_39] : memref<1x1x16xf32, #tpu.memory_space<vmem>>, vector<1x1x16xf32>
    %66 = vector.shape_cast %65 : vector<1x1x16xf32> to vector<1x16xf32>
    %67 = vector.shape_cast %64 : vector<1x16xf32> to vector<1x1x16xf32>
    tpu.vector_store %arg6[%c0_37, %c0_38, %c0_39], %67 {strides = array<i32>} : memref<1x1x16xf32, #tpu.memory_space<vmem>>, vector<1x1x16xf32>,
    %68 = arith.mulf %59, %59 : vector<256x16xf32>
    %cst_40 = arith.constant dense<0.000000e+00> : vector<16xf32>
    %69 = vector.multi_reduction <add>, %68, %cst_40 [0] : vector<256x16xf32> to vector<16xf32>
    %70 = vector.shape_cast %69 : vector<16xf32> to vector<1x16xf32>
    %c0_41 = arith.constant 0 : index
    %c0_42 = arith.constant 0 : index
    %c0_43 = arith.constant 0 : index
    %71 = vector.load %arg7[%c0_41, %c0_42, %c0_43] : memref<1x1x16xf32, #tpu.memory_space<vmem>>, vector<1x1x16xf32>
    %72 = vector.shape_cast %71 : vector<1x1x16xf32> to vector<1x16xf32>
    %73 = vector.shape_cast %70 : vector<1x16xf32> to vector<1x1x16xf32>
    tpu.vector_store %arg7[%c0_41, %c0_42, %c0_43], %73 {strides = array<i32>} : memref<1x1x16xf32, #tpu.memory_space<vmem>>, vector<1x1x16xf32>,
    return
  }
  func.func @transform_0(%arg0: i32, %arg1: i32) -> (i32, i32, i32, i32) {
    %c0_i32 = arith.constant 0 : i32
    %c0_i32_0 = arith.constant 0 : i32
    %c0_i32_1 = arith.constant 0 : i32
    %c0_i32_2 = arith.constant 0 : i32
    return %arg0, %c0_i32, %c0_i32_0, %c0_i32_1 : i32, i32, i32, i32
  }
  func.func @transform_1(%arg0: i32, %arg1: i32) -> (i32, i32, i32) {
    %c0_i32 = arith.constant 0 : i32
    %c0_i32_0 = arith.constant 0 : i32
    %c0_i32_1 = arith.constant 0 : i32
    return %c0_i32, %c0_i32_0, %arg1 : i32, i32, i32
  }
  func.func @transform_2(%arg0: i32, %arg1: i32) -> (i32, i32) {
    %c0_i32 = arith.constant 0 : i32
    %c0_i32_0 = arith.constant 0 : i32
    return %c0_i32, %arg1 : i32, i32
  }
  func.func @transform_3(%arg0: i32, %arg1: i32) -> (i32, i32, i32) {
    %c0_i32 = arith.constant 0 : i32
    %c0_i32_0 = arith.constant 0 : i32
    return %arg0, %c0_i32, %arg1 : i32, i32, i32
  }
  func.func @transform_4(%arg0: i32, %arg1: i32) -> (i32, i32, i32) {
    %c0_i32 = arith.constant 0 : i32
    %c0_i32_0 = arith.constant 0 : i32
    return %arg0, %c0_i32, %arg1 : i32, i32, i32
  }
  func.func @transform_5(%arg0: i32, %arg1: i32) -> (i32, i32, i32) {
    %c0_i32 = arith.constant 0 : i32
    %c0_i32_0 = arith.constant 0 : i32
    return %arg0, %c0_i32, %arg1 : i32, i32, i32
  }
}

module attributes {stable_mosaic.version = 11 : i64} {
  func.func @kernel(%arg0: i32, %arg1: i32, %arg2: memref<1x256x16xf32, #tpu.memory_space<vmem>>, %arg3: memref<1x16xf32, #tpu.memory_space<vmem>>, %arg4: memref<1x16xf32, #tpu.memory_space<vmem>>, %arg5: memref<1x16xf32, #tpu.memory_space<vmem>>, %arg6: memref<1x16xf32, #tpu.memory_space<vmem>>, %arg7: memref<1x256x16xf32, #tpu.memory_space<vmem>>) attributes {dimension_semantics = [#tpu.dimension_semantics<parallel>, #tpu.dimension_semantics<parallel>], iteration_bounds = array<i64: 2, 1>, scalar_prefetch = 0 : i64, scratch_operands = 0 : i64, tpu.core_type = #tpu.core_type<tc>, window_params = [{transform_indices = @transform_0, window_bounds = array<i64: 1, 256, 16>}, {transform_indices = @transform_1, window_bounds = array<i64: 1, 16>}, {transform_indices = @transform_2, window_bounds = array<i64: 1, 16>}, {transform_indices = @transform_3, window_bounds = array<i64: 1, 16>}, {transform_indices = @transform_4, window_bounds = array<i64: 1, 16>}, {transform_indices = @transform_5, window_bounds = array<i64: 1, 256, 16>}]} {
    %c0 = arith.constant 0 : index
    %c0_0 = arith.constant 0 : index
    %0 = vector.load %arg3[%c0, %c0_0] : memref<1x16xf32, #tpu.memory_space<vmem>>, vector<1x16xf32>
    %cst = arith.constant 0.001953125 : f32
    %1 = vector.broadcast %cst : f32 to vector<1x16xf32>
    %2 = arith.mulf %0, %1 : vector<1x16xf32>
    %c0_1 = arith.constant 0 : index
    %c0_2 = arith.constant 0 : index
    %3 = vector.load %arg4[%c0_1, %c0_2] : memref<1x16xf32, #tpu.memory_space<vmem>>, vector<1x16xf32>
    %cst_3 = arith.constant 0.001953125 : f32
    %4 = vector.broadcast %cst_3 : f32 to vector<1x16xf32>
    %5 = arith.mulf %3, %4 : vector<1x16xf32>
    %6 = arith.mulf %2, %2 : vector<1x16xf32>
    %7 = arith.subf %5, %6 : vector<1x16xf32>
    %cst_4 = arith.constant 0.000000e+00 : f32
    %8 = vector.broadcast %cst_4 : f32 to vector<1x16xf32>
    %9 = arith.maximumf %7, %8 : vector<1x16xf32>
    %cst_5 = arith.constant 9.99999974E-6 : f32
    %10 = vector.broadcast %cst_5 : f32 to vector<1x16xf32>
    %11 = arith.addf %9, %10 : vector<1x16xf32>
    %12 = math.rsqrt %11 : vector<1x16xf32>
    %c0_6 = arith.constant 0 : index
    %c0_7 = arith.constant 0 : index
    %13 = vector.load %arg5[%c0_6, %c0_7] : memref<1x16xf32, #tpu.memory_space<vmem>>, vector<1x16xf32>
    %14 = arith.mulf %13, %12 : vector<1x16xf32>
    %c0_8 = arith.constant 0 : index
    %c0_9 = arith.constant 0 : index
    %15 = vector.load %arg6[%c0_8, %c0_9] : memref<1x16xf32, #tpu.memory_space<vmem>>, vector<1x16xf32>
    %16 = arith.mulf %2, %14 : vector<1x16xf32>
    %17 = arith.subf %15, %16 : vector<1x16xf32>
    %c0_10 = arith.constant 0 : index
    %c0_11 = arith.constant 0 : index
    %c0_12 = arith.constant 0 : index
    %18 = vector.load %arg2[%c0_10, %c0_11, %c0_12] : memref<1x256x16xf32, #tpu.memory_space<vmem>>, vector<1x256x16xf32>
    %19 = vector.shape_cast %18 : vector<1x256x16xf32> to vector<256x16xf32>
    %20 = vector.broadcast %14 : vector<1x16xf32> to vector<256x16xf32>
    %21 = arith.mulf %19, %20 : vector<256x16xf32>
    %22 = vector.broadcast %17 : vector<1x16xf32> to vector<256x16xf32>
    %23 = arith.addf %21, %22 : vector<256x16xf32>
    %cst_13 = arith.constant 0.000000e+00 : f32
    %24 = vector.broadcast %cst_13 : f32 to vector<256x16xf32>
    %25 = arith.maximumf %23, %24 : vector<256x16xf32>
    %c0_14 = arith.constant 0 : index
    %c0_15 = arith.constant 0 : index
    %c0_16 = arith.constant 0 : index
    %26 = vector.load %arg7[%c0_14, %c0_15, %c0_16] : memref<1x256x16xf32, #tpu.memory_space<vmem>>, vector<1x256x16xf32>
    %27 = vector.shape_cast %26 : vector<1x256x16xf32> to vector<256x16xf32>
    %28 = vector.shape_cast %25 : vector<256x16xf32> to vector<1x256x16xf32>
    tpu.vector_store %arg7[%c0_14, %c0_15, %c0_16], %28 {strides = array<i32>} : memref<1x256x16xf32, #tpu.memory_space<vmem>>, vector<1x256x16xf32>,
    return
  }
  func.func @transform_0(%arg0: i32, %arg1: i32) -> (i32, i32, i32) {
    %c0_i32 = arith.constant 0 : i32
    %c0_i32_0 = arith.constant 0 : i32
    return %arg0, %c0_i32, %arg1 : i32, i32, i32
  }
  func.func @transform_1(%arg0: i32, %arg1: i32) -> (i32, i32) {
    %c0_i32 = arith.constant 0 : i32
    %c0_i32_0 = arith.constant 0 : i32
    return %c0_i32, %arg1 : i32, i32
  }
  func.func @transform_2(%arg0: i32, %arg1: i32) -> (i32, i32) {
    %c0_i32 = arith.constant 0 : i32
    %c0_i32_0 = arith.constant 0 : i32
    return %c0_i32, %arg1 : i32, i32
  }
  func.func @transform_3(%arg0: i32, %arg1: i32) -> (i32, i32) {
    %c0_i32 = arith.constant 0 : i32
    %c0_i32_0 = arith.constant 0 : i32
    return %c0_i32, %arg1 : i32, i32
  }
  func.func @transform_4(%arg0: i32, %arg1: i32) -> (i32, i32) {
    %c0_i32 = arith.constant 0 : i32
    %c0_i32_0 = arith.constant 0 : i32
    return %c0_i32, %arg1 : i32, i32
  }
  func.func @transform_5(%arg0: i32, %arg1: i32) -> (i32, i32, i32) {
    %c0_i32 = arith.constant 0 : i32
    %c0_i32_0 = arith.constant 0 : i32
    return %arg0, %c0_i32, %arg1 : i32, i32, i32
  }
}

</mosaic_0001>

<bundles_post_ra>
// kernel: double_conv_forward.5
= control target key start
LH: loop header
LB: loop body
LE: loop exit
PB: predicated region body
PF: predicated region fallthrough
CT: control target
= control target key end

     0   :  { %s1031_s18 = smov 0   ;;  %s1033_s19 = smov 0   ;;  %s1322_s0 = inlined_call_operand.vmem [shape: bf16[2,256,16], index: 0, kind: input, shape index: {}]   ;;  %s1323_s1 = inlined_call_operand.vmem [shape: f32[1,16], index: 1, kind: input, shape index: {}]   ;;  %s1324_s2 = inlined_call_operand.vmem [shape: f32[1,16], index: 2, kind: input, shape index: {}]   ;;  %s1325_s3 = inlined_call_operand.vmem [shape: f32[1,16], index: 3, kind: input, shape index: {}]   ;;  %s1326_s4 = inlined_call_operand.vmem [shape: f32[1,16], index: 4, kind: input, shape index: {}]   ;;  %s1327_s5 = inlined_call_operand.vmem [shape: bf16[2,256,16], index: 5, kind: output, shape index: {}]  }
   0x1   :  { %s1035_s20 = smov 0  }
   0x2 LB: > { %s27_s21 = sadd.s32 1, %s995_s19  ;;  %p799_p0 = scmp.ge.s32.totalorder %s999_s20, 1  ;;  %s999_s20 = sphi %s1035_s20, %s15_s20   ;;  %s995_s19 = sphi %s1033_s19, %s1329_s19   ;;  %s991_s18 = sphi %s1031_s18, %s1328_s18  }
   0x3   : > { %p29_p1 = scmp.ge.s32.totalorder %s27_s21, 2  ;;  %p238_p2 = scmp.lt.s32.totalorder %s999_s20, 3 }
   0x5   : > { %s1331_s21 = smov (%p29_p1, %s27_s21), 0  ;;  %p239_p3 = pnand %p799_p0, %p238_p2 }
   0x6   : > { %p284_p4 = scmp.lt.s32.totalorder (!%p239_p3), %s991_s18, 1  ;;  %v312_v0 = vld [vmem:[%s1323_s1] sm:$0x1] (!%p239_p3)  ;;  %v391_v8 = vlaneseq (!%p239_p3)  ;;  %vm626_vm0 = vcmask (!%p239_p3), 125952  }
   0x7   : > { %242 = sbr.rel (%p239_p3) target bundleno = 71 (0x47), region = 40  ;;  %v314_v1 = vld [vmem:[%s1324_s2] sm:$0x1] (!%p239_p3)  ;;  %v313_v2 = vmul.f32 (!%p239_p3), 0.001953125, %v312_v0 }
   0x8   : > { %v315_v3 = vmul.f32 (!%p239_p3), 0.001953125, %v314_v1  ;;  %v1065_v9 = vshrl.u32 (!%p239_p3), %v391_v8, 7  ;;  %v321_v28 = vld [vmem:[%s1325_s3] sm:$0x1] (!%p239_p3) }
   0x9   : > { %v316_v4 = vmul.f32 (!%p239_p3), %v313_v2, %v313_v2  ;;  %v323_v52 = vld [vmem:[%s1326_s4] sm:$0x1] (!%p239_p3) }
   0xa   : > { %v393_v17 = vsub.s32 (!%p239_p3), 0, %v1065_v9 }
   0xb   : > { %v317_v5 = vsub.f32 (!%p239_p3), %v315_v3, %v316_v4 }
   0xd   : > { %v318_v6 = vmax.f32 (!%p239_p3), %v317_v5, 0.0 }
   0xe   : > { %s1333_s18 = smov (!%p284_p4, %s991_s18), 1 }
   0xf   : > { %s838_s26 = sshll.u32 %s1333_s18, 7  ;;  %v319_v7 = vadd.f32 1e-05, %v318_v6 }
  0x10   : > { %s1063_s29 = scalar_lea.vmem %s1322_s0, %s838_s26  ;;  %s1169_s11 = scalar_lea.vmem %s1327_s5, %s838_s26 }
  0x11   : > { %975 = vrsqrt.f32 %v319_v7  ;;  %v873_v10 = vld [vmem:[%s1063_s29] sm:$0xff]   ;;  %v936_v11 = vld [vmem:[%s1063_s29 + $0x8] sm:$0xff]   ;;  %v937_v12 = vld [vmem:[%s1063_s29 + $0x10] sm:$0xff]  }
  0x12   : > { %v1071_v13 = vld [vmem:[%s1063_s29 + $0x18] sm:$0xff]   ;;  %v1074_v14 = vld [vmem:[%s1063_s29 + $0x20] sm:$0xff]   ;;  %v1077_v15 = vld [vmem:[%s1063_s29 + $0x28] sm:$0xff]   ;;  %v874_v16 = vunpack.c.l.bf16 %v873_v10  ;;  %v875_v18 = vunpack.c.h.bf16 %v873_v10  ;;  %v878_v19 = vunpack.c.l.bf16 %v936_v11  ;;  %v879_v22 = vunpack.c.h.bf16 %v936_v11 }
  0x13   : > { %v941_v20 = vld [vmem:[%s1063_s29 + $0x30] sm:$0xff]   ;;  %v1082_v21 = vld [vmem:[%s1063_s29 + $0x38] sm:$0xff]   ;;  %v882_v23 = vunpack.c.l.bf16 %v937_v12  ;;  %v883_v24 = vunpack.c.h.bf16 %v937_v12  ;;  %v886_v25 = vunpack.c.l.bf16 %v1071_v13  ;;  %v1086_v26 = vld [vmem:[%s1063_s29 + $0x40] sm:$0xff]   ;;  %v887_v29 = vunpack.c.h.bf16 %v1071_v13 }
  0x14   : > { %v1089_v27 = vld [vmem:[%s1063_s29 + $0x48] sm:$0xff]   ;;  %v890_v30 = vunpack.c.l.bf16 %v1074_v14  ;;  %v891_v31 = vunpack.c.h.bf16 %v1074_v14  ;;  %v894_v32 = vunpack.c.l.bf16 %v1077_v15  ;;  %v1099_v33 = vld [vmem:[%s1063_s29 + $0x50] sm:$0xff]   ;;  %v895_v34 = vunpack.c.h.bf16 %v1077_v15  ;;  %v1104_v38 = vld [vmem:[%s1063_s29 + $0x58] sm:$0xff]  }
  0x15   : > { %v898_v35 = vunpack.c.l.bf16 %v941_v20  ;;  %v899_v36 = vunpack.c.h.bf16 %v941_v20  ;;  %v902_v37 = vunpack.c.l.bf16 %v1082_v21  ;;  %v1107_v39 = vld [vmem:[%s1063_s29 + $0x60] sm:$0xff]   ;;  %v903_v41 = vunpack.c.h.bf16 %v1082_v21  ;;  %v1114_v45 = vld [vmem:[%s1063_s29 + $0x68] sm:$0xff]   ;;  %v1120_v50 = vld [vmem:[%s1063_s29 + $0x70] sm:$0xff]  }
  0x16   : > { %v906_v42 = vunpack.c.l.bf16 %v1086_v26  ;;  %v907_v43 = vunpack.c.h.bf16 %v1086_v26  ;;  %v910_v44 = vunpack.c.l.bf16 %v1089_v27  ;;  %v911_v47 = vunpack.c.h.bf16 %v1089_v27  ;;  %v1123_v51 = vld [vmem:[%s1063_s29 + $0x78] sm:$0xff]  }
  0x17   : > { %v914_v48 = vunpack.c.l.bf16 %v1099_v33  ;;  %v915_v49 = vunpack.c.h.bf16 %v1099_v33  ;;  %v918_v53 = vunpack.c.l.bf16 %v1104_v38  ;;  %v919_v54 = vunpack.c.h.bf16 %v1104_v38 }
  0x18   : > { %v922_v55 = vunpack.c.l.bf16 %v1107_v39  ;;  %v923_v56 = vunpack.c.h.bf16 %v1107_v39  ;;  %v926_v59 = vunpack.c.l.bf16 %v1114_v45  ;;  %v927_v60 = vunpack.c.h.bf16 %v1114_v45 }
  0x19   : > { %v930_v61 = vunpack.c.l.bf16 %v1120_v50  ;;  %v931_v62 = vunpack.c.h.bf16 %v1120_v50  ;;  %v934_v63 = vunpack.c.l.bf16 %v1123_v51  ;;  %v935_v0 = vunpack.c.h.bf16 %v1123_v51 }
  0x1b   : > { %v976_v40 = vpop.eup %975 }
  0x1c   : > { %v322_v46 = vmul.f32 %v976_v40, %v321_v28 }
  0x1e   : > { %v324_v57 = vmul.f32 %v322_v46, %v313_v2  ;;  %v1132_v58 = vrot.slane %v322_v46, %v393_v17 }
  0x20   : > { %v325_v1 = vsub.f32 %v323_v52, %v324_v57  ;;  %v396_v3 = vmul.f32 %v874_v16, %v1132_v58  ;;  %v397_v2 = vmul.f32 %v875_v18, %v1132_v58  ;;  %v398_v4 = vmul.f32 %v878_v19, %v1132_v58 }
  0x21   : > { %v399_v5 = vmul.f32 %v879_v22, %v1132_v58  ;;  %v400_v6 = vmul.f32 %v882_v23, %v1132_v58  ;;  %v401_v7 = vmul.f32 %v883_v24, %v1132_v58  ;;  %v402_v8 = vmul.f32 %v886_v25, %v1132_v58 }
  0x22   : > { %v1147_v9 = vrot.slane %v325_v1, %v393_v17  ;;  %v403_v10 = vmul.f32 %v887_v29, %v1132_v58  ;;  %v404_v11 = vmul.f32 %v890_v30, %v1132_v58  ;;  %v405_v12 = vmul.f32 %v891_v31, %v1132_v58 }
  0x23   : > { %v406_v13 = vmul.f32 %v894_v32, %v1132_v58  ;;  %v407_v14 = vmul.f32 %v895_v34, %v1132_v58  ;;  %v408_v15 = vmul.f32 %v898_v35, %v1132_v58  ;;  %v409_v16 = vmul.f32 %v899_v36, %v1132_v58 }
  0x24   : > { %v434_v18 = vadd.f32 %v1147_v9, %v396_v3  ;;  %v435_v17 = vadd.f32 %v1147_v9, %v397_v2  ;;  %v436_v19 = vadd.f32 %v1147_v9, %v398_v4  ;;  %v437_v20 = vadd.f32 %v1147_v9, %v399_v5 }
  0x25   : > { %v438_v22 = vadd.f32 %v1147_v9, %v400_v6  ;;  %v439_v23 = vadd.f32 %v1147_v9, %v401_v7  ;;  %v440_v24 = vadd.f32 %v1147_v9, %v402_v8  ;;  %v441_v25 = vadd.f32 %v1147_v9, %v403_v10 }
  0x26   : > { %v466_v28 = vmax.f32 %v434_v18, 0.0  ;;  %v467_v29 = vmax.f32 %v435_v17, 0.0  ;;  %v468_v30 = vmax.f32 %v436_v19, 0.0  ;;  %v469_v31 = vmax.f32 %v437_v20, 0.0 }
  0x27   : > { %v470_v32 = vmax.f32 %v438_v22, 0.0  ;;  %v471_v34 = vmax.f32 %v439_v23, 0.0  ;;  %v472_v35 = vmax.f32 %v440_v24, 0.0  ;;  %v473_v36 = vmax.f32 %v441_v25, 0.0 }
  0x28   : > { %v840_v40 = vpack.c.bf16 %v466_v28, %v466_v28  ;;  %v841_v46 = vpack.c.bf16 %v467_v29, %v467_v29  ;;  %v842_v52 = vpack.c.bf16 %v468_v30, %v468_v30  ;;  %v843_v57 = vpack.c.bf16 %v469_v31, %v469_v31 }
  0x29   : > { %v844_v1 = vpack.c.bf16 %v470_v32, %v470_v32  ;;  %v845_v3 = vpack.c.bf16 %v471_v34, %v471_v34  ;;  %v846_v2 = vpack.c.bf16 %v472_v35, %v472_v35  ;;  %v847_v4 = vpack.c.bf16 %v473_v36, %v473_v36 }
  0x2a   : > { %627 = vst.msk [vmem:[%s1169_s11] sm:$0xf] %vm626_vm0, %v840_v40  ;;  %628 = vst.msk [vmem:[%s1169_s11 + $0x4] sm:$0xf] %vm626_vm0, %v841_v46  ;;  %v442_v5 = vadd.f32 %v1147_v9, %v404_v11  ;;  %v443_v6 = vadd.f32 %v1147_v9, %v405_v12  ;;  %v444_v7 = vadd.f32 %v1147_v9, %v406_v13 }
  0x2b   : > { %629 = vst.msk [vmem:[%s1169_s11 + $0x8] sm:$0xf] %vm626_vm0, %v842_v52  ;;  %630 = vst.msk [vmem:[%s1169_s11 + $0xc] sm:$0xf] %vm626_vm0, %v843_v57  ;;  %v445_v8 = vadd.f32 %v1147_v9, %v407_v14  ;;  %v446_v10 = vadd.f32 %v1147_v9, %v408_v15  ;;  %v447_v18 = vadd.f32 %v1147_v9, %v409_v16 }
  0x2c   : > { %631 = vst.msk [vmem:[%s1169_s11 + $0x10] sm:$0xf] %vm626_vm0, %v844_v1  ;;  %632 = vst.msk [vmem:[%s1169_s11 + $0x14] sm:$0xf] %vm626_vm0, %v845_v3  ;;  %v410_v11 = vmul.f32 %v902_v37, %v1132_v58  ;;  %v411_v12 = vmul.f32 %v903_v41, %v1132_v58  ;;  %v474_v13 = vmax.f32 %v442_v5, 0.0  ;;  %v475_v14 = vmax.f32 %v443_v6, 0.0 }
  0x2d   : > { %633 = vst.msk [vmem:[%s1169_s11 + $0x18] sm:$0xf] %vm626_vm0, %v846_v2  ;;  %634 = vst.msk [vmem:[%s1169_s11 + $0x1c] sm:$0xf] %vm626_vm0, %v847_v4  ;;  %v476_v17 = vmax.f32 %v444_v7, 0.0  ;;  %v477_v19 = vmax.f32 %v445_v8, 0.0  ;;  %v412_v30 = vmul.f32 %v906_v42, %v1132_v58  ;;  %v413_v31 = vmul.f32 %v907_v43, %v1132_v58 }
  0x2e   : > { %v478_v20 = vmax.f32 %v446_v10, 0.0  ;;  %v479_v15 = vmax.f32 %v447_v18, 0.0  ;;  %v448_v16 = vadd.f32 %v1147_v9, %v410_v11  ;;  %v449_v22 = vadd.f32 %v1147_v9, %v411_v12 }
  0x2f   : > { %v848_v23 = vpack.c.bf16 %v474_v13, %v474_v13  ;;  %v849_v37 = vpack.c.bf16 %v475_v14, %v475_v14  ;;  %v850_v21 = vpack.c.bf16 %v476_v17, %v476_v17  ;;  %v851_v41 = vpack.c.bf16 %v477_v19, %v477_v19 }
  0x30   : > { %v852_v24 = vpack.c.bf16 %v478_v20, %v478_v20  ;;  %v853_v25 = vpack.c.bf16 %v479_v15, %v479_v15  ;;  %v480_v28 = vmax.f32 %v448_v16, 0.0  ;;  %v481_v29 = vmax.f32 %v449_v22, 0.0 }
  0x31   : > { %635 = vst.msk [vmem:[%s1169_s11 + $0x20] sm:$0xf] %vm626_vm0, %v848_v23  ;;  %636 = vst.msk [vmem:[%s1169_s11 + $0x24] sm:$0xf] %vm626_vm0, %v849_v37  ;;  %v414_v32 = vmul.f32 %v910_v44, %v1132_v58  ;;  %v415_v34 = vmul.f32 %v911_v47, %v1132_v58  ;;  %v416_v42 = vmul.f32 %v914_v48, %v1132_v58 }
  0x32   : > { %637 = vst.msk [vmem:[%s1169_s11 + $0x28] sm:$0xf] %vm626_vm0, %v850_v21  ;;  %638 = vst.msk [vmem:[%s1169_s11 + $0x2c] sm:$0xf] %vm626_vm0, %v851_v41  ;;  %v854_v35 = vpack.c.bf16 %v480_v28, %v480_v28  ;;  %v855_v36 = vpack.c.bf16 %v481_v29, %v481_v29  ;;  %v417_v26 = vmul.f32 %v915_v49, %v1132_v58 }
  0x33   : > { %639 = vst.msk [vmem:[%s1169_s11 + $0x30] sm:$0xf] %vm626_vm0, %v852_v24  ;;  %640 = vst.msk [vmem:[%s1169_s11 + $0x34] sm:$0xf] %vm626_vm0, %v853_v25  ;;  %v450_v43 = vadd.f32 %v1147_v9, %v412_v30  ;;  %v451_v44 = vadd.f32 %v1147_v9, %v413_v31  ;;  %v452_v27 = vadd.f32 %v1147_v9, %v414_v32 }
  0x34   : > { %v453_v47 = vadd.f32 %v1147_v9, %v415_v34  ;;  %641 = vst.msk [vmem:[%s1169_s11 + $0x38] sm:$0xf] %vm626_vm0, %v854_v35  ;;  %642 = vst.msk [vmem:[%s1169_s11 + $0x3c] sm:$0xf] %vm626_vm0, %v855_v36  ;;  %v454_v40 = vadd.f32 %v1147_v9, %v416_v42  ;;  %v455_v48 = vadd.f32 %v1147_v9, %v417_v26 }
  0x35   : > { %v418_v33 = vmul.f32 %v918_v53, %v1132_v58  ;;  %v419_v49 = vmul.f32 %v919_v54, %v1132_v58  ;;  %v482_v46 = vmax.f32 %v450_v43, 0.0  ;;  %v483_v52 = vmax.f32 %v451_v44, 0.0 }
  0x36   : > { %v484_v57 = vmax.f32 %v452_v27, 0.0  ;;  %v485_v1 = vmax.f32 %v453_v47, 0.0  ;;  %v486_v3 = vmax.f32 %v454_v40, 0.0  ;;  %v487_v2 = vmax.f32 %v455_v48, 0.0 }
  0x37   : > { %v456_v4 = vadd.f32 %v1147_v9, %v418_v33  ;;  %v457_v5 = vadd.f32 %v1147_v9, %v419_v49  ;;  %v856_v6 = vpack.c.bf16 %v482_v46, %v482_v46  ;;  %v857_v53 = vpack.c.bf16 %v483_v52, %v483_v52 }
  0x38   : > { %v858_v38 = vpack.c.bf16 %v484_v57, %v484_v57  ;;  %v859_v54 = vpack.c.bf16 %v485_v1, %v485_v1  ;;  %v860_v7 = vpack.c.bf16 %v486_v3, %v486_v3  ;;  %v861_v8 = vpack.c.bf16 %v487_v2, %v487_v2 }
  0x39   : > { %v488_v10 = vmax.f32 %v456_v4, 0.0  ;;  %v489_v18 = vmax.f32 %v457_v5, 0.0  ;;  %643 = vst.msk [vmem:[%s1169_s11 + $0x40] sm:$0xf] %vm626_vm0, %v856_v6  ;;  %644 = vst.msk [vmem:[%s1169_s11 + $0x44] sm:$0xf] %vm626_vm0, %v857_v53  ;;  %v420_v11 = vmul.f32 %v922_v55, %v1132_v58  ;;  %v421_v12 = vmul.f32 %v923_v56, %v1132_v58 }
  0x3a   : > { %645 = vst.msk [vmem:[%s1169_s11 + $0x48] sm:$0xf] %vm626_vm0, %v858_v38  ;;  %646 = vst.msk [vmem:[%s1169_s11 + $0x4c] sm:$0xf] %vm626_vm0, %v859_v54  ;;  %v422_v13 = vmul.f32 %v926_v59, %v1132_v58  ;;  %v423_v14 = vmul.f32 %v927_v60, %v1132_v58  ;;  %v424_v55 = vmul.f32 %v930_v61, %v1132_v58 }
  0x3b   : > { %647 = vst.msk [vmem:[%s1169_s11 + $0x50] sm:$0xf] %vm626_vm0, %v860_v7  ;;  %648 = vst.msk [vmem:[%s1169_s11 + $0x54] sm:$0xf] %vm626_vm0, %v861_v8  ;;  %v862_v17 = vpack.c.bf16 %v488_v10, %v488_v10  ;;  %v863_v19 = vpack.c.bf16 %v489_v18, %v489_v18  ;;  %v425_v39 = vmul.f32 %v931_v62, %v1132_v58 }
  0x3c   : > { %v458_v56 = vadd.f32 %v1147_v9, %v420_v11  ;;  %v459_v59 = vadd.f32 %v1147_v9, %v421_v12  ;;  %v460_v45 = vadd.f32 %v1147_v9, %v422_v13  ;;  %v461_v60 = vadd.f32 %v1147_v9, %v423_v14 }
  0x3d   : > { %649 = vst.msk [vmem:[%s1169_s11 + $0x58] sm:$0xf] %vm626_vm0, %v862_v17  ;;  %650 = vst.msk [vmem:[%s1169_s11 + $0x5c] sm:$0xf] %vm626_vm0, %v863_v19  ;;  %v462_v20 = vadd.f32 %v1147_v9, %v424_v55  ;;  %v463_v61 = vadd.f32 %v1147_v9, %v425_v39  ;;  %v426_v50 = vmul.f32 %v934_v63, %v1132_v58 }
  0x3e   : > { %v427_v62 = vmul.f32 %v935_v0, %v1132_v58  ;;  %v490_v15 = vmax.f32 %v458_v56, 0.0  ;;  %v491_v16 = vmax.f32 %v459_v59, 0.0  ;;  %v492_v22 = vmax.f32 %v460_v45, 0.0 }
  0x3f   : > { %v493_v23 = vmax.f32 %v461_v60, 0.0  ;;  %v494_v37 = vmax.f32 %v462_v20, 0.0  ;;  %v495_v21 = vmax.f32 %v463_v61, 0.0  ;;  %v464_v41 = vadd.f32 %v1147_v9, %v426_v50 }
  0x40   : > { %v465_v63 = vadd.f32 %v1147_v9, %v427_v62  ;;  %v864_v24 = vpack.c.bf16 %v490_v15, %v490_v15  ;;  %v865_v51 = vpack.c.bf16 %v491_v16, %v491_v16  ;;  %v866_v58 = vpack.c.bf16 %v492_v22, %v492_v22 }
  0x41   : > { %v867_v0 = vpack.c.bf16 %v493_v23, %v493_v23  ;;  %v868_v25 = vpack.c.bf16 %v494_v37, %v494_v37  ;;  %v869_v28 = vpack.c.bf16 %v495_v21, %v495_v21  ;;  %v496_v29 = vmax.f32 %v464_v41, 0.0 }
  0x42   : > { %v497_v30 = vmax.f32 %v465_v63, 0.0  ;;  %651 = vst.msk [vmem:[%s1169_s11 + $0x60] sm:$0xf] %vm626_vm0, %v864_v24  ;;  %652 = vst.msk [vmem:[%s1169_s11 + $0x64] sm:$0xf] %vm626_vm0, %v865_v51 }
  0x43   : > { %653 = vst.msk [vmem:[%s1169_s11 + $0x68] sm:$0xf] %vm626_vm0, %v866_v58  ;;  %654 = vst.msk [vmem:[%s1169_s11 + $0x6c] sm:$0xf] %vm626_vm0, %v867_v0  ;;  %v870_v9 = vpack.c.bf16 %v496_v29, %v496_v29 }
  0x44   : > { %655 = vst.msk [vmem:[%s1169_s11 + $0x70] sm:$0xf] %vm626_vm0, %v868_v25  ;;  %656 = vst.msk [vmem:[%s1169_s11 + $0x74] sm:$0xf] %vm626_vm0, %v869_v28  ;;  %v871_v31 = vpack.c.bf16 %v497_v30, %v497_v30 }
  0x45   : > { %657 = vst.msk [vmem:[%s1169_s11 + $0x78] sm:$0xf] %vm626_vm0, %v870_v9 }
  0x46   : > { %658 = vst.msk [vmem:[%s1169_s11 + $0x7c] sm:$0xf] %vm626_vm0, %v871_v31 }
  0x47 PF: > { %s15_s20 = sadd.s32 1, %s999_s20   ;;  %s1328_s18 = smov %s995_s19 }
  0x48   : > { %p12_p5 = scmp.ge.s32.totalorder %s15_s20, 4   ;;  %s1329_s19 = smov %s1331_s21 }
  0x4a   :  { %14 = sbr.rel (!%p12_p5) target bundleno = 2 (0x2), region = 82 }

// kernel: double_conv_forward.7
= control target key start
LH: loop header
LB: loop body
LE: loop exit
PB: predicated region body
PF: predicated region fallthrough
CT: control target
= control target key end

     0   :  { %s728_s18 = smov 0   ;;  %s730_s19 = smov 0   ;;  %s948_s0 = inlined_call_operand.vmem [shape: f32[2,256,16], index: 0, kind: input, shape index: {}]   ;;  %s949_s1 = inlined_call_operand.vmem [shape: f32[1,16], index: 1, kind: input, shape index: {}]   ;;  %s950_s2 = inlined_call_operand.vmem [shape: f32[1,16], index: 2, kind: input, shape index: {}]   ;;  %s951_s3 = inlined_call_operand.vmem [shape: f32[1,16], index: 3, kind: input, shape index: {}]   ;;  %s952_s4 = inlined_call_operand.vmem [shape: f32[1,16], index: 4, kind: input, shape index: {}]   ;;  %s953_s5 = inlined_call_operand.vmem [shape: f32[2,256,16], index: 5, kind: output, shape index: {}]  }
   0x1   :  { %s732_s20 = smov 0  }
   0x2 LB: > { %s27_s21 = sadd.s32 1, %s692_s19  ;;  %p639_p0 = scmp.ge.s32.totalorder %s696_s20, 1  ;;  %s696_s20 = sphi %s732_s20, %s15_s20   ;;  %s692_s19 = sphi %s730_s19, %s955_s19   ;;  %s688_s18 = sphi %s728_s18, %s954_s18  }
   0x3   : > { %p29_p1 = scmp.ge.s32.totalorder %s27_s21, 2  ;;  %p238_p2 = scmp.lt.s32.totalorder %s696_s20, 3 }
   0x5   : > { %s957_s21 = smov (%p29_p1, %s27_s21), 0  ;;  %p239_p3 = pnand %p639_p0, %p238_p2 }
   0x6   : > { %v312_v0 = vld [vmem:[%s949_s1] sm:$0x1] (!%p239_p3)  ;;  %p284_p4 = scmp.lt.s32.totalorder (!%p239_p3), %s688_s18, 1  ;;  %v359_v8 = vlaneseq (!%p239_p3)  ;;  %vm466_vm0 = vcmask (!%p239_p3), 130048  }
   0x7   : > { %242 = sbr.rel (%p239_p3) target bundleno = 62 (0x3e), region = 40  ;;  %v314_v1 = vld [vmem:[%s950_s2] sm:$0x1] (!%p239_p3)  ;;  %v313_v2 = vmul.f32 (!%p239_p3), 0.001953125, %v312_v0 }
   0x8   : > { %v315_v3 = vmul.f32 (!%p239_p3), 0.001953125, %v314_v1  ;;  %v360_v9 = vshrl.u32 (!%p239_p3), %v359_v8, 7  ;;  %v321_v10 = vld [vmem:[%s951_s3] sm:$0x1] (!%p239_p3) }
   0x9   : > { %v316_v4 = vmul.f32 (!%p239_p3), %v313_v2, %v313_v2  ;;  %v323_v14 = vld [vmem:[%s952_s4] sm:$0x1] (!%p239_p3) }
   0xa   : > { %v361_v11 = vsub.s32 (!%p239_p3), 0, %v360_v9 }
   0xb   : > { %v317_v5 = vsub.f32 (!%p239_p3), %v315_v3, %v316_v4 }
   0xd   : > { %v318_v6 = vmax.f32 (!%p239_p3), %v317_v5, 0.0 }
   0xe   : > { %s959_s18 = smov (!%p284_p4, %s688_s18), 1 }
   0xf   : > { %v319_v7 = vadd.f32 1e-05, %v318_v6  ;;  %s646_s26 = sshll.u32 %s959_s18, 8 }
  0x10   : > { %s760_s29 = scalar_lea.vmem %s948_s0, %s646_s26  ;;  %s809_s11 = scalar_lea.vmem %s953_s5, %s646_s26 }
  0x11   : > { %672 = vrsqrt.f32 %v319_v7  ;;  %v326_v15 = vld [vmem:[%s760_s29] sm:$0xff]  ;;  %v327_v16 = vld [vmem:[%s760_s29 + $0x8] sm:$0xff]  ;;  %v328_v17 = vld [vmem:[%s760_s29 + $0x10] sm:$0xff] }
  0x12   : > { %v329_v18 = vld [vmem:[%s760_s29 + $0x18] sm:$0xff]  ;;  %v330_v19 = vld [vmem:[%s760_s29 + $0x20] sm:$0xff]  ;;  %v331_v22 = vld [vmem:[%s760_s29 + $0x28] sm:$0xff] }
  0x13   : > { %v332_v23 = vld [vmem:[%s760_s29 + $0x30] sm:$0xff]  ;;  %v333_v24 = vld [vmem:[%s760_s29 + $0x38] sm:$0xff]  ;;  %v334_v25 = vld [vmem:[%s760_s29 + $0x40] sm:$0xff] }
  0x14   : > { %v335_v26 = vld [vmem:[%s760_s29 + $0x48] sm:$0xff]  ;;  %v336_v27 = vld [vmem:[%s760_s29 + $0x50] sm:$0xff]  ;;  %v337_v32 = vld [vmem:[%s760_s29 + $0x58] sm:$0xff] }
  0x15   : > { %v338_v33 = vld [vmem:[%s760_s29 + $0x60] sm:$0xff]  ;;  %v339_v34 = vld [vmem:[%s760_s29 + $0x68] sm:$0xff]  ;;  %v340_v59 = vld [vmem:[%s760_s29 + $0x70] sm:$0xff] }
  0x16   : > { %v341_v60 = vld [vmem:[%s760_s29 + $0x78] sm:$0xff]  ;;  %v342_v5 = vld [vmem:[%s760_s29 + $0x80] sm:$0xff] }
  0x1b   : > { %v673_v12 = vpop.eup %672 }
  0x1c   : > { %v322_v13 = vmul.f32 %v673_v12, %v321_v10  ;;  %v343_v10 = vld [vmem:[%s760_s29 + $0x88] sm:$0xff]  ;;  %v345_v12 = vld [vmem:[%s760_s29 + $0x98] sm:$0xff] }
  0x1e   : > { %v324_v20 = vmul.f32 %v322_v13, %v313_v2  ;;  %v773_v21 = vrot.slane %v322_v13, %v361_v11 }
  0x20   : > { %v325_v28 = vsub.f32 %v323_v14, %v324_v20  ;;  %v364_v29 = vmul.f32 %v773_v21, %v326_v15  ;;  %v365_v30 = vmul.f32 %v773_v21, %v327_v16  ;;  %v366_v31 = vmul.f32 %v773_v21, %v328_v17  ;;  %v346_v17 = vld [vmem:[%s760_s29 + $0xa0] sm:$0xff] }
  0x21   : > { %v367_v35 = vmul.f32 %v773_v21, %v329_v18  ;;  %v368_v36 = vmul.f32 %v773_v21, %v330_v19  ;;  %v369_v37 = vmul.f32 %v773_v21, %v331_v22  ;;  %v370_v38 = vmul.f32 %v773_v21, %v332_v23  ;;  %v347_v18 = vld [vmem:[%s760_s29 + $0xa8] sm:$0xff] }
  0x22   : > { %v791_v39 = vrot.slane %v325_v28, %v361_v11  ;;  %v371_v40 = vmul.f32 %v773_v21, %v333_v24  ;;  %v372_v41 = vmul.f32 %v773_v21, %v334_v25  ;;  %v373_v42 = vmul.f32 %v773_v21, %v335_v26  ;;  %v344_v11 = vld [vmem:[%s760_s29 + $0x90] sm:$0xff] }
  0x23   : > { %v374_v43 = vmul.f32 %v773_v21, %v336_v27  ;;  %v375_v44 = vmul.f32 %v773_v21, %v337_v32  ;;  %v376_v45 = vmul.f32 %v773_v21, %v338_v33  ;;  %v377_v46 = vmul.f32 %v773_v21, %v339_v34  ;;  %v348_v28 = vld [vmem:[%s760_s29 + $0xb0] sm:$0xff] }
  0x24   : > { %v402_v47 = vadd.f32 %v791_v39, %v364_v29  ;;  %v403_v48 = vadd.f32 %v791_v39, %v365_v30  ;;  %v404_v49 = vadd.f32 %v791_v39, %v366_v31  ;;  %v405_v50 = vadd.f32 %v791_v39, %v367_v35  ;;  %v349_v29 = vld [vmem:[%s760_s29 + $0xb8] sm:$0xff] }
  0x25   : > { %v406_v51 = vadd.f32 %v791_v39, %v368_v36  ;;  %v407_v52 = vadd.f32 %v791_v39, %v369_v37  ;;  %v408_v53 = vadd.f32 %v791_v39, %v370_v38  ;;  %v409_v54 = vadd.f32 %v791_v39, %v371_v40  ;;  %v350_v38 = vld [vmem:[%s760_s29 + $0xc0] sm:$0xff] }
  0x26   : > { %v434_v55 = vmax.f32 %v402_v47, 0.0  ;;  %v435_v56 = vmax.f32 %v403_v48, 0.0  ;;  %v436_v57 = vmax.f32 %v404_v49, 0.0  ;;  %v437_v58 = vmax.f32 %v405_v50, 0.0 }
  0x27   : > { %v438_v61 = vmax.f32 %v406_v51, 0.0  ;;  %v439_v62 = vmax.f32 %v407_v52, 0.0  ;;  %v440_v63 = vmax.f32 %v408_v53, 0.0  ;;  %v441_v0 = vmax.f32 %v409_v54, 0.0  ;;  %v354_v51 = vld [vmem:[%s760_s29 + $0xe0] sm:$0xff]  ;;  %v355_v52 = vld [vmem:[%s760_s29 + $0xe8] sm:$0xff] }
  0x28   : > { %467 = vst.msk [vmem:[%s809_s11] sm:$0xff] %vm466_vm0, %v434_v55  ;;  %468 = vst.msk [vmem:[%s809_s11 + $0x8] sm:$0xff] %vm466_vm0, %v435_v56  ;;  %v410_v1 = vadd.f32 %v791_v39, %v372_v41  ;;  %v411_v2 = vadd.f32 %v791_v39, %v373_v42  ;;  %v412_v3 = vadd.f32 %v791_v39, %v374_v43 }
  0x29   : > { %469 = vst.msk [vmem:[%s809_s11 + $0x10] sm:$0xff] %vm466_vm0, %v436_v57  ;;  %470 = vst.msk [vmem:[%s809_s11 + $0x18] sm:$0xff] %vm466_vm0, %v437_v58  ;;  %v413_v4 = vadd.f32 %v791_v39, %v375_v44  ;;  %v414_v6 = vadd.f32 %v791_v39, %v376_v45  ;;  %v415_v7 = vadd.f32 %v791_v39, %v377_v46  ;;  %v351_v44 = vld [vmem:[%s760_s29 + $0xc8] sm:$0xff]  ;;  %v352_v45 = vld [vmem:[%s760_s29 + $0xd0] sm:$0xff] }
  0x2a   : > { %471 = vst.msk [vmem:[%s809_s11 + $0x20] sm:$0xff] %vm466_vm0, %v438_v61  ;;  %472 = vst.msk [vmem:[%s809_s11 + $0x28] sm:$0xff] %vm466_vm0, %v439_v62  ;;  %v378_v8 = vmul.f32 %v773_v21, %v340_v59  ;;  %v379_v9 = vmul.f32 %v773_v21, %v341_v60  ;;  %v442_v13 = vmax.f32 %v410_v1, 0.0  ;;  %v443_v14 = vmax.f32 %v411_v2, 0.0  ;;  %v353_v46 = vld [vmem:[%s760_s29 + $0xd8] sm:$0xff]  ;;  %v356_v61 = vld [vmem:[%s760_s29 + $0xf0] sm:$0xff] }
  0x2b   : > { %473 = vst.msk [vmem:[%s809_s11 + $0x30] sm:$0xff] %vm466_vm0, %v440_v63  ;;  %474 = vst.msk [vmem:[%s809_s11 + $0x38] sm:$0xff] %vm466_vm0, %v441_v0  ;;  %v444_v15 = vmax.f32 %v412_v3, 0.0  ;;  %v445_v16 = vmax.f32 %v413_v4, 0.0  ;;  %v446_v19 = vmax.f32 %v414_v6, 0.0  ;;  %v447_v20 = vmax.f32 %v415_v7, 0.0 }
  0x2c   : > { %v416_v22 = vadd.f32 %v791_v39, %v378_v8  ;;  %v417_v23 = vadd.f32 %v791_v39, %v379_v9  ;;  %475 = vst.msk [vmem:[%s809_s11 + $0x40] sm:$0xff] %vm466_vm0, %v442_v13  ;;  %476 = vst.msk [vmem:[%s809_s11 + $0x48] sm:$0xff] %vm466_vm0, %v443_v14  ;;  %v380_v24 = vmul.f32 %v773_v21, %v342_v5  ;;  %v357_v62 = vld [vmem:[%s760_s29 + $0xf8] sm:$0xff] }
  0x2d   : > { %477 = vst.msk [vmem:[%s809_s11 + $0x50] sm:$0xff] %vm466_vm0, %v444_v15  ;;  %478 = vst.msk [vmem:[%s809_s11 + $0x58] sm:$0xff] %vm466_vm0, %v445_v16  ;;  %v381_v25 = vmul.f32 %v773_v21, %v343_v10  ;;  %v382_v26 = vmul.f32 %v773_v21, %v344_v11  ;;  %v383_v27 = vmul.f32 %v773_v21, %v345_v12 }
  0x2e   : > { %479 = vst.msk [vmem:[%s809_s11 + $0x60] sm:$0xff] %vm466_vm0, %v446_v19  ;;  %480 = vst.msk [vmem:[%s809_s11 + $0x68] sm:$0xff] %vm466_vm0, %v447_v20  ;;  %v448_v30 = vmax.f32 %v416_v22, 0.0  ;;  %v449_v31 = vmax.f32 %v417_v23, 0.0  ;;  %v384_v32 = vmul.f32 %v773_v21, %v346_v17  ;;  %v385_v33 = vmul.f32 %v773_v21, %v347_v18 }
  0x2f   : > { %v418_v34 = vadd.f32 %v791_v39, %v380_v24  ;;  %v419_v35 = vadd.f32 %v791_v39, %v381_v25  ;;  %v420_v36 = vadd.f32 %v791_v39, %v382_v26  ;;  %v421_v37 = vadd.f32 %v791_v39, %v383_v27 }
  0x30   : > { %481 = vst.msk [vmem:[%s809_s11 + $0x70] sm:$0xff] %vm466_vm0, %v448_v30  ;;  %482 = vst.msk [vmem:[%s809_s11 + $0x78] sm:$0xff] %vm466_vm0, %v449_v31  ;;  %v422_v40 = vadd.f32 %v791_v39, %v384_v32  ;;  %v423_v41 = vadd.f32 %v791_v39, %v385_v33  ;;  %v386_v42 = vmul.f32 %v773_v21, %v348_v28 }
  0x31   : > { %v387_v43 = vmul.f32 %v773_v21, %v349_v29  ;;  %v450_v47 = vmax.f32 %v418_v34, 0.0  ;;  %v451_v48 = vmax.f32 %v419_v35, 0.0  ;;  %v452_v49 = vmax.f32 %v420_v36, 0.0 }
  0x32   : > { %v453_v50 = vmax.f32 %v421_v37, 0.0  ;;  %v454_v53 = vmax.f32 %v422_v40, 0.0  ;;  %v455_v54 = vmax.f32 %v423_v41, 0.0  ;;  %v424_v55 = vadd.f32 %v791_v39, %v386_v42 }
  0x33   : > { %v425_v56 = vadd.f32 %v791_v39, %v387_v43  ;;  %483 = vst.msk [vmem:[%s809_s11 + $0x80] sm:$0xff] %vm466_vm0, %v450_v47  ;;  %484 = vst.msk [vmem:[%s809_s11 + $0x88] sm:$0xff] %vm466_vm0, %v451_v48  ;;  %v388_v57 = vmul.f32 %v773_v21, %v350_v38  ;;  %v389_v58 = vmul.f32 %v773_v21, %v351_v44 }
  0x34   : > { %485 = vst.msk [vmem:[%s809_s11 + $0x90] sm:$0xff] %vm466_vm0, %v452_v49  ;;  %486 = vst.msk [vmem:[%s809_s11 + $0x98] sm:$0xff] %vm466_vm0, %v453_v50  ;;  %v390_v59 = vmul.f32 %v773_v21, %v352_v45  ;;  %v391_v60 = vmul.f32 %v773_v21, %v353_v46  ;;  %v456_v63 = vmax.f32 %v424_v55, 0.0  ;;  %v392_v1 = vmul.f32 %v773_v21, %v354_v51 }
  0x35   : > { %487 = vst.msk [vmem:[%s809_s11 + $0xa0] sm:$0xff] %vm466_vm0, %v454_v53  ;;  %488 = vst.msk [vmem:[%s809_s11 + $0xa8] sm:$0xff] %vm466_vm0, %v455_v54  ;;  %v457_v0 = vmax.f32 %v425_v56, 0.0  ;;  %v393_v2 = vmul.f32 %v773_v21, %v355_v52  ;;  %v426_v3 = vadd.f32 %v791_v39, %v388_v57  ;;  %v427_v4 = vadd.f32 %v791_v39, %v389_v58 }
  0x36   : > { %v428_v5 = vadd.f32 %v791_v39, %v390_v59  ;;  %v429_v6 = vadd.f32 %v791_v39, %v391_v60  ;;  %489 = vst.msk [vmem:[%s809_s11 + $0xb0] sm:$0xff] %vm466_vm0, %v456_v63  ;;  %v430_v7 = vadd.f32 %v791_v39, %v392_v1  ;;  %v394_v9 = vmul.f32 %v773_v21, %v356_v61 }
  0x37   : > { %490 = vst.msk [vmem:[%s809_s11 + $0xb8] sm:$0xff] %vm466_vm0, %v457_v0  ;;  %v431_v8 = vadd.f32 %v791_v39, %v393_v2  ;;  %v395_v10 = vmul.f32 %v773_v21, %v357_v62  ;;  %v458_v11 = vmax.f32 %v426_v3, 0.0  ;;  %v459_v12 = vmax.f32 %v427_v4, 0.0 }
  0x38   : > { %v460_v13 = vmax.f32 %v428_v5, 0.0  ;;  %v461_v14 = vmax.f32 %v429_v6, 0.0  ;;  %v462_v15 = vmax.f32 %v430_v7, 0.0  ;;  %v432_v17 = vadd.f32 %v791_v39, %v394_v9 }
  0x39   : > { %v463_v16 = vmax.f32 %v431_v8, 0.0  ;;  %v433_v18 = vadd.f32 %v791_v39, %v395_v10  ;;  %491 = vst.msk [vmem:[%s809_s11 + $0xc0] sm:$0xff] %vm466_vm0, %v458_v11  ;;  %492 = vst.msk [vmem:[%s809_s11 + $0xc8] sm:$0xff] %vm466_vm0, %v459_v12 }
  0x3a   : > { %493 = vst.msk [vmem:[%s809_s11 + $0xd0] sm:$0xff] %vm466_vm0, %v460_v13  ;;  %494 = vst.msk [vmem:[%s809_s11 + $0xd8] sm:$0xff] %vm466_vm0, %v461_v14  ;;  %v464_v21 = vmax.f32 %v432_v17, 0.0 }
  0x3b   : > { %495 = vst.msk [vmem:[%s809_s11 + $0xe0] sm:$0xff] %vm466_vm0, %v462_v15  ;;  %496 = vst.msk [vmem:[%s809_s11 + $0xe8] sm:$0xff] %vm466_vm0, %v463_v16  ;;  %v465_v19 = vmax.f32 %v433_v18, 0.0 }
  0x3c   : > { %497 = vst.msk [vmem:[%s809_s11 + $0xf0] sm:$0xff] %vm466_vm0, %v464_v21 }
  0x3d   : > { %498 = vst.msk [vmem:[%s809_s11 + $0xf8] sm:$0xff] %vm466_vm0, %v465_v19 }
  0x3e PF: > { %s15_s20 = sadd.s32 1, %s696_s20   ;;  %s954_s18 = smov %s692_s19 }
  0x3f   : > { %p12_p5 = scmp.ge.s32.totalorder %s15_s20, 4   ;;  %s955_s19 = smov %s957_s21 }
  0x41   :  { %14 = sbr.rel (!%p12_p5) target bundleno = 2 (0x2), region = 82 }

// kernel: double_conv_forward.4
= control target key start
LH: loop header
LB: loop body
LE: loop exit
PB: predicated region body
PF: predicated region fallthrough
CT: control target
= control target key end

     0   :  { %s4704_s18 = smov 0   ;;  %s4706_s19 = smov 0   ;;  %s5889_s0 = inlined_call_operand.vmem [shape: bf16[2,18,18,4], index: 0, kind: input, shape index: {}]   ;;  %s5890_s1 = inlined_call_operand.vmem [shape: bf16[9,4,16], index: 1, kind: input, shape index: {}]   ;;  %s5891_s2 = inlined_call_operand.vmem [shape: f32[1,16], index: 2, kind: input, shape index: {}]   ;;  %s5892_s3 = inlined_call_operand.vmem [shape: bf16[2,256,16], index: 3, kind: output, shape index: {0}]   ;;  %s5893_s4 = inlined_call_operand.vmem [shape: f32[2,1,16], index: 4, kind: output, shape index: {1}]   ;;  %s5894_s5 = inlined_call_operand.vmem [shape: f32[2,1,16], index: 5, kind: output, shape index: {2}]  }
   0x1   :  { %s4708_s20 = smov 0  }
   0x2 LB: > { %s28_s21 = sadd.s32 1, %s4668_s19  ;;  %p3580_p0 = scmp.ge.s32.totalorder %s4672_s20, 1  ;;  %s4672_s20 = sphi %s4708_s20, %s16_s20   ;;  %s4668_s19 = sphi %s4706_s19, %s5973_s19   ;;  %s4664_s18 = sphi %s4704_s18, %s5972_s18  }
   0x3   : > { %p30_p1 = scmp.ge.s32.totalorder %s28_s21, 2  ;;  %p227_p2 = scmp.lt.s32.totalorder %s4672_s20, 3 }
   0x5   : > { %s5975_s21 = smov (%p30_p1, %s28_s21), 0  ;;  %p228_p3 = pnand %p3580_p0, %p227_p2 }
   0x7   : > { %231 = sbr.rel (%p228_p3) target bundleno = 575 (0x23f), region = 32 }
   0xe   : > { %v3584_v0 = vld [vmem:[%s5890_s1 + $0x2] sm:$0x3]  ;;  %vm851_vm0 = vcmask 1041408   ;;  %v3716_v1 = vld [vmem:[%s5890_s1 + $0x8] sm:$0x3]  ;;  %p277_p4 = scmp.lt.s32.totalorder %s4664_s18, 1 }
   0xf   : > { %4593 = vmatprep.subr.msk.bf16.mxu1 %vm851_vm0, %v3584_v0  ;;  %4597 = vmatprep.subr.msk.bf16.mxu0 %vm851_vm0, %v3716_v1  ;;  %v853_v2 = vsel %vm851_vm0, %v3584_v0, 0  ;;  %v4732_v3 = vsel %vm851_vm0, %v3716_v1, 0  ;;  %v364_v4 = vld [vmem:[%s5890_s1] sm:$0x3]  ;;  %v3735_v5 = vld [vmem:[%s5890_s1 + $0xa] sm:$0x3] }
  0x10   : > { %5926 = vst [vmem:[#allocation2_spill] sm:$0xff] %v4732_v3  ;;  %4030 = vmatpush3.bf16.msra.mxu1 %v853_v2  ;;  %4166 = vmatpush3.bf16.msra.mxu0 %v4732_v3  ;;  %s5977_s18 = smov (!%p277_p4, %s4664_s18), 1  ;;  %vm365_vm1 = vsmask.f32 3328  ;;  %vm366_vm2 = vsmask.f32 7440 }
  0x11   : > { %4594 = vmatprep.subr.msk.bf16.mxu1 %vm851_vm0, %v364_v4  ;;  %4599 = vmatprep.subr.msk.bf16.mxu0 %vm851_vm0, %v3735_v5  ;;  %s4603_s30 = smul.u32 216, %s5977_s18  ;;  %v4752_v6 = vsel %vm851_vm0, %v364_v4, 0  ;;  %v4755_v7 = vsel %vm851_vm0, %v3735_v5, 0  ;;  %v4760_v8 = vld [vmem:[%s5890_s1 + $0xc] sm:$0x3]  ;;  %vm802_vm3 = vcmask 31744   ;;  %vm4796_vm4 = vmor %vm365_vm1, %vm366_vm2  ;;  %s308_s11 = scalar_lea.vmem %s5894_s5, %s5977_s18 }
  0x12   : > { %v4784_v20 = vsel %vm851_vm0, %v4760_v8, 0  ;;  %vm1324_vm5 = vcmask 1042432   ;;  %vm1325_vm6 = vcmask 1046532   ;;  %s3843_s27 = sshll.u32 %s5977_s18, 7  ;;  %vm3192_vm8 = vcmask 125952  }
  0x13   : > { %s4749_s8 = scalar_lea.vmem %s5889_s0, %s4603_s30  ;;  %vm4977_vm7 = vmor %vm1324_vm5, %vm1325_vm6  ;;  %s5703_s30 = scalar_lea.vmem %s5892_s3, %s3843_s27  ;;  %vm3225_vm9 = vcmask 130048   ;;  %vm3295_vm10 = vcmask 122880  }
  0x14   : > { %v4763_v9 = vld [vmem:[%s4749_s8] sm:$0xf]  ;;  %v4766_v10 = vld [vmem:[%s4749_s8 + $0x4] sm:$0xf]  ;;  %v312_v11 = vld [vmem:[%s4749_s8 + $0x8] sm:$0x1] }
  0x15   : > { %v369_v12 = vshrl.u32 %v4763_v9, 16  ;;  %v372_v13 = vshll.u32 %v4763_v9, 16  ;;  %v378_v14 = vshll.u32 %v4766_v10, 16  ;;  %v382_v15 = vshrl.u32 %v4766_v10, 16  ;;  %v4774_v16 = vld [vmem:[%s4749_s8 + $0xc] sm:$0xf] }
  0x16   : > { %v388_v17 = vshll.u32 %v312_v11, 16  ;;  %v4777_v18 = vld [vmem:[%s4749_s8 + $0x10] sm:$0xf]  ;;  %v4780_v19 = vld [vmem:[%s4749_s8 + $0x14] sm:$0x1]  ;;  %v393_v26 = vshrl.u32 %v4774_v16, 16 }
  0x17   : > { %v371_v21 = vrot.slane %v369_v12, 4  ;;  %v374_v22 = vrot.slane %v372_v13, 5  ;;  %v380_v23 = vrot.slane %v378_v14, 5  ;;  %v384_v24 = vrot.slane %v382_v15, 4  ;;  %v4792_v33 = vld [vmem:[%s4749_s8 + $0x18] sm:$0xf] }
  0x18   : > { %v390_v25 = vrot.slane %v388_v17, 5  ;;  %v396_v27 = vshll.u32 %v4774_v16, 16  ;;  %v402_v28 = vshll.u32 %v4777_v18, 16  ;;  %v406_v31 = vshrl.u32 %v4777_v18, 16  ;;  %v4805_v39 = vld [vmem:[%s4749_s8 + $0x1c] sm:$0xf] }
  0x19   : > { %v375_v29 = vor.u32 %v374_v22, %v371_v21  ;;  %v385_v30 = vor.u32 %v384_v24, %v380_v23  ;;  %v412_v32 = vshll.u32 %v4780_v19, 16  ;;  %v395_v35 = vrot.slane %v393_v26, 4  ;;  %v4809_v46 = vld [vmem:[%s4749_s8 + $0x20] sm:$0x1]  ;;  %v4819_v57 = vld [vmem:[%s4749_s8 + $0x24] sm:$0xf] }
  0x1a   : > { %v398_v36 = vrot.slane %v396_v27, 5  ;;  %v404_v37 = vrot.slane %v402_v28, 5  ;;  %v4802_v38 = vcombine.low %v4774_v16, %v4777_v18  ;;  %v408_v42 = vrot.slane %v406_v31, 4  ;;  %v4824_v62 = vld [vmem:[%s4749_s8 + $0x28] sm:$0xf] }
  0x1b   : > { %v376_v40 = vrot.slane %v375_v29, 4  ;;  %v386_v41 = vrot.slane %v385_v30, 4  ;;  %v414_v43 = vrot.slane %v412_v32, 5  ;;  %v1339_v45 = vrot.slane %v4780_v19, 5  ;;  %v4832_v4 = vld [vmem:[%s4749_s8 + $0x2c] sm:$0x1] }
  0x1c   : > { %v399_v44 = vor.u32 %v398_v36, %v395_v35  ;;  %v417_v47 = vshrl.u32 %v4792_v33, 16  ;;  %v420_v48 = vshll.u32 %v4792_v33, 16  ;;  %v409_v51 = vor.u32 %v408_v42, %v404_v37  ;;  %v4838_v14 = vld [vmem:[%s4749_s8 + $0x30] sm:$0xf]  ;;  %v4850_v28 = vld [vmem:[%s4749_s8 + $0x34] sm:$0xf] }
  0x1d   : > { %v381_v49 = vsel %vm4796_vm4, %v376_v40, %v380_v23  ;;  %v391_v50 = vsel %vm4796_vm4, %v386_v41, %v390_v25  ;;  %v426_v52 = vshll.u32 %v4805_v39, 16  ;;  %v430_v60 = vshrl.u32 %v4805_v39, 16  ;;  %v4845_v23 = vld [vmem:[%s5890_s1 + $0x4] sm:$0x3]  ;;  %v4857_v32 = vld [vmem:[%s4749_s8 + $0x38] sm:$0x1] }
  0x1e   : > { %v3585_v53 = vcombine.low %v381_v49, %v391_v50  ;;  %v400_v54 = vrot.slane %v399_v44, 4  ;;  %v419_v55 = vrot.slane %v417_v47, 4  ;;  %v422_v56 = vrot.slane %v420_v48, 5  ;;  %v4865_v48 = vld [vmem:[%s4749_s8 + $0x3c] sm:$0xf] }
  0x1f   : > { %v410_v58 = vrot.slane %v409_v51, 4  ;;  %v428_v59 = vrot.slane %v426_v52, 5  ;;  %v436_v61 = vshll.u32 %v4809_v46, 16  ;;  %v1343_v1 = vrot.slane %v4805_v39, 5  ;;  %v4873_v52 = vld [vmem:[%s4749_s8 + $0x40] sm:$0xf] }
  0x20   : > { %4031 = vmatprep.mubr.msk.bf16.mxu1 %vm802_vm3, %v3585_v53  ;;  %v405_v63 = vsel %vm4796_vm4, %v400_v54, %v404_v37  ;;  %v423_v0 = vor.u32 %v422_v56, %v419_v55  ;;  %v1346_v2 = vrot.slane %v4809_v46, 5  ;;  %v432_v11 = vrot.slane %v430_v60, 4 }
  0x21   : > { %v415_v5 = vsel %vm4796_vm4, %v410_v58, %v414_v43  ;;  %v438_v12 = vrot.slane %v436_v61, 5  ;;  %v441_v13 = vshrl.u32 %v4819_v57, 16  ;;  %v444_v21 = vshll.u32 %v4819_v57, 16 }
  0x22   : > { %v3586_v15 = vcombine.low %v405_v63, %v415_v5  ;;  %v424_v17 = vrot.slane %v423_v0, 4  ;;  %v450_v22 = vshll.u32 %v4824_v62, 16  ;;  %v433_v24 = vor.u32 %v432_v11, %v428_v59  ;;  %v4885_v5 = vld [vmem:[%s4749_s8 + $0x44] sm:$0x1] }
  0x23   : > { %v443_v25 = vrot.slane %v441_v13, 4  ;;  %v454_v26 = vshrl.u32 %v4824_v62, 16  ;;  %v460_v27 = vshll.u32 %v4832_v4, 16  ;;  %v446_v30 = vrot.slane %v444_v21, 5  ;;  %v4890_v13 = vld [vmem:[%s4749_s8 + $0x48] sm:$0xf] }
  0x24   : > { %4167 = vmatprep.mubr.msk.bf16.mxu0 %vm802_vm3, %v3586_v15  ;;  %4032 = vmatmul.mubr.msk.bf16.vlgmr.msra.gmra.mrb[0].mxu1 %vm802_vm3, %v3586_v15  ;;  %v429_v29 = vsel %vm4796_vm4, %v424_v17, %v428_v59  ;;  %v452_v31 = vrot.slane %v450_v22, 5  ;;  %v465_v35 = vshrl.u32 %v4838_v14, 16  ;;  %v434_v36 = vrot.slane %v433_v24, 4  ;;  %v4897_v24 = vld [vmem:[%s4749_s8 + $0x4c] sm:$0xf] }
  0x25   : > { %4064 = vmatpush3.bf16.msra.mxu1 %v4752_v6  ;;  %v456_v37 = vrot.slane %v454_v26, 4  ;;  %v462_v40 = vrot.slane %v460_v27, 5  ;;  %v468_v41 = vshll.u32 %v4838_v14, 16  ;;  %v447_v42 = vor.u32 %v446_v30, %v443_v25 }
  0x26   : > { %v467_v43 = vrot.slane %v465_v35, 4  ;;  %v474_v44 = vshll.u32 %v4850_v28, 16  ;;  %v478_v47 = vshrl.u32 %v4850_v28, 16  ;;  %4595 = vmatprep.subr.msk.bf16.mxu1 %vm851_vm0, %v4845_v23  ;;  %v439_v49 = vsel %vm4796_vm4, %v434_v36, %v438_v12 }
  0x27   : > { %v457_v6 = vor.u32 %v456_v37, %v452_v31  ;;  %v470_v50 = vrot.slane %v468_v41, 5  ;;  %v484_v51 = vshll.u32 %v4857_v32, 16  ;;  %v4875_v53 = vcombine.low %v429_v29, %v439_v49 }
  0x28   : > { %v448_v54 = vrot.slane %v447_v42, 4  ;;  %v476_v55 = vrot.slane %v474_v44, 5  ;;  %v480_v56 = vrot.slane %v478_v47, 4  ;;  %v489_v61 = vshrl.u32 %v4865_v48, 16  ;;  %v4919_v42 = vld [vmem:[%s4749_s8 + $0x54] sm:$0xf] }
  0x29   : > { %5929 = vst [vmem:[#allocation3_spill] sm:$0xff] %v4875_v53  ;;  %v458_v58 = vrot.slane %v457_v6, 4  ;;  %v471_v59 = vor.u32 %v470_v50, %v467_v43  ;;  %v486_v60 = vrot.slane %v484_v51, 5  ;;  %4168 = vmatmul.mubr.msk.bf16.vlgmr.msra.gmra.mrb[0].mxu0 %vm802_vm3, %v4875_v53  ;;  %4035 = vmatprep.mubr.msk.bf16.mxu1 %vm802_vm3, %v4875_v53  ;;  %v492_v11 = vshll.u32 %v4865_v48, 16  ;;  %5931 = vst [vmem:[#allocation5_spill] sm:$0xff] %v4919_v42 }
  0x2a   : > { %v453_v63 = vsel %vm4796_vm4, %v448_v54, %v452_v31  ;;  %v481_v0 = vor.u32 %v480_v56, %v476_v55  ;;  %v498_v12 = vshll.u32 %v4873_v52, 16  ;;  %4200 = vmatpush3.bf16.msra.mxu0 %v4755_v7  ;;  %v491_v21 = vrot.slane %v489_v61, 4  ;;  %v4924_v6 = vld [vmem:[%s4749_s8 + $0x58] sm:$0xf] }
  0x2b   : > { %v463_v15 = vsel %vm4796_vm4, %v458_v58, %v462_v40  ;;  %v472_v17 = vrot.slane %v471_v59, 4  ;;  %v502_v22 = vshrl.u32 %v4873_v52, 16  ;;  %v494_v27 = vrot.slane %v492_v11, 5  ;;  %4600 = vmatprep.subr.msk.bf16.mxu0 %vm851_vm0, %v4760_v8  ;;  %v4914_v8 = vld [vmem:[%s4749_s8 + $0x50] sm:$0x1] }
  0x2c   : > { %v4899_v25 = vcombine.low %v453_v63, %v463_v15  ;;  %v482_v26 = vrot.slane %v481_v0, 4  ;;  %v500_v29 = vrot.slane %v498_v12, 5  ;;  %v508_v31 = vshll.u32 %v4885_v5, 16  ;;  %v4937_v11 = vld [vmem:[%s4749_s8 + $0x5c] sm:$0x1] }
  0x2d   : > { %v477_v7 = vsel %vm4796_vm4, %v472_v17, %v476_v55  ;;  %v504_v30 = vrot.slane %v502_v22, 4  ;;  %v513_v35 = vshrl.u32 %v4890_v13, 16  ;;  %v495_v37 = vor.u32 %v494_v27, %v491_v21  ;;  %v4941_v15 = vld [vmem:[%s4749_s8 + $0x60] sm:$0xf]  ;;  %v4946_v27 = vld [vmem:[%s4749_s8 + $0x64] sm:$0xf] }
  0x2e   : > { %5930 = vst [vmem:[#allocation4_spill] sm:$0xff] %v4899_v25  ;;  %4171 = vmatprep.mubr.msk.bf16.mxu0 %vm802_vm3, %v4899_v25  ;;  %4036 = vmatmul.mubr.msk.bf16.gmra.mrb[4].mxu1 %vm802_vm3, %v4899_v25  ;;  %v487_v36 = vsel %vm4796_vm4, %v482_v26, %v486_v60  ;;  %v516_v40 = vshll.u32 %v4890_v13, 16  ;;  %v522_v41 = vshll.u32 %v4897_v24, 16  ;;  %v510_v47 = vrot.slane %v508_v31, 5  ;;  %v5158_v25 = vld [vmem:[%s4749_s8 + $0xa8] sm:$0xf] }
  0x2f   : > { %v4921_v43 = vcombine.low %v477_v7, %v487_v36  ;;  %v505_v44 = vor.u32 %v504_v30, %v500_v29  ;;  %v515_v49 = vrot.slane %v513_v35, 4  ;;  %v496_v50 = vrot.slane %v495_v37, 4 }
  0x30   : > { %v518_v51 = vrot.slane %v516_v40, 5  ;;  %v524_v54 = vrot.slane %v522_v41, 5  ;;  %v526_v55 = vshrl.u32 %v4897_v24, 16  ;;  %v532_v58 = vshll.u32 %v4914_v8, 16 }
  0x31   : > { %5932 = vst [vmem:[#allocation6_spill] sm:$0xff] %v4921_v43  ;;  %4039 = vmatprep.mubr.msk.bf16.mxu1 %vm802_vm3, %v4921_v43  ;;  %v506_v56 = vrot.slane %v505_v44, 4  ;;  %v537_v59 = vshrl.u32 %v4919_v42, 16  ;;  %v540_v60 = vshll.u32 %v4919_v42, 16  ;;  %4172 = vmatmul.mubr.msk.bf16.gmra.mrb[4].mxu0 %vm802_vm3, %v4921_v43  ;;  %v501_v61 = vsel %vm4796_vm4, %v496_v50, %v500_v29 }
  0x32   : > { %v519_v63 = vor.u32 %v518_v51, %v515_v49  ;;  %v528_v0 = vrot.slane %v526_v55, 4  ;;  %v546_v12 = vshll.u32 %v4924_v6, 16  ;;  %v534_v21 = vrot.slane %v532_v58, 5 }
  0x33   : > { %v511_v17 = vsel %vm4796_vm4, %v506_v56, %v510_v47  ;;  %v539_v22 = vrot.slane %v537_v59, 4  ;;  %v542_v26 = vrot.slane %v540_v60, 5  ;;  %v550_v36 = vshrl.u32 %v4924_v6, 16  ;;  %v4960_v47 = vld [vmem:[%s4749_s8 + $0x68] sm:$0x1] }
  0x34   : > { %v4948_v7 = vcombine.low %v501_v61, %v511_v17  ;;  %v520_v29 = vrot.slane %v519_v63, 4  ;;  %v529_v30 = vor.u32 %v528_v0, %v524_v54  ;;  %v548_v31 = vrot.slane %v546_v12, 5 }
  0x35   : > { %v543_v35 = vor.u32 %v542_v26, %v539_v22  ;;  %v556_v37 = vshll.u32 %v4937_v11, 16  ;;  %v561_v40 = vshrl.u32 %v4941_v15, 16  ;;  %v564_v49 = vshll.u32 %v4941_v15, 16 }
  0x36   : > { %5933 = vst [vmem:[#allocation7_spill] sm:$0xff] %v4948_v7  ;;  %4175 = vmatprep.mubr.msk.bf16.mxu0 %vm802_vm3, %v4948_v7  ;;  %4040 = vmatmul.mubr.msk.bf16.gmra.mrb[8].mxu1 %vm802_vm3, %v4948_v7  ;;  %v525_v41 = vsel %vm4796_vm4, %v520_v29, %v524_v54  ;;  %v530_v44 = vrot.slane %v529_v30, 4  ;;  %v570_v50 = vshll.u32 %v4946_v27, 16  ;;  %v552_v55 = vrot.slane %v550_v36, 4  ;;  %v4968_v54 = vld [vmem:[%s4749_s8 + $0x6c] sm:$0xf] }
  0x37   : > { %v544_v51 = vrot.slane %v543_v35, 4  ;;  %v558_v56 = vrot.slane %v556_v37, 5  ;;  %v563_v58 = vrot.slane %v561_v40, 4  ;;  %v566_v60 = vrot.slane %v564_v49, 5  ;;  %v4984_v36 = vld [vmem:[%s4749_s8 + $0x70] sm:$0xf] }
  0x38   : > { %v535_v59 = vsel %vm4796_vm4, %v530_v44, %v534_v21  ;;  %v572_v61 = vrot.slane %v570_v50, 5  ;;  %v574_v63 = vshrl.u32 %v4946_v27, 16  ;;  %v553_v17 = vor.u32 %v552_v55, %v548_v31  ;;  %v5135_v7 = vld [vmem:[%s4749_s8 + $0xa0] sm:$0xf] }
  0x39   : > { %v4970_v0 = vcombine.low %v525_v41, %v535_v59  ;;  %v549_v12 = vsel %vm4796_vm4, %v544_v51, %v548_v31  ;;  %v580_v22 = vshll.u32 %v4960_v47, 16  ;;  %v567_v21 = vor.u32 %v566_v60, %v563_v58  ;;  %v4997_v51 = vld [vmem:[%s4749_s8 + $0x74] sm:$0x1] }
  0x3a   : > { %v576_v29 = vrot.slane %v574_v63, 4  ;;  %v3650_v30 = vrot.slane %v4774_v16, 9  ;;  %v1336_v35 = vrot.slane %v4777_v18, 5  ;;  %v554_v31 = vrot.slane %v553_v17, 4 }
  0x3b   : > { %5934 = vst [vmem:[#allocation8_spill] sm:$0xff] %v4970_v0  ;;  %4176 = vmatmul.mubr.msk.bf16.gmra.mrb[8].mxu0 %vm802_vm3, %v4970_v0  ;;  %4043 = vmatprep.mubr.msk.bf16.mxu1 %vm802_vm3, %v4970_v0  ;;  %v582_v37 = vrot.slane %v580_v22, 5  ;;  %v585_v40 = vshrl.u32 %v4968_v54, 16  ;;  %v588_v41 = vshll.u32 %v4968_v54, 16  ;;  %v568_v44 = vrot.slane %v567_v21, 4 }
  0x3c   : > { %v577_v49 = vor.u32 %v576_v29, %v572_v61  ;;  %v1337_v16 = vsel %vm4977_vm7, %v3650_v30, %v1336_v35  ;;  %v1338_v18 = vrot.slane %v1336_v35, 4  ;;  %v559_v50 = vsel %vm4796_vm4, %v554_v31, %v558_v56  ;;  %v5009_v56 = vld [vmem:[%s4749_s8 + $0x78] sm:$0xf]  ;;  %v5025_v31 = vld [vmem:[%s4749_s8 + $0x7c] sm:$0xf] }
  0x3d   : > { %v587_v55 = vrot.slane %v585_v40, 4  ;;  %v590_v58 = vrot.slane %v588_v41, 5  ;;  %v594_v59 = vshll.u32 %v4984_v36, 16  ;;  %v5000_v60 = vcombine.low %v549_v12, %v559_v50 }
  0x3e   : > { %v573_v63 = vsel %vm4796_vm4, %v568_v44, %v572_v61  ;;  %v578_v17 = vrot.slane %v577_v49, 4  ;;  %v1340_v22 = vsel %vm4977_vm7, %v1338_v18, %v1339_v45  ;;  %v598_v35 = vshrl.u32 %v4984_v36, 16  ;;  %v5030_v49 = vld [vmem:[%s4749_s8 + $0x80] sm:$0x1] }
  0x3f   : > { %5937 = vst [vmem:[#allocation9_spill] sm:$0xff] %v5000_v60  ;;  %v5011_v21 = vcombine.low %v1337_v16, %v1340_v22  ;;  %v591_v29 = vor.u32 %v590_v58, %v587_v55  ;;  %v596_v30 = vrot.slane %v594_v59, 5  ;;  %4179 = vmatprep.mubr.msk.bf16.mxu0 %vm802_vm3, %v5000_v60  ;;  %4044 = vmatmul.mubr.msk.bf16.gmra.mrb[12].mxu1 %vm802_vm3, %v5000_v60  ;;  %v604_v45 = vshll.u32 %v4997_v51, 16  ;;  %v5128_v60 = vld [vmem:[%s4749_s8 + $0x9c] sm:$0xf] }
  0x40   : > { %v583_v19 = vsel %vm4796_vm4, %v578_v17, %v582_v37  ;;  %v3651_v61 = vrot.slane %v4792_v33, 9  ;;  %v1345_v12 = vrot.slane %v1343_v1, 4  ;;  %v600_v44 = vrot.slane %v598_v35, 4 }
  0x41   : > { %5938 = vst [vmem:[#allocation10_spill] sm:$0xff] %v5011_v21  ;;  %v5027_v40 = vcombine.low %v573_v63, %v583_v19  ;;  %v592_v41 = vrot.slane %v591_v29, 4  ;;  %v609_v16 = vshrl.u32 %v5009_v56, 16  ;;  %v606_v18 = vrot.slane %v604_v45, 5  ;;  %v5056_v29 = vld [vmem:[%s4749_s8 + $0x84] sm:$0xf] }
  0x42   : > { %v1344_v37 = vsel %vm4977_vm7, %v3651_v61, %v1343_v1  ;;  %v1347_v50 = vsel %vm4977_vm7, %v1345_v12, %v1346_v2  ;;  %v612_v55 = vshll.u32 %v5009_v56, 16  ;;  %v601_v59 = vor.u32 %v600_v44, %v596_v30 }
  0x43   : > { %5939 = vst [vmem:[#allocation11_spill] sm:$0xff] %v5027_v40  ;;  %4180 = vmatmul.mubr.msk.bf16.gmra.mrb[12].mxu0 %vm802_vm3, %v5027_v40  ;;  %4047 = vmatprep.mubr.msk.bf16.mxu1 %vm802_vm3, %v5027_v40  ;;  %v597_v58 = vsel %vm4796_vm4, %v592_v41, %v596_v30  ;;  %v5048_v63 = vcombine.low %v1344_v37, %v1347_v50  ;;  %v611_v1 = vrot.slane %v609_v16, 4  ;;  %v618_v2 = vshll.u32 %v5025_v31, 16  ;;  %v5062_v16 = vld [vmem:[%s4749_s8 + $0x88] sm:$0xf] }
  0x44   : > { %4201 = vmatprep.mubr.msk.bf16.mxu0 %vm802_vm3, %v5011_v21  ;;  %v614_v46 = vrot.slane %v612_v55, 5  ;;  %v622_v17 = vshrl.u32 %v5025_v31, 16  ;;  %v628_v22 = vshll.u32 %v5030_v49, 16  ;;  %v602_v35 = vrot.slane %v601_v59, 4 }
  0x45   : > { %5940 = vst [vmem:[#allocation12_spill] sm:$0xff] %v5048_v63  ;;  %v3652_v30 = vrot.slane %v4819_v57, 9  ;;  %v1350_v19 = vrot.slane %v4824_v62, 5  ;;  %v1353_v45 = vrot.slane %v4832_v4, 5  ;;  %v620_v12 = vrot.slane %v618_v2, 5 }
  0x46   : > { %v615_v61 = vor.u32 %v614_v46, %v611_v1  ;;  %v624_v41 = vrot.slane %v622_v17, 4  ;;  %v630_v44 = vrot.slane %v628_v22, 5  ;;  %v607_v37 = vsel %vm4796_vm4, %v602_v35, %v606_v18  ;;  %v5072_v1 = vld [vmem:[%s4749_s8 + $0x8c] sm:$0x1] }
  0x47   : > { %v1351_v50 = vsel %vm4977_vm7, %v3652_v30, %v1350_v19  ;;  %v1352_v55 = vrot.slane %v1350_v19, 4  ;;  %v633_v59 = vshrl.u32 %v5056_v29, 16  ;;  %v5069_v3 = vcombine.low %v597_v58, %v607_v37 }
  0x48   : > { %v616_v40 = vrot.slane %v615_v61, 4  ;;  %v625_v4 = vor.u32 %v624_v41, %v620_v12  ;;  %v636_v46 = vshll.u32 %v5056_v29, 16  ;;  %v642_v18 = vshll.u32 %v5062_v16, 16  ;;  %v5086_v61 = vld [vmem:[%s4749_s8 + $0x90] sm:$0xf] }
  0x49   : > { %5941 = vst [vmem:[#allocation13_spill] sm:$0xff] %v5069_v3  ;;  %v1354_v2 = vsel %vm4977_vm7, %v1352_v55, %v1353_v45  ;;  %v635_v17 = vrot.slane %v633_v59, 4  ;;  %v646_v22 = vshrl.u32 %v5062_v16, 16  ;;  %4048 = vmatmul.mubr.msk.bf16.gmra.mrb[16].mxu1 %vm802_vm3, %v5069_v3  ;;  %v5091_v45 = vld [vmem:[%s5890_s1 + $0xe] sm:$0x3]  ;;  %v1357_v59 = vrot.slane %v4850_v28, 5 }
  0x4a   : > { %v621_v58 = vsel %vm4796_vm4, %v616_v40, %v620_v12  ;;  %v626_v35 = vrot.slane %v625_v4, 4  ;;  %v5083_v30 = vcombine.low %v1351_v50, %v1354_v2  ;;  %v638_v19 = vrot.slane %v636_v46, 5  ;;  %5943 = vst [vmem:[#allocation15_spill] sm:$0xff] %v5091_v45  ;;  %v5105_v46 = vld [vmem:[%s4749_s8 + $0x94] sm:$0xf] }
  0x4b   : > { %4202 = vmatmul.mubr.msk.bf16.vlgmr.msra.gmra.mrb[0].mxu0 %vm802_vm3, %v5048_v63  ;;  %v644_v41 = vrot.slane %v642_v18, 5  ;;  %v648_v37 = vrot.slane %v646_v22, 4  ;;  %v652_v40 = vshll.u32 %v5072_v1, 16  ;;  %v3653_v12 = vrot.slane %v4838_v14, 9  ;;  %v5110_v3 = vld [vmem:[%s4749_s8 + $0x98] sm:$0x1] }
  0x4c   : > { %5942 = vst [vmem:[#allocation14_spill] sm:$0xff] %v5083_v30  ;;  %4234 = vmatpush3.bf16.msra.mxu0 %v4784_v20  ;;  %v631_v50 = vsel %vm4796_vm4, %v626_v35, %v630_v44  ;;  %4205 = vmatprep.mubr.msk.bf16.mxu0 %vm802_vm3, %v5083_v30  ;;  %v639_v55 = vor.u32 %v638_v19, %v635_v17  ;;  %v1360_v4 = vrot.slane %v4857_v32, 5  ;;  %v657_v20 = vshrl.u32 %v5086_v61, 16 }
  0x4d   : > { %v5107_v2 = vcombine.low %v621_v58, %v631_v50  ;;  %v649_v18 = vor.u32 %v648_v37, %v644_v41  ;;  %v654_v22 = vrot.slane %v652_v40, 5  ;;  %4601 = vmatprep.subr.msk.bf16.mxu0 %vm851_vm0, %v5091_v45  ;;  %v1358_v17 = vsel %vm4977_vm7, %v3653_v12, %v1357_v59 }
  0x4e   : > { %v640_v44 = vrot.slane %v639_v55, 4  ;;  %v1359_v35 = vrot.slane %v1357_v59, 4  ;;  %v660_v32 = vshll.u32 %v5086_v61, 16  ;;  %v659_v19 = vrot.slane %v657_v20, 4 }
  0x4f   : > { %5944 = vst [vmem:[#allocation16_spill] sm:$0xff] %v5107_v2  ;;  %4051 = vmatprep.mubr.msk.bf16.mxu1 %vm802_vm3, %v5107_v2  ;;  %v650_v58 = vrot.slane %v649_v18, 4  ;;  %v666_v37 = vshll.u32 %v5105_v46, 16  ;;  %v670_v40 = vshrl.u32 %v5105_v46, 16  ;;  %v676_v59 = vshll.u32 %v5110_v3, 16 }
  0x50   : > { %v645_v50 = vsel %vm4796_vm4, %v640_v44, %v644_v41  ;;  %v1361_v55 = vsel %vm4977_vm7, %v1359_v35, %v1360_v4  ;;  %v662_v12 = vrot.slane %v660_v32, 5  ;;  %v3654_v4 = vrot.slane %v4865_v48, 9 }
  0x51   : > { %v655_v2 = vsel %vm4796_vm4, %v650_v58, %v654_v22  ;;  %v5132_v18 = vcombine.low %v1358_v17, %v1361_v55  ;;  %v668_v20 = vrot.slane %v666_v37, 5  ;;  %v672_v0 = vrot.slane %v670_v40, 4  ;;  %v5148_v58 = vld [vmem:[%s4749_s8 + $0xa4] sm:$0x1] }
  0x52   : > { %v5137_v43 = vcombine.low %v645_v50, %v655_v2  ;;  %v663_v41 = vor.u32 %v662_v12, %v659_v19  ;;  %v678_v44 = vrot.slane %v676_v59, 5  ;;  %v1364_v32 = vrot.slane %v4873_v52, 5 }
  0x53   : > { %5945 = vst [vmem:[#allocation17_spill] sm:$0xff] %v5132_v18  ;;  %4206 = vmatmul.mubr.msk.bf16.gmra.mrb[4].mxu0 %vm802_vm3, %v5132_v18  ;;  %v673_v35 = vor.u32 %v672_v0, %v668_v20  ;;  %v1367_v22 = vrot.slane %v4885_v5, 5  ;;  %v681_v17 = vshrl.u32 %v5128_v60, 16  ;;  %v684_v19 = vshll.u32 %v5128_v60, 16 }
  0x54   : > { %5946 = vst [vmem:[#allocation18_spill] sm:$0xff] %v5137_v43  ;;  %4052 = vmatmul.mubr.msk.bf16.gmra.mrb[20].mxu1 %vm802_vm3, %v5137_v43  ;;  %v664_v2 = vrot.slane %v663_v41, 4  ;;  %v690_v37 = vshll.u32 %v5135_v7, 16  ;;  %v694_v0 = vshrl.u32 %v5135_v7, 16  ;;  %v1365_v5 = vsel %vm4977_vm7, %v3654_v4, %v1364_v32 }
  0x55   : > { %v674_v40 = vrot.slane %v673_v35, 4  ;;  %v1366_v50 = vrot.slane %v1364_v32, 4  ;;  %v683_v55 = vrot.slane %v681_v17, 4  ;;  %v686_v59 = vrot.slane %v684_v19, 5  ;;  %v5167_v32 = vld [vmem:[%s4749_s8 + $0xac] sm:$0xf] }
  0x56   : > { %v669_v12 = vsel %vm4796_vm4, %v664_v2, %v668_v20  ;;  %v692_v41 = vrot.slane %v690_v37, 5  ;;  %v696_v43 = vrot.slane %v694_v0, 4  ;;  %v700_v35 = vshll.u32 %v5148_v58, 16 }
  0x57   : > { %v679_v53 = vsel %vm4796_vm4, %v674_v40, %v678_v44  ;;  %v1368_v18 = vsel %vm4977_vm7, %v1366_v50, %v1367_v22  ;;  %v3655_v4 = vrot.slane %v4890_v13, 9  ;;  %v687_v2 = vor.u32 %v686_v59, %v683_v55 }
  0x58   : > { %v5169_v17 = vcombine.low %v669_v12, %v679_v53  ;;  %v5171_v20 = vcombine.low %v1365_v5, %v1368_v18  ;;  %v697_v19 = vor.u32 %v696_v43, %v692_v41  ;;  %v702_v37 = vrot.slane %v700_v35, 5  ;;  %v5181_v18 = vld [vmem:[%s4749_s8 + $0xb0] sm:$0x1] }
  0x59   : > { %v1371_v0 = vrot.slane %v4897_v24, 5  ;;  %v1374_v44 = vrot.slane %v4914_v8, 5  ;;  %v705_v22 = vshrl.u32 %v5158_v25, 16  ;;  %v688_v53 = vrot.slane %v687_v2, 4 }
  0x5a   : > { %5947 = vst [vmem:[#allocation19_spill] sm:$0xff] %v5169_v17  ;;  %5948 = vst [vmem:[#allocation20_spill] sm:$0xff] %v5171_v20  ;;  %4055 = vmatprep.mubr.msk.bf16.mxu1 %vm802_vm3, %v5169_v17  ;;  %4209 = vmatprep.mubr.msk.bf16.mxu0 %vm802_vm3, %v5171_v20  ;;  %v698_v40 = vrot.slane %v697_v19, 4  ;;  %v708_v43 = vshll.u32 %v5158_v25, 16  ;;  %v714_v5 = vshll.u32 %v5167_v32, 16  ;;  %v718_v12 = vshrl.u32 %v5167_v32, 16 }
  0x5b   : > { %v1372_v8 = vsel %vm4977_vm7, %v3655_v4, %v1371_v0  ;;  %v1373_v50 = vrot.slane %v1371_v0, 4  ;;  %v707_v55 = vrot.slane %v705_v22, 4  ;;  %v693_v59 = vsel %vm4796_vm4, %v688_v53, %v692_v41  ;;  %v5193_v17 = vld [vmem:[%s4749_s8 + $0xb4] sm:$0xf]  ;;  %v5205_v53 = vld [vmem:[%s4749_s8 + $0xb8] sm:$0xf] }
  0x5c   : > { %v703_v35 = vsel %vm4796_vm4, %v698_v40, %v702_v37  ;;  %v710_v2 = vrot.slane %v708_v43, 5  ;;  %v716_v19 = vrot.slane %v714_v5, 5  ;;  %v720_v0 = vrot.slane %v718_v12, 4 }
  0x5d   : > { %v5195_v20 = vcombine.low %v693_v59, %v703_v35  ;;  %v1375_v4 = vsel %vm4977_vm7, %v1373_v50, %v1374_v44  ;;  %v724_v22 = vshll.u32 %v5181_v18, 16  ;;  %v3656_v41 = vrot.slane %v4919_v42, 9  ;;  %v5211_v44 = vld [vmem:[%s4749_s8 + $0xbc] sm:$0x1] }
  0x5e   : > { %v5200_v30 = vcombine.low %v1372_v8, %v1375_v4  ;;  %v711_v63 = vor.u32 %v710_v2, %v707_v55  ;;  %v1378_v37 = vrot.slane %v4924_v6, 5  ;;  %v721_v40 = vor.u32 %v720_v0, %v716_v19 }
  0x5f   : > { %5949 = vst [vmem:[#allocation21_spill] sm:$0xff] %v5195_v20  ;;  %4056 = vmatmul.mubr.msk.bf16.gmra.mrb[24].mxu1 %vm802_vm3, %v5195_v20  ;;  %v726_v43 = vrot.slane %v724_v22, 5  ;;  %v1381_v5 = vrot.slane %v4937_v11, 5  ;;  %v729_v50 = vshrl.u32 %v5193_v17, 16  ;;  %v732_v59 = vshll.u32 %v5193_v17, 16 }
  0x60   : > { %5950 = vst [vmem:[#allocation22_spill] sm:$0xff] %v5200_v30  ;;  %4210 = vmatmul.mubr.msk.bf16.gmra.mrb[8].mxu0 %vm802_vm3, %v5200_v30  ;;  %v712_v8 = vrot.slane %v711_v63, 4  ;;  %v1379_v55 = vsel %vm4977_vm7, %v3656_v41, %v1378_v37  ;;  %v1380_v12 = vrot.slane %v1378_v37, 4  ;;  %v722_v35 = vrot.slane %v721_v40, 4 }
  0x61   : > { %v731_v2 = vrot.slane %v729_v50, 4  ;;  %v738_v4 = vshll.u32 %v5205_v53, 16  ;;  %v742_v11 = vshrl.u32 %v5205_v53, 16  ;;  %v734_v20 = vrot.slane %v732_v59, 5 }
  0x62   : > { %v717_v0 = vsel %vm4796_vm4, %v712_v8, %v716_v19  ;;  %v1382_v22 = vsel %vm4977_vm7, %v1380_v12, %v1381_v5  ;;  %v748_v63 = vshll.u32 %v5211_v44, 16  ;;  %v727_v41 = vsel %vm4796_vm4, %v722_v35, %v726_v43 }
  0x63   : > { %v5228_v37 = vcombine.low %v1379_v55, %v1382_v22  ;;  %v740_v40 = vrot.slane %v738_v4, 5  ;;  %v744_v50 = vrot.slane %v742_v11, 4  ;;  %v5230_v30 = vcombine.low %v717_v0, %v727_v41 }
  0x64   : > { %v735_v21 = vor.u32 %v734_v20, %v731_v2  ;;  %v750_v45 = vrot.slane %v748_v63, 5  ;;  %v3657_v42 = vrot.slane %v4941_v15, 9  ;;  %v1385_v5 = vrot.slane %v4946_v27, 5 }
  0x65   : > { %4213 = vmatprep.mubr.msk.bf16.mxu0 %vm802_vm3, %v5228_v37  ;;  %v745_v19 = vor.u32 %v744_v50, %v740_v40  ;;  %v1388_v8 = vrot.slane %v4960_v47, 5  ;;  %v3658_v43 = vrot.slane %v4968_v54, 9  ;;  %4059 = vmatprep.mubr.msk.bf16.mxu1 %vm802_vm3, %v5230_v30  ;;  %v3617_v20 = vcombine.low %v4763_v9, %v4766_v10 }
  0x66   : > { %v736_v55 = vrot.slane %v735_v21, 4  ;;  %v1392_v12 = vrot.slane %v4984_v36, 5  ;;  %v1395_v59 = vrot.slane %v4997_v51, 5  ;;  %v1386_v2 = vsel %vm4977_vm7, %v3657_v42, %v1385_v5 }
  0x67   : > { %v746_v35 = vrot.slane %v745_v19, 4  ;;  %v1387_v4 = vrot.slane %v1385_v5, 4  ;;  %v1399_v47 = vrot.slane %v5025_v31, 5  ;;  %v3659_v9 = vrot.slane %v5009_v56, 9 }
  0x68   : > { %v741_v11 = vsel %vm4796_vm4, %v736_v55, %v740_v40  ;;  %v1393_v21 = vsel %vm4977_vm7, %v3658_v43, %v1392_v12  ;;  %v1394_v0 = vrot.slane %v1392_v12, 4  ;;  %v1402_v42 = vrot.slane %v5030_v49, 5 }
  0x69   : > { %v751_v10 = vsel %vm4796_vm4, %v746_v35, %v750_v45  ;;  %v1389_v51 = vsel %vm4977_vm7, %v1387_v4, %v1388_v8  ;;  %v1401_v22 = vrot.slane %v1399_v47, 4  ;;  %v3660_v19 = vrot.slane %v5056_v29, 9 }
  0x6a   : > { %v5257_v63 = vcombine.low %v741_v11, %v751_v10  ;;  %v5259_v41 = vcombine.low %v1386_v2, %v1389_v51  ;;  %v1396_v40 = vsel %vm4977_vm7, %v1394_v0, %v1395_v59  ;;  %v1406_v5 = vrot.slane %v5062_v16, 5 }
  0x6b   : > { %v5263_v50 = vcombine.low %v1393_v21, %v1396_v40  ;;  %v1409_v49 = vrot.slane %v5072_v1, 5  ;;  %v1400_v45 = vsel %vm4977_vm7, %v3659_v9, %v1399_v47  ;;  %v1403_v8 = vsel %vm4977_vm7, %v1401_v22, %v1402_v42 }
  0x6c   : > { %4060 = vmatmul.mubr.msk.bf16.gmra.mrb[28].mxu1 %vm802_vm3, %v5257_v63  ;;  %4214 = vmatmul.mubr.msk.bf16.gmra.mrb[12].mxu0 %vm802_vm3, %v5259_v41  ;;  %v1408_v43 = vrot.slane %v1406_v5, 4  ;;  %v1413_v55 = vrot.slane %v5105_v46, 5  ;;  %v1420_v12 = vrot.slane %v5135_v7, 5  ;;  %v1407_v59 = vsel %vm4977_vm7, %v3660_v19, %v1406_v5 }
  0x6d   : > { %4065 = vmatprep.mubr.msk.bf16.mxu1 %vm802_vm3, %v3617_v20  ;;  %4217 = vmatprep.mubr.msk.bf16.mxu0 %vm802_vm3, %v5263_v50  ;;  %v5285_v20 = vcombine.low %v1400_v45, %v1403_v8  ;;  %v3661_v35 = vrot.slane %v5086_v61, 9  ;;  %v1416_v4 = vrot.slane %v5110_v3, 5  ;;  %v5291_v47 = vcombine.low %v4792_v33, %v4805_v39  ;;  %v5303_v3 = vld [vmem:[%s5890_s1 + $0x6] sm:$0x3] }
  0x6e   : > { %v1410_v1 = vsel %vm4977_vm7, %v1408_v43, %v1409_v49  ;;  %v1415_v2 = vrot.slane %v1413_v55, 4  ;;  %v3662_v11 = vrot.slane %v5128_v60, 9  ;;  %v1538_v21 = vsel %vm851_vm0, %v4845_v23, 0 }
  0x6f   : > { %v5296_v0 = vcombine.low %v1407_v59, %v1410_v1  ;;  %v1422_v9 = vrot.slane %v1420_v12, 4  ;;  %v1423_v10 = vrot.slane %v5148_v58, 5  ;;  %v1427_v51 = vrot.slane %v5167_v32, 5 }
  0x70   : > { %v1414_v33 = vsel %vm4977_vm7, %v3661_v35, %v1413_v55  ;;  %v1417_v39 = vsel %vm4977_vm7, %v1415_v2, %v1416_v4  ;;  %v5317_v23 = vcombine.low %v4819_v57, %v4824_v62  ;;  %v1421_v58 = vsel %vm4977_vm7, %v3662_v11, %v1420_v12 }
  0x71   : > { %v5323_v22 = vcombine.low %v4941_v15, %v4946_v27  ;;  %v1424_v42 = vsel %vm4977_vm7, %v1422_v9, %v1423_v10  ;;  %v3663_v40 = vrot.slane %v5158_v25, 9  ;;  %v1434_v19 = vrot.slane %v5205_v53, 5 }
  0x72   : > { %v5333_v57 = vcombine.low %v4968_v54, %v4984_v36  ;;  %v5337_v62 = vcombine.low %v1414_v33, %v1417_v39  ;;  %v1429_v15 = vrot.slane %v1427_v51, 4  ;;  %v1430_v27 = vrot.slane %v5181_v18, 5  ;;  %v360_v18 = vld [vmem:[%s4749_s8 + $0xc8] sm:$0x1] }
  0x73   : > { %v5342_v5 = vcombine.low %v5009_v56, %v5025_v31  ;;  %v5346_v49 = vcombine.low %v5056_v29, %v5062_v16  ;;  %v5350_v54 = vcombine.low %v5086_v61, %v5105_v46  ;;  %v5354_v36 = vcombine.low %v5128_v60, %v5135_v7  ;;  %v5373_v61 = vld [vmem:[%s4749_s8 + $0xc4] sm:$0xf] }
  0x74   : > { %4066 = vmatmul.mubr.msk.bf16.vlgmr.msra.gmra.mrb[0].mxu1 %vm802_vm3, %v4802_v38  ;;  %4218 = vmatmul.mubr.msk.bf16.gmra.mrb[16].mxu0 %vm802_vm3, %v5285_v20  ;;  %v5358_v45 = vcombine.low %v5158_v25, %v5167_v32  ;;  %v5362_v56 = vcombine.low %v4838_v14, %v4850_v28  ;;  %v5364_v31 = vcombine.low %v1421_v58, %v1424_v42  ;;  %v3664_v16 = vrot.slane %v5193_v17, 9  ;;  %v5951_v42 = vld [vmem:[#allocation5_spill] sm:$0xff] }
  0x75   : > { %4098 = vmatpush3.bf16.msra.mxu1 %v1538_v21  ;;  %4069 = vmatprep.mubr.msk.bf16.mxu1 %vm802_vm3, %v5291_v47  ;;  %v5368_v29 = vcombine.low %v5193_v17, %v5205_v53  ;;  %v1436_v7 = vrot.slane %v1434_v19, 4  ;;  %v1437_v60 = vrot.slane %v5211_v44, 5  ;;  %v1428_v14 = vsel %vm4977_vm7, %v3663_v40, %v1427_v51  ;;  %v5393_v17 = vld [vmem:[%s4749_s8 + $0xc0] sm:$0xf] }
  0x76   : > { %4221 = vmatprep.mubr.msk.bf16.mxu0 %vm802_vm3, %v5296_v0  ;;  %4596 = vmatprep.subr.msk.bf16.mxu1 %vm851_vm0, %v5303_v3  ;;  %v1431_v28 = vsel %vm4977_vm7, %v1429_v15, %v1430_v27  ;;  %v2170_v25 = vrot.slane %v5373_v61, 5  ;;  %v1435_v46 = vsel %vm4977_vm7, %v3664_v16, %v1434_v19  ;;  %v5398_v53 = vcombine.low %v4865_v48, %v4873_v52 }
  0x77   : > { %v1438_v32 = vsel %vm4977_vm7, %v1436_v7, %v1437_v60  ;;  %v5400_v44 = vcombine.low %v1428_v14, %v1431_v28  ;;  %v5404_v8 = vcombine.low %v4890_v13, %v4897_v24  ;;  %v1940_v43 = vshrl.u32 %v5393_v17, 16  ;;  %v3790_v60 = vld [vmem:[%s5890_s1 + $0x10] sm:$0x3]  ;;  %v4646_v14 = vld [vmem:[%s4749_s8 + $0x4] sm:$0xf] }
  0x78   : > { %v1943_v55 = vshll.u32 %v5393_v17, 16  ;;  %v1949_v12 = vshll.u32 %v5373_v61, 16  ;;  %v1953_v59 = vshrl.u32 %v5373_v61, 16  ;;  %v5410_v1 = vcombine.low %v1435_v46, %v1438_v32  ;;  %v4648_v32 = vld [vmem:[%s4749_s8] sm:$0xf] }
  0x79   : > { %v3734_v35 = vrot.slane %v5393_v17, 9  ;;  %v2172_v48 = vrot.slane %v2170_v25, 4  ;;  %v2173_v52 = vrot.slane %v360_v18, 5  ;;  %v1942_v2 = vrot.slane %v1940_v43, 4 }
  0x7a   : > { %v1945_v4 = vrot.slane %v1943_v55, 5  ;;  %v1951_v11 = vrot.slane %v1949_v12, 5  ;;  %v1955_v21 = vrot.slane %v1953_v59, 4  ;;  %v1959_v9 = vshll.u32 %v360_v18, 16 }
  0x7b   : > { %v2171_v10 = vsel %vm4977_vm7, %v3734_v35, %v2170_v25  ;;  %v2174_v51 = vsel %vm4977_vm7, %v2172_v48, %v2173_v52  ;;  %v5427_v40 = vcombine.low %v5951_v42, %v4924_v6  ;;  %v5952_v6 = vld [vmem:[#allocation15_spill] sm:$0xff]  ;;  %v1329_v28 = vrot.slane %v4646_v14, 5  ;;  %v5953_v48 = vld [vmem:[#allocation10_spill] sm:$0xff]  ;;  %v5954_v52 = vld [vmem:[#allocation12_spill] sm:$0xff] }
  0x7c   : > { %4070 = vmatmul.mubr.msk.bf16.gmra.mrb[4].mxu1 %vm802_vm3, %v5317_v23  ;;  %4222 = vmatmul.mubr.msk.bf16.gmra.mrb[20].mxu0 %vm802_vm3, %v5337_v62  ;;  %v1946_v13 = vor.u32 %v1945_v4, %v1942_v2  ;;  %v1956_v24 = vor.u32 %v1955_v21, %v1951_v11  ;;  %v1961_v58 = vrot.slane %v1959_v9, 5  ;;  %v5429_v19 = vcombine.low %v2171_v10, %v2174_v51  ;;  %v4647_v25 = vld [vmem:[%s4749_s8 + $0x8] sm:$0x1]  ;;  %v5956_v4 = vld [vmem:[#allocation17_spill] sm:$0xff]  ;;  %v5957_v21 = vld [vmem:[#allocation20_spill] sm:$0xff] }
  0x7d   : > { %4073 = vmatprep.mubr.msk.bf16.mxu1 %vm802_vm3, %v5362_v56  ;;  %4225 = vmatprep.mubr.msk.bf16.mxu0 %vm802_vm3, %v5364_v31  ;;  %v2618_v7 = vsel %vm851_vm0, %v5952_v6, 0  ;;  %v1332_v46 = vrot.slane %v4647_v25, 5  ;;  %v3649_v18 = vrot.slane %v4648_v32, 9  ;;  %v1331_v43 = vrot.slane %v1329_v28, 4  ;;  %v4649_v2 = vld [vmem:[%s5890_s1 + $0x8] sm:$0x3] }
  0x7e   : > { %v1947_v33 = vrot.slane %v1946_v13, 4  ;;  %v1957_v39 = vrot.slane %v1956_v24, 4  ;;  %v1744_v35 = vsel %vm851_vm0, %v5303_v3, 0  ;;  %v5955_v3 = vld [vmem:[#allocation14_spill] sm:$0xff]  ;;  %v5524_v24 = vld [vmem:[%s4749_s8 + $0xcc] sm:$0xf] }
  0x7f   : > { %v1330_v55 = vsel %vm4977_vm7, %v3649_v18, %v1329_v28  ;;  %v1333_v12 = vsel %vm4977_vm7, %v1331_v43, %v1332_v46  ;;  %v5958_v13 = vld [vmem:[#allocation22_spill] sm:$0xff]  ;;  %v5527_v9 = vld [vmem:[%s4749_s8 + $0xd0] sm:$0xf]  ;;  %v2830_v10 = vsel %vm851_vm0, %v3790_v60, 0  ;;  %v5964_v42 = vld [vmem:[#allocation9_spill] sm:$0xff]  ;;  %v2589_v14 = vshll.u32 %v5524_v24, 16 }
  0x80   : > { %v1952_v15 = vsel %vm4796_vm4, %v1947_v33, %v1951_v11  ;;  %v1962_v27 = vsel %vm4796_vm4, %v1957_v39, %v1961_v58  ;;  %v3666_v59 = vcombine.low %v1330_v55, %v1333_v12  ;;  %v5513_v11 = vcombine.low %v5393_v17, %v5373_v61  ;;  %v5959_v17 = vld [vmem:[#allocation3_spill] sm:$0xff]  ;;  %v5960_v51 = vld [vmem:[#allocation4_spill] sm:$0xff]  ;;  %v5961_v33 = vld [vmem:[#allocation6_spill] sm:$0xff] }
  0x81   : > { %v5435_v16 = vcombine.low %v1952_v15, %v1962_v27  ;;  %v3754_v61 = vcombine.low %v5524_v24, %v5527_v9  ;;  %v5962_v39 = vld [vmem:[#allocation7_spill] sm:$0xff]  ;;  %v5963_v58 = vld [vmem:[#allocation8_spill] sm:$0xff]  ;;  %v5966_v27 = vld [vmem:[#allocation13_spill] sm:$0xff]  ;;  %v2599_v28 = vshrl.u32 %v5527_v9, 16  ;;  %v2591_v32 = vrot.slane %v2589_v14, 5 }
  0x82   : > { %v5965_v15 = vld [vmem:[#allocation11_spill] sm:$0xff]  ;;  %v5967_v6 = vld [vmem:[#allocation16_spill] sm:$0xff]  ;;  %v5969_v25 = vld [vmem:[#allocation2_spill] sm:$0xff]  ;;  %v2816_v34 = vrot.slane %v5527_v9, 5 }
  0x83   : > { %v5970_v46 = vld [vmem:[#allocation19_spill] sm:$0xff]  ;;  %v2601_v43 = vrot.slane %v2599_v28, 4  ;;  %v363_v55 = vld [vmem:[%s4749_s8 + $0xd4] sm:$0x1]  ;;  %v5971_v12 = vld [vmem:[#allocation21_spill] sm:$0xff]  ;;  %s302_s8 = scalar_lea.vmem %s5893_s4, %s5977_s18 }
  0x84   : > { %4074 = vmatmul.mubr.msk.bf16.gmra.mrb[8].mxu1 %vm802_vm3, %v5398_v53  ;;  %4226 = vmatmul.mubr.msk.bf16.gmra.mrb[24].mxu0 %vm802_vm3, %v5400_v44 }
  0x85   : > { %4077 = vmatprep.mubr.msk.bf16.mxu1 %vm802_vm3, %v5404_v8  ;;  %4229 = vmatprep.mubr.msk.bf16.mxu0 %vm802_vm3, %v5410_v1 }
  0x8c   : > { %4078 = vmatmul.mubr.msk.bf16.gmra.mrb[12].mxu1 %vm802_vm3, %v5427_v40  ;;  %4230 = vmatmul.mubr.msk.bf16.gmra.mrb[28].mxu0 %vm802_vm3, %v5429_v19 }
  0x8d   : > { %4081 = vmatprep.mubr.msk.bf16.mxu1 %vm802_vm3, %v5323_v22  ;;  %4235 = vmatprep.mubr.msk.bf16.mxu0 %vm802_vm3, %v5291_v47 }
  0x94   : > { %4082 = vmatmul.mubr.msk.bf16.gmra.mrb[16].mxu1 %vm802_vm3, %v5333_v57  ;;  %4236 = vmatmul.mubr.msk.bf16.vlgmr.msra.gmra.mrb[0].mxu0 %vm802_vm3, %v5317_v23 }
  0x95   : > { %4268 = vmatpush3.bf16.msra.mxu0 %v2618_v7  ;;  %4085 = vmatprep.mubr.msk.bf16.mxu1 %vm802_vm3, %v5342_v5  ;;  %v5968_v7 = vld [vmem:[#allocation18_spill] sm:$0xff] }
  0x96   : > { %4239 = vmatprep.mubr.msk.bf16.mxu0 %vm802_vm3, %v5362_v56  ;;  %4602 = vmatprep.subr.msk.bf16.mxu0 %vm851_vm0, %v3790_v60  ;;  %v2586_v60 = vshrl.u32 %v5524_v24, 16 }
  0x9c   : > { %4086 = vmatmul.mubr.msk.bf16.gmra.mrb[20].mxu1 %vm802_vm3, %v5346_v49  ;;  %4240 = vmatmul.mubr.msk.bf16.gmra.mrb[4].mxu0 %vm802_vm3, %v5398_v53 }
  0x9d   : > { %4089 = vmatprep.mubr.msk.bf16.mxu1 %vm802_vm3, %v5350_v54  ;;  %4243 = vmatprep.mubr.msk.bf16.mxu0 %vm802_vm3, %v5404_v8 }
  0xa4   : > { %4090 = vmatmul.mubr.msk.bf16.gmra.mrb[24].mxu1 %vm802_vm3, %v5354_v36  ;;  %4244 = vmatmul.mubr.msk.bf16.gmra.mrb[8].mxu0 %vm802_vm3, %v5427_v40 }
  0xa5   : > { %4093 = vmatprep.mubr.msk.bf16.mxu1 %vm802_vm3, %v5358_v45  ;;  %4247 = vmatprep.mubr.msk.bf16.mxu0 %vm802_vm3, %v5323_v22 }
  0xac   : > { %4094 = vmatmul.mubr.msk.bf16.gmra.mrb[28].mxu1 %vm802_vm3, %v5368_v29  ;;  %4248 = vmatmul.mubr.msk.bf16.gmra.mrb[12].mxu0 %vm802_vm3, %v5333_v57 }
  0xad   : > { %4099 = vmatprep.mubr.msk.bf16.mxu1 %vm802_vm3, %v3666_v59  ;;  %4251 = vmatprep.mubr.msk.bf16.mxu0 %vm802_vm3, %v5342_v5 }
  0xb4   : > { %4100 = vmatmul.mubr.msk.bf16.vlgmr.msra.gmra.mrb[0].mxu1 %vm802_vm3, %v5953_v48  ;;  %4252 = vmatmul.mubr.msk.bf16.gmra.mrb[16].mxu0 %vm802_vm3, %v5346_v49 }
  0xb5   : > { %4132 = vmatpush3.bf16.msra.mxu1 %v1744_v35  ;;  %4103 = vmatprep.mubr.msk.bf16.mxu1 %vm802_vm3, %v5954_v52  ;;  %v2605_v35 = vshll.u32 %v363_v55, 16 }
  0xb6   : > { %4255 = vmatprep.mubr.msk.bf16.mxu0 %vm802_vm3, %v5350_v54  ;;  %4598 = vmatprep.subr.msk.bf16.mxu1 %vm851_vm0, %v4649_v2 }
  0xbc   : > { %4104 = vmatmul.mubr.msk.bf16.gmra.mrb[4].mxu1 %vm802_vm3, %v5955_v3  ;;  %4256 = vmatmul.mubr.msk.bf16.gmra.mrb[20].mxu0 %vm802_vm3, %v5354_v36 }
  0xbd   : > { %4107 = vmatprep.mubr.msk.bf16.mxu1 %vm802_vm3, %v5956_v4  ;;  %4259 = vmatprep.mubr.msk.bf16.mxu0 %vm802_vm3, %v5358_v45 }
  0xc4   : > { %4108 = vmatmul.mubr.msk.bf16.gmra.mrb[8].mxu1 %vm802_vm3, %v5957_v21  ;;  %4260 = vmatmul.mubr.msk.bf16.gmra.mrb[24].mxu0 %vm802_vm3, %v5368_v29 }
  0xc5   : > { %4111 = vmatprep.mubr.msk.bf16.mxu1 %vm802_vm3, %v5958_v13  ;;  %4263 = vmatprep.mubr.msk.bf16.mxu0 %vm802_vm3, %v5513_v11 }
  0xcc   : > { %4112 = vmatmul.mubr.msk.bf16.gmra.mrb[12].mxu1 %vm802_vm3, %v5228_v37  ;;  %4264 = vmatmul.mubr.msk.bf16.gmra.mrb[28].mxu0 %vm802_vm3, %v3754_v61  ;;  %v2607_v61 = vrot.slane %v2605_v35, 5 }
  0xcd   : > { %4115 = vmatprep.mubr.msk.bf16.mxu1 %vm802_vm3, %v5259_v41  ;;  %4269 = vmatprep.mubr.msk.bf16.mxu0 %vm802_vm3, %v5959_v17 }
  0xd4   : > { %4116 = vmatmul.mubr.msk.bf16.gmra.mrb[16].mxu1 %vm802_vm3, %v5263_v50  ;;  %4270 = vmatmul.mubr.msk.bf16.vlgmr.msra.gmra.mrb[0].mxu0 %vm802_vm3, %v5960_v51 }
  0xd5   : > { %4302 = vmatpush3.bf16.msra.mxu0 %v2830_v10  ;;  %4119 = vmatprep.mubr.msk.bf16.mxu1 %vm802_vm3, %v5285_v20 }
  0xd6   : > { %4273 = vmatprep.mubr.msk.bf16.mxu0 %vm802_vm3, %v5961_v33 }
  0xdc   : > { %4120 = vmatmul.mubr.msk.bf16.gmra.mrb[20].mxu1 %vm802_vm3, %v5296_v0  ;;  %4274 = vmatmul.mubr.msk.bf16.gmra.mrb[4].mxu0 %vm802_vm3, %v5962_v39 }
  0xdd   : > { %4123 = vmatprep.mubr.msk.bf16.mxu1 %vm802_vm3, %v5337_v62  ;;  %4277 = vmatprep.mubr.msk.bf16.mxu0 %vm802_vm3, %v5963_v58 }
  0xe4   : > { %4124 = vmatmul.mubr.msk.bf16.gmra.mrb[24].mxu1 %vm802_vm3, %v5364_v31  ;;  %4278 = vmatmul.mubr.msk.bf16.gmra.mrb[8].mxu0 %vm802_vm3, %v5964_v42 }
  0xe5   : > { %4127 = vmatprep.mubr.msk.bf16.mxu1 %vm802_vm3, %v5400_v44  ;;  %4281 = vmatprep.mubr.msk.bf16.mxu0 %vm802_vm3, %v5965_v15 }
  0xec   : > { %4128 = vmatmul.mubr.msk.bf16.gmra.mrb[28].mxu1 %vm802_vm3, %v5410_v1  ;;  %4282 = vmatmul.mubr.msk.bf16.gmra.mrb[12].mxu0 %vm802_vm3, %v5966_v27 }
  0xed   : > { %4133 = vmatprep.mubr.msk.bf16.mxu1 %vm802_vm3, %v4802_v38  ;;  %4285 = vmatprep.mubr.msk.bf16.mxu0 %vm802_vm3, %v5967_v6  ;;  %v2595_v38 = vshll.u32 %v5527_v9, 16 }
  0xef   : > { %v2597_v18 = vrot.slane %v2595_v38, 5 }
  0xf1   : > { %v2602_v59 = vor.u32 %v2601_v43, %v2597_v18 }
  0xf3   : > { %v2603_v2 = vrot.slane %v2602_v59, 4 }
  0xf4   : > { %4134 = vmatmul.mubr.msk.bf16.vlgmr.msra.gmra.mrb[0].mxu1 %vm802_vm3, %v5291_v47  ;;  %4286 = vmatmul.mubr.msk.bf16.gmra.mrb[16].mxu0 %vm802_vm3, %v5968_v7  ;;  %v2588_v47 = vrot.slane %v2586_v60, 4 }
  0xf5   : > { %4336 = vmatpush3.bf16.msra.mxu1 %v5969_v25  ;;  %4137 = vmatprep.mubr.msk.bf16.mxu1 %vm802_vm3, %v5317_v23 }
  0xf6   : > { %4289 = vmatprep.mubr.msk.bf16.mxu0 %vm802_vm3, %v5970_v46  ;;  %v2592_v23 = vor.u32 %v2591_v32, %v2588_v47 }
  0xf8   : > { %v2593_v48 = vrot.slane %v2592_v23, 4 }
  0xfc   : > { %4138 = vmatmul.mubr.msk.bf16.gmra.mrb[4].mxu1 %vm802_vm3, %v5362_v56  ;;  %4290 = vmatmul.mubr.msk.bf16.gmra.mrb[20].mxu0 %vm802_vm3, %v5971_v12  ;;  %v2598_v56 = vsel %vm4796_vm4, %v2593_v48, %v2597_v18 }
  0xfd   : > { %4141 = vmatprep.mubr.msk.bf16.mxu1 %vm802_vm3, %v5398_v53  ;;  %4293 = vmatprep.mubr.msk.bf16.mxu0 %vm802_vm3, %v5230_v30  ;;  %v2608_v53 = vsel %vm4796_vm4, %v2603_v2, %v2607_v61 }
  0xfe   : > { %v3772_v17 = vcombine.low %v2598_v56, %v2608_v53 }
 0x104   : > { %4142 = vmatmul.mubr.msk.bf16.gmra.mrb[8].mxu1 %vm802_vm3, %v5404_v8  ;;  %4294 = vmatmul.mubr.msk.bf16.gmra.mrb[24].mxu0 %vm802_vm3, %v5257_v63 }
 0x105   : > { %4145 = vmatprep.mubr.msk.bf16.mxu1 %vm802_vm3, %v5427_v40  ;;  %4297 = vmatprep.mubr.msk.bf16.mxu0 %vm802_vm3, %v5435_v16 }
 0x10c   : > { %4146 = vmatmul.mubr.msk.bf16.gmra.mrb[12].mxu1 %vm802_vm3, %v5323_v22  ;;  %4298 = vmatmul.mubr.msk.bf16.gmra.mrb[28].mxu0 %vm802_vm3, %v3772_v17 }
 0x10d   : > { %4149 = vmatprep.mubr.msk.bf16.mxu1 %vm802_vm3, %v5333_v57  ;;  %4303 = vmatprep.mubr.msk.bf16.mxu0 %vm802_vm3, %v5954_v52 }
 0x114   : > { %4150 = vmatmul.mubr.msk.bf16.gmra.mrb[16].mxu1 %vm802_vm3, %v5342_v5  ;;  %4304 = vmatmul.mubr.msk.bf16.vlgmr.msra.gmra.mrb[0].mxu0 %vm802_vm3, %v5955_v3 }
 0x115   : > { %4153 = vmatprep.mubr.msk.bf16.mxu1 %vm802_vm3, %v5346_v49  ;;  %4307 = vmatprep.mubr.msk.bf16.mxu0 %vm802_vm3, %v5956_v4 }
 0x11c   : > { %4154 = vmatmul.mubr.msk.bf16.gmra.mrb[20].mxu1 %vm802_vm3, %v5350_v54  ;;  %4308 = vmatmul.mubr.msk.bf16.gmra.mrb[4].mxu0 %vm802_vm3, %v5957_v21 }
 0x11d   : > { %4157 = vmatprep.mubr.msk.bf16.mxu1 %vm802_vm3, %v5354_v36  ;;  %4311 = vmatprep.mubr.msk.bf16.mxu0 %vm802_vm3, %v5958_v13 }
 0x124   : > { %4158 = vmatmul.mubr.msk.bf16.gmra.mrb[24].mxu1 %vm802_vm3, %v5358_v45  ;;  %4312 = vmatmul.mubr.msk.bf16.gmra.mrb[8].mxu0 %vm802_vm3, %v5228_v37  ;;  %v3789_v37 = vrot.slane %v5524_v24, 9 }
 0x125   : > { %4161 = vmatprep.mubr.msk.bf16.mxu1 %vm802_vm3, %v5368_v29  ;;  %4315 = vmatprep.mubr.msk.bf16.mxu0 %vm802_vm3, %v5259_v41  ;;  %v2818_v41 = vrot.slane %v2816_v34, 4 }
 0x12c   : > { %4162 = vmatmul.mubr.msk.bf16.gmra.mrb[28].mxu1 %vm802_vm3, %v5513_v11  ;;  %4316 = vmatmul.mubr.msk.bf16.gmra.mrb[12].mxu0 %vm802_vm3, %v5263_v50  ;;  %v2819_v50 = vrot.slane %v363_v55, 5 }
 0x12d   : > { %4183 = vmatprep.mubr.msk.bf16.mxu1 %vm802_vm3, %v5966_v27  ;;  %4319 = vmatprep.mubr.msk.bf16.mxu0 %vm802_vm3, %v5285_v20  ;;  %v2817_v20 = vsel %vm4977_vm7, %v3789_v37, %v2816_v34 }
 0x134   : > { %4184 = vmatmul.mubr.msk.bf16.vlgmr.msra.gmra.mrb[16].mxu1 %vm802_vm3, %v5967_v6  ;;  %4320 = vmatmul.mubr.msk.bf16.gmra.mrb[16].mxu0 %vm802_vm3, %v5296_v0  ;;  %v2820_v0 = vsel %vm4977_vm7, %v2818_v41, %v2819_v50 }
 0x135   : > { %4187 = vmatprep.mubr.msk.bf16.mxu1 %vm802_vm3, %v5968_v7  ;;  %4323 = vmatprep.mubr.msk.bf16.mxu0 %vm802_vm3, %v5337_v62  ;;  %v3791_v22 = vcombine.low %v2817_v20, %v2820_v0 }
 0x13c   : > { %4188 = vmatmul.mubr.msk.bf16.gmra.mrb[20].mxu1 %vm802_vm3, %v5970_v46  ;;  %4324 = vmatmul.mubr.msk.bf16.gmra.mrb[20].mxu0 %vm802_vm3, %v5364_v31 }
 0x13d   : > { %4191 = vmatprep.mubr.msk.bf16.mxu1 %vm802_vm3, %v5971_v12  ;;  %4327 = vmatprep.mubr.msk.bf16.mxu0 %vm802_vm3, %v5400_v44 }
 0x144   : > { %4192 = vmatmul.mubr.msk.bf16.gmra.mrb[24].mxu1 %vm802_vm3, %v5230_v30  ;;  %4328 = vmatmul.mubr.msk.bf16.gmra.mrb[24].mxu0 %vm802_vm3, %v5410_v1 }
 0x145   : > { %4195 = vmatprep.mubr.msk.bf16.mxu1 %vm802_vm3, %v5257_v63  ;;  %4331 = vmatprep.mubr.msk.bf16.mxu0 %vm802_vm3, %v5429_v19 }
 0x14c   : > { %4196 = vmatmul.mubr.msk.bf16.gmra.mrb[28].mxu1 %vm802_vm3, %v5435_v16  ;;  %4332 = vmatmul.mubr.msk.bf16.gmra.mrb[28].mxu0 %vm802_vm3, %v3791_v22  ;;  %v5696_v16 = vld [vmem:[%s5891_s2] ss:$0 sm:$0xff] }
 0x1c7   : > { %v4135_v30 = vpop.f32.mrb[0].mxu1 }
 0x1c8   : > { %v1780_v57 = vpop.f32.mrb[1].mxu1 }
 0x1c9   : > { %v4136_v62 = vpop.f32.mrb[2].mxu1 }
 0x1ca   : > { %v1783_v63 = vpop.f32.mrb[3].mxu1 }
 0x1cf   : > { %v4139_v5 = vpop.f32.mrb[4].mxu1 }
 0x1d0   : > { %v1796_v49 = vpop.f32.mrb[5].mxu1 }
 0x1d1   : > { %v4140_v54 = vpop.f32.mrb[6].mxu1 }
 0x1d2   : > { %v1799_v36 = vpop.f32.mrb[7].mxu1 }
 0x1d7   : > { %v5677_v45 = vpop.f32.mrb[8].mxu1 }
 0x1d8   : > { %v5679_v31 = vpop.f32.mrb[9].mxu1 }
 0x1d9   : > { %v5681_v26 = vpop.f32.mrb[10].mxu1 }
 0x1da   : > { %v5683_v29 = vpop.f32.mrb[11].mxu1 }
 0x1df   : > { %v5685_v44 = vpop.f32.mrb[12].mxu1 }
 0x1e0   : > { %v5687_v8 = vpop.f32.mrb[13].mxu1 }
 0x1e1   : > { %v5689_v1 = vpop.f32.mrb[14].mxu1 }
 0x1e2   : > { %v5691_v40 = vpop.f32.mrb[15].mxu1 }
 0x1e7   : > { %v4305_v19 = vpop.f32.mrb[0].mxu0 }
 0x1e8   : > { %v4337_v52 = vadd.f32 %v4305_v19, %v4135_v30  ;;  %v2866_v3 = vpop.f32.mrb[1].mxu0 }
 0x1e9   : > { %v4338_v4 = vadd.f32 %v2866_v3, %v1780_v57  ;;  %v4306_v11 = vpop.f32.mrb[2].mxu0 }
 0x1ea   : > { %v3034_v21 = vadd.f32 %v4337_v52, %v5696_v16  ;;  %v4339_v13 = vadd.f32 %v4306_v11, %v4136_v62  ;;  %v2869_v24 = vpop.f32.mrb[3].mxu0 }
 0x1eb   : > { %v3032_v9 = vadd.f32 %v4338_v4, %v5696_v16  ;;  %v4340_v10 = vadd.f32 %v2869_v24, %v1783_v63 }
 0x1ec   : > { %v3846_v51 = vpack.c.bf16 %v3034_v21, %v3034_v21  ;;  %v3035_v33 = vadd.f32 %v4339_v13, %v5696_v16  ;;  %v3299_v15 = vmul.f32 %v3034_v21, %v3034_v21  ;;  %v3229_v32 = vsel %vm3225_vm9, %v3034_v21, 0.0 }
 0x1ed   : > { %v3844_v39 = vpack.c.bf16 %v3032_v9, %v3032_v9  ;;  %v3297_v58 = vmul.f32 %v3032_v9, %v3032_v9  ;;  %v3033_v42 = vadd.f32 %v4340_v10, %v5696_v16  ;;  %v3226_v6 = vsel %vm3225_vm9, %v3032_v9, 0.0 }
 0x1ee   : > { %3195 = vst.msk [vmem:[%s5703_s30 + $0x8] sm:$0xf] %vm3192_vm8, %v3846_v51  ;;  %v3847_v27 = vpack.c.bf16 %v3035_v33, %v3035_v33  ;;  %v3300_v25 = vmul.f32 %v3035_v33, %v3035_v33  ;;  %v3332_v61 = vsel %vm3225_vm9, %v3299_v15, 0.0  ;;  %v3231_v17 = vsel %vm3225_vm9, %v3035_v33, 0.0 }
 0x1ef   : > { %3193 = vst.msk [vmem:[%s5703_s30] sm:$0xf] %vm3192_vm8, %v3844_v39  ;;  %v3845_v7 = vpack.c.bf16 %v3033_v42, %v3033_v42  ;;  %v3227_v60 = vsel %vm3225_vm9, %v3033_v42, 0.0  ;;  %v3298_v14 = vmul.f32 %v3033_v42, %v3033_v42  ;;  %v4309_v28 = vpop.f32.mrb[4].mxu0  ;;  %v3329_v18 = vsel %vm3225_vm9, %v3297_v58, 0.0 }
 0x1f0   : > { %3196 = vst.msk [vmem:[%s5703_s30 + $0xc] sm:$0xf] %vm3192_vm8, %v3847_v27  ;;  %v3228_v38 = vadd.f32 %v3227_v60, %v3226_v6  ;;  %v4341_v46 = vadd.f32 %v4309_v28, %v4139_v5  ;;  %v2882_v47 = vpop.f32.mrb[5].mxu0  ;;  %v3334_v34 = vsel %vm3225_vm9, %v3300_v25, 0.0 }
 0x1f1   : > { %3194 = vst.msk [vmem:[%s5703_s30 + $0x4] sm:$0xf] %vm3192_vm8, %v3845_v7  ;;  %v3330_v43 = vsel %vm3225_vm9, %v3298_v14, 0.0  ;;  %v4342_v55 = vadd.f32 %v2882_v47, %v1796_v49  ;;  %v4310_v12 = vpop.f32.mrb[6].mxu0 }
 0x1f2   : > { %v3230_v23 = vadd.f32 %v3229_v32, %v3228_v38  ;;  %v3331_v59 = vadd.f32 %v3330_v43, %v3329_v18  ;;  %v3038_v35 = vadd.f32 %v4341_v46, %v5696_v16  ;;  %v4343_v48 = vadd.f32 %v4310_v12, %v4140_v54  ;;  %v2885_v2 = vpop.f32.mrb[7].mxu0 }
 0x1f3   : > { %v3036_v56 = vadd.f32 %v4342_v55, %v5696_v16  ;;  %v4344_v53 = vadd.f32 %v2885_v2, %v1799_v36 }
 0x1f4   : > { %v3333_v37 = vadd.f32 %v3332_v61, %v3331_v59  ;;  %v3850_v41 = vpack.c.bf16 %v3038_v35, %v3038_v35  ;;  %v3232_v20 = vadd.f32 %v3231_v17, %v3230_v23  ;;  %v3039_v57 = vadd.f32 %v4343_v48, %v5696_v16 }
 0x1f5   : > { %v3848_v50 = vpack.c.bf16 %v3036_v56, %v3036_v56  ;;  %v3233_v0 = vsel %vm3225_vm9, %v3036_v56, 0.0  ;;  %v3301_v22 = vmul.f32 %v3036_v56, %v3036_v56  ;;  %v3037_v62 = vadd.f32 %v4344_v53, %v5696_v16 }
 0x1f6   : > { %3199 = vst.msk [vmem:[%s5703_s30 + $0x18] sm:$0xf] %vm3192_vm8, %v3850_v41  ;;  %v3335_v30 = vadd.f32 %v3334_v34, %v3333_v37  ;;  %v3234_v63 = vadd.f32 %v3233_v0, %v3232_v20  ;;  %v3303_v54 = vmul.f32 %v3038_v35, %v3038_v35  ;;  %v3851_v19 = vpack.c.bf16 %v3039_v57, %v3039_v57 }
 0x1f7   : > { %3197 = vst.msk [vmem:[%s5703_s30 + $0x10] sm:$0xf] %vm3192_vm8, %v3848_v50  ;;  %v3336_v5 = vsel %vm3225_vm9, %v3301_v22, 0.0  ;;  %v4313_v49 = vpop.f32.mrb[8].mxu0  ;;  %v3849_v3 = vpack.c.bf16 %v3037_v62, %v3037_v62  ;;  %v3235_v4 = vsel %vm3225_vm9, %v3037_v62, 0.0  ;;  %v3302_v11 = vmul.f32 %v3037_v62, %v3037_v62 }
 0x1f8   : > { %v3337_v36 = vadd.f32 %v3336_v5, %v3335_v30  ;;  %v2898_v52 = vpop.f32.mrb[9].mxu0  ;;  %v4345_v21 = vadd.f32 %v4313_v49, %v5677_v45  ;;  %v3237_v24 = vsel %vm3225_vm9, %v3038_v35, 0.0  ;;  %3200 = vst.msk [vmem:[%s5703_s30 + $0x1c] sm:$0xf] %vm3192_vm8, %v3851_v19  ;;  %v3236_v9 = vadd.f32 %v3235_v4, %v3234_v63 }
 0x1f9   : > { %v4314_v13 = vpop.f32.mrb[10].mxu0  ;;  %v4346_v10 = vadd.f32 %v2898_v52, %v5679_v31  ;;  %v3304_v39 = vmul.f32 %v3039_v57, %v3039_v57  ;;  %3198 = vst.msk [vmem:[%s5703_s30 + $0x14] sm:$0xf] %vm3192_vm8, %v3849_v3  ;;  %v3338_v58 = vsel %vm3225_vm9, %v3302_v11, 0.0  ;;  %v3340_v31 = vsel %vm3225_vm9, %v3303_v54, 0.0 }
 0x1fa   : > { %v4347_v51 = vadd.f32 %v4314_v13, %v5681_v26  ;;  %v2901_v33 = vpop.f32.mrb[11].mxu0  ;;  %v3042_v42 = vadd.f32 %v4345_v21, %v5696_v16  ;;  %v3238_v15 = vadd.f32 %v3237_v24, %v3236_v9  ;;  %v3339_v27 = vadd.f32 %v3338_v58, %v3337_v36 }
 0x1fb   : > { %v4348_v45 = vadd.f32 %v2901_v33, %v5683_v29  ;;  %v3040_v6 = vadd.f32 %v4346_v10, %v5696_v16  ;;  %v3239_v26 = vsel %vm3225_vm9, %v3039_v57, 0.0  ;;  %v3342_v46 = vsel %vm3225_vm9, %v3304_v39, 0.0 }
 0x1fc   : > { %v3043_v7 = vadd.f32 %v4347_v51, %v5696_v16  ;;  %v3854_v60 = vpack.c.bf16 %v3042_v42, %v3042_v42  ;;  %v3341_v28 = vadd.f32 %v3340_v31, %v3339_v27  ;;  %v3240_v38 = vadd.f32 %v3239_v26, %v3238_v15 }
 0x1fd   : > { %v3041_v14 = vadd.f32 %v4348_v45, %v5696_v16  ;;  %v3852_v25 = vpack.c.bf16 %v3040_v6, %v3040_v6  ;;  %v3241_v29 = vsel %vm3225_vm9, %v3040_v6, 0.0  ;;  %v3245_v47 = vsel %vm3225_vm9, %v3042_v42, 0.0 }
 0x1fe   : > { %3203 = vst.msk [vmem:[%s5703_s30 + $0x28] sm:$0xf] %vm3192_vm8, %v3854_v60  ;;  %v3305_v32 = vmul.f32 %v3040_v6, %v3040_v6  ;;  %v3855_v18 = vpack.c.bf16 %v3043_v7, %v3043_v7  ;;  %v3307_v55 = vmul.f32 %v3042_v42, %v3042_v42  ;;  %v3242_v12 = vadd.f32 %v3241_v29, %v3240_v38 }
 0x1ff   : > { %v4317_v43 = vpop.f32.mrb[12].mxu0  ;;  %3201 = vst.msk [vmem:[%s5703_s30 + $0x20] sm:$0xf] %vm3192_vm8, %v3852_v25  ;;  %v3343_v23 = vadd.f32 %v3342_v46, %v3341_v28  ;;  %v3853_v59 = vpack.c.bf16 %v3041_v14, %v3041_v14  ;;  %v3243_v2 = vsel %vm3225_vm9, %v3041_v14, 0.0  ;;  %v3306_v61 = vmul.f32 %v3041_v14, %v3041_v14 }
 0x200   : > { %v2914_v35 = vpop.f32.mrb[13].mxu0  ;;  %v3344_v48 = vsel %vm3225_vm9, %v3305_v32, 0.0  ;;  %3204 = vst.msk [vmem:[%s5703_s30 + $0x2c] sm:$0xf] %vm3192_vm8, %v3855_v18  ;;  %v4349_v56 = vadd.f32 %v4317_v43, %v5685_v44  ;;  %v3308_v34 = vmul.f32 %v3043_v7, %v3043_v7  ;;  %v3244_v37 = vadd.f32 %v3243_v2, %v3242_v12 }
 0x201   : > { %v4318_v53 = vpop.f32.mrb[14].mxu0  ;;  %v3345_v17 = vadd.f32 %v3344_v48, %v3343_v23  ;;  %3202 = vst.msk [vmem:[%s5703_s30 + $0x24] sm:$0xf] %vm3192_vm8, %v3853_v59  ;;  %v4350_v41 = vadd.f32 %v2914_v35, %v5687_v8  ;;  %v3346_v20 = vsel %vm3225_vm9, %v3306_v61, 0.0  ;;  %v3348_v63 = vsel %vm3225_vm9, %v3307_v55, 0.0 }
 0x202   : > { %v2917_v50 = vpop.f32.mrb[15].mxu0  ;;  %v3046_v0 = vadd.f32 %v4349_v56, %v5696_v16  ;;  %v4351_v22 = vadd.f32 %v4318_v53, %v5689_v1  ;;  %v3246_v57 = vadd.f32 %v3245_v47, %v3244_v37  ;;  %v3247_v5 = vsel %vm3225_vm9, %v3043_v7, 0.0 }
 0x203   : > { %v4352_v30 = vadd.f32 %v2917_v50, %v5691_v40  ;;  %v3347_v44 = vadd.f32 %v3346_v20, %v3345_v17  ;;  %v3044_v62 = vadd.f32 %v4350_v41, %v5696_v16  ;;  %v3350_v40 = vsel %vm3225_vm9, %v3308_v34, 0.0 }
 0x204   : > { %v3858_v8 = vpack.c.bf16 %v3046_v0, %v3046_v0  ;;  %v3047_v49 = vadd.f32 %v4351_v22, %v5696_v16  ;;  %v3248_v19 = vadd.f32 %v3247_v5, %v3246_v57  ;;  %v3311_v51 = vmul.f32 %v3046_v0, %v3046_v0 }
 0x205   : > { %v3349_v54 = vadd.f32 %v3348_v63, %v3347_v44  ;;  %v3856_v36 = vpack.c.bf16 %v3044_v62, %v3044_v62  ;;  %v3249_v1 = vsel %vm3225_vm9, %v3044_v62, 0.0  ;;  %v3309_v52 = vmul.f32 %v3044_v62, %v3044_v62 }
 0x206   : > { %3207 = vst.msk [vmem:[%s5703_s30 + $0x38] sm:$0xf] %vm3192_vm8, %v3858_v8  ;;  %v3859_v3 = vpack.c.bf16 %v3047_v49, %v3047_v49  ;;  %v3250_v21 = vadd.f32 %v3249_v1, %v3248_v19  ;;  %v3045_v24 = vadd.f32 %v4352_v30, %v5696_v16  ;;  %v3253_v25 = vsel %vm3225_vm9, %v3046_v0, 0.0 }
 0x207   : > { %v4185_v4 = vpop.f32.mrb[16].mxu1  ;;  %v4321_v11 = vpop.f32.mrb[16].mxu0  ;;  %3205 = vst.msk [vmem:[%s5703_s30 + $0x30] sm:$0xf] %vm3192_vm8, %v3856_v36  ;;  %v3351_v13 = vadd.f32 %v3350_v40, %v3349_v54  ;;  %v3352_v33 = vsel %vm3225_vm9, %v3309_v52, 0.0  ;;  %v3312_v38 = vmul.f32 %v3047_v49, %v3047_v49  ;;  %v3356_v47 = vsel %vm3225_vm9, %v3311_v51, 0.0 }
 0x208   : > { %v2072_v9 = vpop.f32.mrb[17].mxu1  ;;  %v2930_v10 = vpop.f32.mrb[17].mxu0  ;;  %3208 = vst.msk [vmem:[%s5703_s30 + $0x3c] sm:$0xf] %vm3192_vm8, %v3859_v3  ;;  %v4353_v39 = vadd.f32 %v4321_v11, %v4185_v4  ;;  %v3857_v27 = vpack.c.bf16 %v3045_v24, %v3045_v24  ;;  %v3251_v6 = vsel %vm3225_vm9, %v3045_v24, 0.0  ;;  %v3310_v60 = vmul.f32 %v3045_v24, %v3045_v24 }
 0x209   : > { %v4354_v58 = vadd.f32 %v2930_v10, %v2072_v9  ;;  %v4186_v42 = vpop.f32.mrb[18].mxu1  ;;  %v4322_v45 = vpop.f32.mrb[18].mxu0  ;;  %v3353_v15 = vadd.f32 %v3352_v33, %v3351_v13  ;;  %v3252_v26 = vadd.f32 %v3251_v6, %v3250_v21  ;;  %v3255_v55 = vsel %vm3225_vm9, %v3047_v49, 0.0 }
 0x20a   : > { %v2075_v7 = vpop.f32.mrb[19].mxu1  ;;  %v2933_v31 = vpop.f32.mrb[19].mxu0  ;;  %v3050_v14 = vadd.f32 %v4353_v39, %v5696_v16  ;;  %3206 = vst.msk [vmem:[%s5703_s30 + $0x34] sm:$0xf] %vm3192_vm8, %v3857_v27  ;;  %v4355_v29 = vadd.f32 %v4322_v45, %v4186_v42  ;;  %v3354_v18 = vsel %vm3225_vm9, %v3310_v60, 0.0  ;;  %v3358_v17 = vsel %vm3225_vm9, %v3312_v38, 0.0 }
 0x20b   : > { %v3048_v28 = vadd.f32 %v4354_v58, %v5696_v16  ;;  %v4356_v46 = vadd.f32 %v2933_v31, %v2075_v7  ;;  %v3254_v32 = vadd.f32 %v3253_v25, %v3252_v26  ;;  %v3355_v12 = vadd.f32 %v3354_v18, %v3353_v15 }
 0x20c   : > { %v3862_v43 = vpack.c.bf16 %v3050_v14, %v3050_v14  ;;  %v3051_v2 = vadd.f32 %v4355_v29, %v5696_v16  ;;  %v3261_v20 = vsel %vm3225_vm9, %v3050_v14, 0.0  ;;  %v3315_v62 = vmul.f32 %v3050_v14, %v3050_v14 }
 0x20d   : > { %v3860_v23 = vpack.c.bf16 %v3048_v28, %v3048_v28  ;;  %v3257_v59 = vsel %vm3225_vm9, %v3048_v28, 0.0  ;;  %v3256_v35 = vadd.f32 %v3255_v55, %v3254_v32  ;;  %v3313_v48 = vmul.f32 %v3048_v28, %v3048_v28 }
 0x20e   : > { %3211 = vst.msk [vmem:[%s5703_s30 + $0x48] sm:$0xf] %vm3192_vm8, %v3862_v43  ;;  %v3049_v61 = vadd.f32 %v4356_v46, %v5696_v16  ;;  %v3357_v34 = vadd.f32 %v3356_v47, %v3355_v12  ;;  %v3863_v30 = vpack.c.bf16 %v3051_v2, %v3051_v2  ;;  %v3316_v3 = vmul.f32 %v3051_v2, %v3051_v2 }
 0x20f   : > { %v4189_v56 = vpop.f32.mrb[20].mxu1  ;;  %v4325_v53 = vpop.f32.mrb[20].mxu0  ;;  %3209 = vst.msk [vmem:[%s5703_s30 + $0x40] sm:$0xf] %vm3192_vm8, %v3860_v23  ;;  %v3258_v0 = vadd.f32 %v3257_v59, %v3256_v35  ;;  %v3360_v22 = vsel %vm3225_vm9, %v3313_v48, 0.0  ;;  %v3263_v9 = vsel %vm3225_vm9, %v3051_v2, 0.0 }
 0x210   : > { %v4357_v37 = vadd.f32 %v4325_v53, %v4189_v56  ;;  %v2088_v41 = vpop.f32.mrb[21].mxu1  ;;  %v2946_v50 = vpop.f32.mrb[21].mxu0  ;;  %v3359_v63 = vadd.f32 %v3358_v17, %v3357_v34  ;;  %v3861_v5 = vpack.c.bf16 %v3049_v61, %v3049_v61  ;;  %v3259_v8 = vsel %vm3225_vm9, %v3049_v61, 0.0  ;;  %3212 = vst.msk [vmem:[%s5703_s30 + $0x4c] sm:$0xf] %vm3192_vm8, %v3863_v30 }
 0x211   : > { %v4190_v57 = vpop.f32.mrb[22].mxu1  ;;  %v4326_v44 = vpop.f32.mrb[22].mxu0  ;;  %v3260_v36 = vadd.f32 %v3259_v8, %v3258_v0  ;;  %v3314_v19 = vmul.f32 %v3049_v61, %v3049_v61  ;;  %v4358_v40 = vadd.f32 %v2946_v50, %v2088_v41  ;;  %v3364_v39 = vsel %vm3225_vm9, %v3315_v62, 0.0 }
 0x212   : > { %v2091_v49 = vpop.f32.mrb[23].mxu1  ;;  %v2949_v54 = vpop.f32.mrb[23].mxu0  ;;  %v3054_v1 = vadd.f32 %v4357_v37, %v5696_v16  ;;  %v3361_v52 = vadd.f32 %v3360_v22, %v3359_v63  ;;  %3210 = vst.msk [vmem:[%s5703_s30 + $0x44] sm:$0xf] %vm3192_vm8, %v3861_v5  ;;  %v4359_v4 = vadd.f32 %v4326_v44, %v4190_v57  ;;  %v3366_v27 = vsel %vm3225_vm9, %v3316_v3, 0.0 }
 0x213   : > { %v4360_v11 = vadd.f32 %v2949_v54, %v2091_v49  ;;  %v3262_v21 = vadd.f32 %v3261_v20, %v3260_v36  ;;  %v3362_v13 = vsel %vm3225_vm9, %v3314_v19, 0.0  ;;  %v3052_v51 = vadd.f32 %v4358_v40, %v5696_v16 }
 0x214   : > { %v3866_v24 = vpack.c.bf16 %v3054_v1, %v3054_v1  ;;  %v3363_v10 = vadd.f32 %v3362_v13, %v3361_v52  ;;  %v3055_v33 = vadd.f32 %v4359_v4, %v5696_v16  ;;  %v3269_v14 = vsel %vm3225_vm9, %v3054_v1, 0.0 }
 0x215   : > { %v3264_v58 = vadd.f32 %v3263_v9, %v3262_v21  ;;  %v3053_v42 = vadd.f32 %v4360_v11, %v5696_v16  ;;  %v3864_v7 = vpack.c.bf16 %v3052_v51, %v3052_v51  ;;  %v3265_v31 = vsel %vm3225_vm9, %v3052_v51, 0.0 }
 0x216   : > { %3215 = vst.msk [vmem:[%s5703_s30 + $0x58] sm:$0xf] %vm3192_vm8, %v3866_v24  ;;  %v3365_v6 = vadd.f32 %v3364_v39, %v3363_v10  ;;  %v3317_v25 = vmul.f32 %v3052_v51, %v3052_v51  ;;  %v3867_v38 = vpack.c.bf16 %v3055_v33, %v3055_v33  ;;  %v3319_v47 = vmul.f32 %v3054_v1, %v3054_v1 }
 0x217   : > { %v4193_v45 = vpop.f32.mrb[24].mxu1  ;;  %v4329_v15 = vpop.f32.mrb[24].mxu0  ;;  %v3266_v28 = vadd.f32 %v3265_v31, %v3264_v58  ;;  %3213 = vst.msk [vmem:[%s5703_s30 + $0x50] sm:$0xf] %vm3192_vm8, %v3864_v7  ;;  %v3865_v18 = vpack.c.bf16 %v3053_v42, %v3053_v42  ;;  %v3267_v43 = vsel %vm3225_vm9, %v3053_v42, 0.0  ;;  %v3318_v35 = vmul.f32 %v3053_v42, %v3053_v42 }
 0x218   : > { %v2104_v26 = vpop.f32.mrb[25].mxu1  ;;  %v2962_v60 = vpop.f32.mrb[25].mxu0  ;;  %v3367_v32 = vadd.f32 %v3366_v27, %v3365_v6  ;;  %v3368_v23 = vsel %vm3225_vm9, %v3317_v25, 0.0  ;;  %3216 = vst.msk [vmem:[%s5703_s30 + $0x5c] sm:$0xf] %vm3192_vm8, %v3867_v38  ;;  %v4361_v48 = vadd.f32 %v4329_v15, %v4193_v45  ;;  %v3320_v61 = vmul.f32 %v3055_v33, %v3055_v33 }
 0x219   : > { %v4194_v29 = vpop.f32.mrb[26].mxu1  ;;  %v4330_v46 = vpop.f32.mrb[26].mxu0  ;;  %v3268_v59 = vadd.f32 %v3267_v43, %v3266_v28  ;;  %3214 = vst.msk [vmem:[%s5703_s30 + $0x54] sm:$0xf] %vm3192_vm8, %v3865_v18  ;;  %v4362_v56 = vadd.f32 %v2962_v60, %v2104_v26  ;;  %v3370_v34 = vsel %vm3225_vm9, %v3318_v35, 0.0  ;;  %v3271_v50 = vsel %vm3225_vm9, %v3055_v33, 0.0 }
 0x21a   : > { %v2107_v55 = vpop.f32.mrb[27].mxu1  ;;  %v2965_v12 = vpop.f32.mrb[27].mxu0  ;;  %v3369_v2 = vadd.f32 %v3368_v23, %v3367_v32  ;;  %v4363_v53 = vadd.f32 %v4330_v46, %v4194_v29  ;;  %v3058_v37 = vadd.f32 %v4361_v48, %v5696_v16  ;;  %v3372_v30 = vsel %vm3225_vm9, %v3319_v47, 0.0 }
 0x21b   : > { %v3270_v17 = vadd.f32 %v3269_v14, %v3268_v59  ;;  %v4364_v41 = vadd.f32 %v2965_v12, %v2107_v55  ;;  %v3056_v0 = vadd.f32 %v4362_v56, %v5696_v16  ;;  %v3374_v1 = vsel %vm3225_vm9, %v3320_v61, 0.0 }
 0x21c   : > { %v3371_v20 = vadd.f32 %v3370_v34, %v3369_v2  ;;  %v3059_v22 = vadd.f32 %v4363_v53, %v5696_v16  ;;  %v3870_v57 = vpack.c.bf16 %v3058_v37, %v3058_v37  ;;  %v3323_v58 = vmul.f32 %v3058_v37, %v3058_v37 }
 0x21d   : > { %v3272_v44 = vadd.f32 %v3271_v50, %v3270_v17  ;;  %v3868_v8 = vpack.c.bf16 %v3056_v0, %v3056_v0  ;;  %v3273_v49 = vsel %vm3225_vm9, %v3056_v0, 0.0  ;;  %v3321_v54 = vmul.f32 %v3056_v0, %v3056_v0 }
 0x21e   : > { %v3373_v5 = vadd.f32 %v3372_v30, %v3371_v20  ;;  %3219 = vst.msk [vmem:[%s5703_s30 + $0x68] sm:$0xf] %vm3192_vm8, %v3870_v57  ;;  %v3871_v52 = vpack.c.bf16 %v3059_v22, %v3059_v22  ;;  %v3057_v13 = vadd.f32 %v4364_v41, %v5696_v16  ;;  %v3277_v26 = vsel %vm3225_vm9, %v3058_v37, 0.0 }
 0x21f   : > { %v4197_v62 = vpop.f32.mrb[28].mxu1  ;;  %v4333_v63 = vpop.f32.mrb[28].mxu0  ;;  %v3274_v40 = vadd.f32 %v3273_v49, %v3272_v44  ;;  %3217 = vst.msk [vmem:[%s5703_s30 + $0x60] sm:$0xf] %vm3192_vm8, %v3868_v8  ;;  %v3376_v21 = vsel %vm3225_vm9, %v3321_v54, 0.0  ;;  %v3324_v60 = vmul.f32 %v3059_v22, %v3059_v22  ;;  %v3279_v46 = vsel %vm3225_vm9, %v3059_v22, 0.0 }
 0x220   : > { %v2120_v36 = vpop.f32.mrb[29].mxu1  ;;  %v2978_v19 = vpop.f32.mrb[29].mxu0  ;;  %v3375_v11 = vadd.f32 %v3374_v1, %v3373_v5  ;;  %3220 = vst.msk [vmem:[%s5703_s30 + $0x6c] sm:$0xf] %vm3192_vm8, %v3871_v52  ;;  %v4365_v10 = vadd.f32 %v4333_v63, %v4197_v62  ;;  %v3869_v45 = vpack.c.bf16 %v3057_v13, %v3057_v13  ;;  %v3275_v15 = vsel %vm3225_vm9, %v3057_v13, 0.0 }
 0x221   : > { %v4198_v3 = vpop.f32.mrb[30].mxu1  ;;  %v4334_v4 = vpop.f32.mrb[30].mxu0  ;;  %v4366_v51 = vadd.f32 %v2978_v19, %v2120_v36  ;;  %v3276_v27 = vadd.f32 %v3275_v15, %v3274_v40  ;;  %v3322_v6 = vmul.f32 %v3057_v13, %v3057_v13  ;;  %v3380_v43 = vsel %vm3225_vm9, %v3323_v58, 0.0 }
 0x222   : > { %v2123_v24 = vpop.f32.mrb[31].mxu1  ;;  %v2981_v9 = vpop.f32.mrb[31].mxu0  ;;  %v4367_v33 = vadd.f32 %v4334_v4, %v4198_v3  ;;  %v3377_v42 = vadd.f32 %v3376_v21, %v3375_v11  ;;  %v3062_v7 = vadd.f32 %v4365_v10, %v5696_v16  ;;  %3218 = vst.msk [vmem:[%s5703_s30 + $0x64] sm:$0xf] %vm3192_vm8, %v3869_v45 }
 0x223   : > { %v4368_v39 = vadd.f32 %v2981_v9, %v2123_v24  ;;  %v3060_v31 = vadd.f32 %v4366_v51, %v5696_v16  ;;  %v3278_v25 = vadd.f32 %v3277_v26, %v3276_v27  ;;  %v3378_v38 = vsel %vm3225_vm9, %v3322_v6, 0.0 }
 0x224   : > { %v3063_v14 = vadd.f32 %v4367_v33, %v5696_v16  ;;  %v3874_v29 = vpack.c.bf16 %v3062_v7, %v3062_v7  ;;  %v3379_v47 = vadd.f32 %v3378_v38, %v3377_v42  ;;  %v3327_v17 = vmul.f32 %v3062_v7, %v3062_v7 }
 0x225   : > { %v3061_v28 = vadd.f32 %v4368_v39, %v5696_v16  ;;  %v3872_v32 = vpack.c.bf16 %v3060_v31, %v3060_v31  ;;  %v3281_v18 = vsel %vm3225_vm9, %v3060_v31, 0.0  ;;  %v3280_v55 = vadd.f32 %v3279_v46, %v3278_v25 }
 0x226   : > { %3223 = vst.msk [vmem:[%s5703_s30 + $0x78] sm:$0xf] %vm3192_vm8, %v3874_v29  ;;  %v3325_v12 = vmul.f32 %v3060_v31, %v3060_v31  ;;  %v3875_v23 = vpack.c.bf16 %v3063_v14, %v3063_v14  ;;  %v3382_v16 = vsel %vm3225_vm9, %v3324_v60, 0.0  ;;  %v3381_v59 = vadd.f32 %v3380_v43, %v3379_v47 }
 0x227   : > { %3221 = vst.msk [vmem:[%s5703_s30 + $0x70] sm:$0xf] %vm3192_vm8, %v3872_v32  ;;  %v3873_v35 = vpack.c.bf16 %v3061_v28, %v3061_v28  ;;  %v3282_v48 = vadd.f32 %v3281_v18, %v3280_v55  ;;  %v3283_v61 = vsel %vm3225_vm9, %v3061_v28, 0.0  ;;  %v3326_v56 = vmul.f32 %v3061_v28, %v3061_v28 }
 0x228   : > { %v3384_v2 = vsel %vm3225_vm9, %v3325_v12, 0.0  ;;  %3224 = vst.msk [vmem:[%s5703_s30 + $0x7c] sm:$0xf] %vm3192_vm8, %v3875_v23  ;;  %v3383_v53 = vadd.f32 %v3382_v16, %v3381_v59  ;;  %v3285_v41 = vsel %vm3225_vm9, %v3062_v7, 0.0  ;;  %v3328_v20 = vmul.f32 %v3063_v14, %v3063_v14 }
 0x229   : > { %3222 = vst.msk [vmem:[%s5703_s30 + $0x74] sm:$0xf] %vm3192_vm8, %v3873_v35  ;;  %v3284_v34 = vadd.f32 %v3283_v61, %v3282_v48  ;;  %v3386_v37 = vsel %vm3225_vm9, %v3326_v56, 0.0  ;;  %v3287_v22 = vsel %vm3225_vm9, %v3063_v14, 0.0  ;;  %v3388_v57 = vsel %vm3225_vm9, %v3327_v17, 0.0 }
 0x22a   : > { %v3385_v50 = vadd.f32 %v3384_v2, %v3383_v53  ;;  %v3390_v63 = vsel %vm3225_vm9, %v3328_v20, 0.0 }
 0x22b   : > { %v3286_v0 = vadd.f32 %v3285_v41, %v3284_v34 }
 0x22c   : > { %v3387_v30 = vadd.f32 %v3386_v37, %v3385_v50 }
 0x22d   : > { %v3288_v44 = vadd.f32 %v3287_v22, %v3286_v0 }
 0x22e   : > { %v3389_v62 = vadd.f32 %v3388_v57, %v3387_v30 }
 0x22f   : > { %v3289_v5 = vrot.slane %v3288_v44, 4 }
 0x230   : > { %v3391_v8 = vadd.f32 %v3390_v63, %v3389_v62 }
 0x231   : > { %v3290_v49 = vadd.f32 %v3289_v5, %v3288_v44 }
 0x232   : > { %v3392_v54 = vrot.slane %v3391_v8, 4 }
 0x233   : > { %v3291_v36 = vrot.slane %v3290_v49, 2 }
 0x234   : > { %v3393_v19 = vadd.f32 %v3392_v54, %v3391_v8 }
 0x235   : > { %v3292_v1 = vadd.f32 %v3291_v36, %v3290_v49 }
 0x236   : > { %v3394_v40 = vrot.slane %v3393_v19, 2 }
 0x237   : > { %v3293_v52 = vrot.slane %v3292_v1, 1 }
 0x238   : > { %v3395_v3 = vadd.f32 %v3394_v40, %v3393_v19 }
 0x239   : > { %v3294_v4 = vadd.f32 %v3293_v52, %v3292_v1 }
 0x23a   : > { %v3396_v11 = vrot.slane %v3395_v3, 1 }
 0x23b   : > { %3296 = vst.msk [vmem:[%s302_s8] sm:$0x1] %vm3295_vm10, %v3294_v4 }
 0x23c   : > { %v3397_v21 = vadd.f32 %v3396_v11, %v3395_v3 }
 0x23e   : > { %3398 = vst.msk [vmem:[%s308_s11] sm:$0x1] %vm3295_vm10, %v3397_v21 }
 0x23f PF: > { %s16_s20 = sadd.s32 1, %s4672_s20   ;;  %s5972_s18 = smov %s4668_s19 }
 0x240   : > { %p13_p5 = scmp.ge.s32.totalorder %s16_s20, 4   ;;  %s5973_s19 = smov %s5975_s21 }
 0x242   :  { %15 = sbr.rel (!%p13_p5) target bundleno = 2 (0x2), region = 100 }

// kernel: double_conv_forward.6
= control target key start
LH: loop header
LB: loop body
LE: loop exit
PB: predicated region body
PF: predicated region fallthrough
CT: control target
= control target key end

     0   :  { %s4561_s18 = smov 0   ;;  %s4563_s19 = smov 0   ;;  %s5722_s0 = inlined_call_operand.vmem [shape: bf16[2,18,18,16], index: 0, kind: input, shape index: {}]   ;;  %s5723_s1 = inlined_call_operand.vmem [shape: bf16[9,16,16], index: 1, kind: input, shape index: {}]   ;;  %s5724_s2 = inlined_call_operand.vmem [shape: f32[1,16], index: 2, kind: input, shape index: {}]   ;;  %s5725_s3 = inlined_call_operand.vmem [shape: f32[2,256,16], index: 3, kind: output, shape index: {0}]   ;;  %s5726_s4 = inlined_call_operand.vmem [shape: f32[2,1,16], index: 4, kind: output, shape index: {1}]   ;;  %s5727_s5 = inlined_call_operand.vmem [shape: f32[2,1,16], index: 5, kind: output, shape index: {2}]  }
   0x1   :  { %s4565_s20 = smov 0  }
   0x2 LB: > { %s28_s21 = sadd.s32 1, %s4525_s19  ;;  %p3485_p0 = scmp.ge.s32.totalorder %s4529_s20, 1  ;;  %s4529_s20 = sphi %s4565_s20, %s16_s20   ;;  %s4525_s19 = sphi %s4563_s19, %s5803_s19   ;;  %s4521_s18 = sphi %s4561_s18, %s5802_s18  }
   0x3   : > { %p30_p1 = scmp.ge.s32.totalorder %s28_s21, 2  ;;  %p227_p2 = scmp.lt.s32.totalorder %s4529_s20, 3 }
   0x5   : > { %s5805_s21 = smov (%p30_p1, %s28_s21), 0  ;;  %p228_p3 = pnand %p3485_p0, %p227_p2 }
   0x7   : > { %231 = sbr.rel (%p228_p3) target bundleno = 573 (0x23d), region = 32 }
   0xe   : > { %v4476_v0 = vld [vmem:[%s5723_s1 + $0x8] sm:$0xff]   ;;  %p277_p4 = scmp.lt.s32.totalorder %s4521_s18, 1  ;;  %v4477_v1 = vld [vmem:[%s5723_s1 + $0x20] sm:$0xff]   ;;  %vm366_vm0 = vsmask.f32 3328  ;;  %vm810_vm2 = vcmask 130048  }
   0xf   : > { %3887 = vmatprep.subr.bf16.mxu1 %v4476_v0  ;;  %v4590_v2 = vld [vmem:[%s5723_s1] sm:$0xff]   ;;  %4023 = vmatprep.subr.bf16.mxu0 %v4477_v1  ;;  %v4597_v3 = vld [vmem:[%s5723_s1 + $0x28] sm:$0xff]   ;;  %vm367_vm1 = vsmask.f32 7440  ;;  %vm1331_vm4 = vcmask 1042432   ;;  %vm1332_vm5 = vcmask 1046532  }
  0x10   : > { %s5807_s18 = smov (!%p277_p4, %s4521_s18), 1  ;;  %3888 = vmatpush3.bf16.msra.mxu1 %v4476_v0  ;;  %4024 = vmatpush3.bf16.msra.mxu0 %v4477_v1  ;;  %vm4635_vm3 = vmor %vm366_vm0, %vm367_vm1  ;;  %vm3200_vm7 = vcmask 122880  }
  0x11   : > { %s4451_s28 = smul.u32 216, %s5807_s18  ;;  %3921 = vmatprep.subr.bf16.mxu1 %v4590_v2  ;;  %4057 = vmatprep.subr.bf16.mxu0 %v4597_v3  ;;  %vm4819_vm6 = vmor %vm1331_vm4, %vm1332_vm5  ;;  %s3733_s25 = sshll.u32 %s5807_s18, 8 }
  0x12   : > { %s5535_s30 = scalar_lea.vmem %s5725_s3, %s3733_s25  ;;  %s308_s11 = scalar_lea.vmem %s5727_s5, %s5807_s18 }
  0x13   : > { %s4602_s8 = scalar_lea.vmem %s5722_s0, %s4451_s28 }
  0x14   : > { %v4606_v4 = vld [vmem:[%s4602_s8] sm:$0xf]  ;;  %v4609_v5 = vld [vmem:[%s4602_s8 + $0x4] sm:$0xf]  ;;  %v312_v6 = vld [vmem:[%s4602_s8 + $0x8] sm:$0x1] }
  0x15   : > { %v370_v7 = vshrl.u32 %v4606_v4, 16  ;;  %v373_v8 = vshll.u32 %v4606_v4, 16  ;;  %v379_v9 = vshll.u32 %v4609_v5, 16  ;;  %v383_v10 = vshrl.u32 %v4609_v5, 16  ;;  %v4617_v11 = vld [vmem:[%s4602_s8 + $0xc] sm:$0xf] }
  0x16   : > { %v389_v12 = vshll.u32 %v312_v6, 16  ;;  %v4620_v13 = vld [vmem:[%s4602_s8 + $0x10] sm:$0xf]  ;;  %v4623_v14 = vld [vmem:[%s4602_s8 + $0x14] sm:$0x1]  ;;  %v394_v20 = vshrl.u32 %v4617_v11, 16 }
  0x17   : > { %v372_v15 = vrot.slane %v370_v7, 4  ;;  %v375_v16 = vrot.slane %v373_v8, 5  ;;  %v381_v17 = vrot.slane %v379_v9, 5  ;;  %v385_v18 = vrot.slane %v383_v10, 4  ;;  %v4631_v27 = vld [vmem:[%s4602_s8 + $0x18] sm:$0xf] }
  0x18   : > { %v391_v19 = vrot.slane %v389_v12, 5  ;;  %v397_v21 = vshll.u32 %v4617_v11, 16  ;;  %v403_v22 = vshll.u32 %v4620_v13, 16  ;;  %v407_v25 = vshrl.u32 %v4620_v13, 16  ;;  %v4644_v33 = vld [vmem:[%s4602_s8 + $0x1c] sm:$0xf] }
  0x19   : > { %v376_v23 = vor.u32 %v375_v16, %v372_v15  ;;  %v386_v24 = vor.u32 %v385_v18, %v381_v17  ;;  %v413_v26 = vshll.u32 %v4623_v14, 16  ;;  %v396_v29 = vrot.slane %v394_v20, 4  ;;  %v4648_v40 = vld [vmem:[%s4602_s8 + $0x20] sm:$0x1]  ;;  %v4658_v51 = vld [vmem:[%s4602_s8 + $0x24] sm:$0xf] }
  0x1a   : > { %v399_v30 = vrot.slane %v397_v21, 5  ;;  %v405_v31 = vrot.slane %v403_v22, 5  ;;  %v4641_v32 = vcombine.low %v4617_v11, %v4620_v13  ;;  %v409_v36 = vrot.slane %v407_v25, 4  ;;  %v4663_v56 = vld [vmem:[%s4602_s8 + $0x28] sm:$0xf]  ;;  %v4684_v12 = vld [vmem:[%s5723_s1 + $0x10] sm:$0xff]  }
  0x1b   : > { %v377_v34 = vrot.slane %v376_v23, 4  ;;  %v387_v35 = vrot.slane %v386_v24, 4  ;;  %v415_v37 = vrot.slane %v413_v26, 5  ;;  %v1346_v39 = vrot.slane %v4623_v14, 5  ;;  %v4671_v61 = vld [vmem:[%s4602_s8 + $0x2c] sm:$0x1] }
  0x1c   : > { %v400_v38 = vor.u32 %v399_v30, %v396_v29  ;;  %v418_v41 = vshrl.u32 %v4631_v27, 16  ;;  %v421_v42 = vshll.u32 %v4631_v27, 16  ;;  %v410_v45 = vor.u32 %v409_v36, %v405_v31  ;;  %v4677_v6 = vld [vmem:[%s4602_s8 + $0x30] sm:$0xf]  ;;  %v4696_v23 = vld [vmem:[%s4602_s8 + $0x38] sm:$0x1] }
  0x1d   : > { %v382_v43 = vsel %vm4635_vm3, %v377_v34, %v381_v17  ;;  %v392_v44 = vsel %vm4635_vm3, %v387_v35, %v391_v19  ;;  %v427_v46 = vshll.u32 %v4644_v33, 16  ;;  %v431_v54 = vshrl.u32 %v4644_v33, 16  ;;  %v4689_v19 = vld [vmem:[%s4602_s8 + $0x34] sm:$0xf] }
  0x1e   : > { %v3491_v47 = vcombine.low %v382_v43, %v392_v44  ;;  %v401_v48 = vrot.slane %v400_v38, 4  ;;  %v420_v49 = vrot.slane %v418_v41, 4  ;;  %v423_v50 = vrot.slane %v421_v42, 5  ;;  %v4711_v43 = vld [vmem:[%s4602_s8 + $0x40] sm:$0xf] }
  0x1f   : > { %v411_v52 = vrot.slane %v410_v45, 4  ;;  %v429_v53 = vrot.slane %v427_v46, 5  ;;  %v437_v55 = vshll.u32 %v4648_v40, 16  ;;  %v1350_v59 = vrot.slane %v4644_v33, 5 }
  0x20   : > { %3889 = vmatprep.mubr.msk.bf16.mxu1 %vm810_vm2, %v3491_v47  ;;  %v406_v57 = vsel %vm4635_vm3, %v401_v48, %v405_v31  ;;  %v424_v58 = vor.u32 %v423_v50, %v420_v49  ;;  %v1353_v60 = vrot.slane %v4648_v40, 5  ;;  %v433_v63 = vrot.slane %v431_v54, 4  ;;  %v4718_v48 = vld [vmem:[%s5723_s1 + $0x30] sm:$0xff]  }
  0x21   : > { %v416_v62 = vsel %vm4635_vm3, %v411_v52, %v415_v37  ;;  %v439_v0 = vrot.slane %v437_v55, 5  ;;  %v442_v1 = vshrl.u32 %v4658_v51, 16  ;;  %v445_v9 = vshll.u32 %v4658_v51, 16  ;;  %v4704_v37 = vld [vmem:[%s4602_s8 + $0x3c] sm:$0xf] }
  0x22   : > { %v3492_v7 = vcombine.low %v406_v57, %v416_v62  ;;  %v425_v8 = vrot.slane %v424_v58, 4  ;;  %v451_v10 = vshll.u32 %v4663_v56, 16  ;;  %v434_v15 = vor.u32 %v433_v63, %v429_v53  ;;  %v4728_v57 = vld [vmem:[%s4602_s8 + $0x44] sm:$0x1]  ;;  %v4733_v63 = vld [vmem:[%s4602_s8 + $0x48] sm:$0xf] }
  0x23   : > { %v444_v16 = vrot.slane %v442_v1, 4  ;;  %v455_v17 = vshrl.u32 %v4663_v56, 16  ;;  %v461_v18 = vshll.u32 %v4671_v61, 16  ;;  %v447_v21 = vrot.slane %v445_v9, 5  ;;  %v4740_v9 = vld [vmem:[%s4602_s8 + $0x4c] sm:$0xf] }
  0x24   : > { %4025 = vmatprep.mubr.msk.bf16.mxu0 %vm810_vm2, %v3492_v7  ;;  %3890 = vmatmul.mubr.msk.bf16.vlgmr.msra.gmra.mrb[0].mxu1 %vm810_vm2, %v3492_v7  ;;  %v430_v20 = vsel %vm4635_vm3, %v425_v8, %v429_v53  ;;  %v453_v22 = vrot.slane %v451_v10, 5  ;;  %v466_v24 = vshrl.u32 %v4677_v6, 16  ;;  %v435_v25 = vrot.slane %v434_v15, 4 }
  0x25   : > { %3922 = vmatpush3.bf16.msra.mxu1 %v4590_v2  ;;  %v457_v26 = vrot.slane %v455_v17, 4  ;;  %v463_v29 = vrot.slane %v461_v18, 5  ;;  %v469_v30 = vshll.u32 %v4677_v6, 16  ;;  %v448_v31 = vor.u32 %v447_v21, %v444_v16 }
  0x26   : > { %v468_v34 = vrot.slane %v466_v24, 4  ;;  %v475_v35 = vshll.u32 %v4689_v19, 16  ;;  %v479_v36 = vshrl.u32 %v4689_v19, 16  ;;  %3955 = vmatprep.subr.bf16.mxu1 %v4684_v12  ;;  %v440_v38 = vsel %vm4635_vm3, %v435_v25, %v439_v0  ;;  %v4756_v25 = vld [vmem:[%s4602_s8 + $0x50] sm:$0x1] }
  0x27   : > { %v458_v41 = vor.u32 %v457_v26, %v453_v22  ;;  %v471_v2 = vrot.slane %v469_v30, 5  ;;  %v485_v42 = vshll.u32 %v4696_v23, 16  ;;  %v4713_v44 = vcombine.low %v430_v20, %v440_v38  ;;  %v4761_v30 = vld [vmem:[%s4602_s8 + $0x54] sm:$0xf]  ;;  %v4766_v38 = vld [vmem:[%s4602_s8 + $0x58] sm:$0xf] }
  0x28   : > { %v449_v45 = vrot.slane %v448_v31, 4  ;;  %v477_v46 = vrot.slane %v475_v35, 5  ;;  %v481_v47 = vrot.slane %v479_v36, 4  ;;  %v490_v53 = vshrl.u32 %v4704_v37, 16  ;;  %5762 = vst [vmem:[#allocation4_spill] sm:$0xff] %v4761_v30 }
  0x29   : > { %5760 = vst [vmem:[#allocation2_spill] sm:$0xff] %v4713_v44  ;;  %v459_v49 = vrot.slane %v458_v41, 4  ;;  %v472_v50 = vor.u32 %v471_v2, %v468_v34  ;;  %v487_v52 = vrot.slane %v485_v42, 5  ;;  %4026 = vmatmul.mubr.msk.bf16.vlgmr.msra.gmra.mrb[0].mxu0 %vm810_vm2, %v4713_v44  ;;  %3893 = vmatprep.mubr.msk.bf16.mxu1 %vm810_vm2, %v4713_v44  ;;  %v493_v58 = vshll.u32 %v4704_v37, 16 }
  0x2a   : > { %v454_v54 = vsel %vm4635_vm3, %v449_v45, %v453_v22  ;;  %v482_v55 = vor.u32 %v481_v47, %v477_v46  ;;  %v499_v62 = vshll.u32 %v4711_v43, 16  ;;  %4058 = vmatpush3.bf16.msra.mxu0 %v4597_v3  ;;  %v492_v7 = vrot.slane %v490_v53, 4 }
  0x2b   : > { %v464_v0 = vsel %vm4635_vm3, %v459_v49, %v463_v29  ;;  %v473_v1 = vrot.slane %v472_v50, 4  ;;  %v503_v8 = vshrl.u32 %v4711_v43, 16  ;;  %v495_v16 = vrot.slane %v493_v58, 5  ;;  %4091 = vmatprep.subr.bf16.mxu0 %v4718_v48 }
  0x2c   : > { %v4742_v10 = vcombine.low %v454_v54, %v464_v0  ;;  %v483_v15 = vrot.slane %v482_v55, 4  ;;  %v501_v17 = vrot.slane %v499_v62, 5  ;;  %v509_v20 = vshll.u32 %v4728_v57, 16  ;;  %v4779_v55 = vld [vmem:[%s4602_s8 + $0x5c] sm:$0x1] }
  0x2d   : > { %v478_v3 = vsel %vm4635_vm3, %v473_v1, %v477_v46  ;;  %v505_v18 = vrot.slane %v503_v8, 4  ;;  %v514_v21 = vshrl.u32 %v4733_v63, 16  ;;  %v496_v24 = vor.u32 %v495_v16, %v492_v7  ;;  %v4783_v62 = vld [vmem:[%s4602_s8 + $0x60] sm:$0xf] }
  0x2e   : > { %5761 = vst [vmem:[#allocation3_spill] sm:$0xff] %v4742_v10  ;;  %4029 = vmatprep.mubr.msk.bf16.mxu0 %vm810_vm2, %v4742_v10  ;;  %3894 = vmatmul.mubr.msk.bf16.gmra.mrb[4].mxu1 %vm810_vm2, %v4742_v10  ;;  %v488_v22 = vsel %vm4635_vm3, %v483_v15, %v487_v52  ;;  %v517_v26 = vshll.u32 %v4733_v63, 16  ;;  %v523_v29 = vshll.u32 %v4740_v9, 16  ;;  %v511_v35 = vrot.slane %v509_v20, 5  ;;  %v4788_v15 = vld [vmem:[%s4602_s8 + $0x64] sm:$0xf] }
  0x2f   : > { %v4763_v31 = vcombine.low %v478_v3, %v488_v22  ;;  %v506_v34 = vor.u32 %v505_v18, %v501_v17  ;;  %v516_v36 = vrot.slane %v514_v21, 4  ;;  %v497_v41 = vrot.slane %v496_v24, 4  ;;  %v4999_v10 = vld [vmem:[%s4602_s8 + $0xa8] sm:$0xf] }
  0x30   : > { %v519_v2 = vrot.slane %v517_v26, 5  ;;  %v525_v42 = vrot.slane %v523_v29, 5  ;;  %v527_v45 = vshrl.u32 %v4740_v9, 16  ;;  %v533_v47 = vshll.u32 %v4756_v25, 16 }
  0x31   : > { %5763 = vst [vmem:[#allocation5_spill] sm:$0xff] %v4763_v31  ;;  %3897 = vmatprep.mubr.msk.bf16.mxu1 %vm810_vm2, %v4763_v31  ;;  %v507_v46 = vrot.slane %v506_v34, 4  ;;  %v538_v49 = vshrl.u32 %v4761_v30, 16  ;;  %v541_v50 = vshll.u32 %v4761_v30, 16  ;;  %4030 = vmatmul.mubr.msk.bf16.gmra.mrb[4].mxu0 %vm810_vm2, %v4763_v31  ;;  %v502_v52 = vsel %vm4635_vm3, %v497_v41, %v501_v17  ;;  %v4802_v34 = vld [vmem:[%s4602_s8 + $0x68] sm:$0x1] }
  0x32   : > { %v520_v53 = vor.u32 %v519_v2, %v516_v36  ;;  %v529_v54 = vrot.slane %v527_v45, 4  ;;  %v547_v58 = vshll.u32 %v4766_v38, 16  ;;  %v535_v1 = vrot.slane %v533_v47, 5 }
  0x33   : > { %v512_v0 = vsel %vm4635_vm3, %v507_v46, %v511_v35  ;;  %v540_v7 = vrot.slane %v538_v49, 4  ;;  %v543_v8 = vrot.slane %v541_v50, 5  ;;  %v551_v21 = vshrl.u32 %v4766_v38, 16 }
  0x34   : > { %v4790_v16 = vcombine.low %v502_v52, %v512_v0  ;;  %v521_v17 = vrot.slane %v520_v53, 4  ;;  %v530_v3 = vor.u32 %v529_v54, %v525_v42  ;;  %v549_v18 = vrot.slane %v547_v58, 5 }
  0x35   : > { %v544_v20 = vor.u32 %v543_v8, %v540_v7  ;;  %v557_v22 = vshll.u32 %v4779_v55, 16  ;;  %v562_v24 = vshrl.u32 %v4783_v62, 16  ;;  %v565_v35 = vshll.u32 %v4783_v62, 16 }
  0x36   : > { %5764 = vst [vmem:[#allocation6_spill] sm:$0xff] %v4790_v16  ;;  %4033 = vmatprep.mubr.msk.bf16.mxu0 %vm810_vm2, %v4790_v16  ;;  %3898 = vmatmul.mubr.msk.bf16.gmra.mrb[8].mxu1 %vm810_vm2, %v4790_v16  ;;  %v526_v26 = vsel %vm4635_vm3, %v521_v17, %v525_v42  ;;  %v531_v29 = vrot.slane %v530_v3, 4  ;;  %v571_v36 = vshll.u32 %v4788_v15, 16  ;;  %v553_v2 = vrot.slane %v551_v21, 4  ;;  %v4810_v42 = vld [vmem:[%s4602_s8 + $0x6c] sm:$0xf] }
  0x37   : > { %v545_v41 = vrot.slane %v544_v20, 4  ;;  %v559_v45 = vrot.slane %v557_v22, 5  ;;  %v564_v46 = vrot.slane %v562_v24, 4  ;;  %v567_v49 = vrot.slane %v565_v35, 5  ;;  %v4833_v22 = vld [vmem:[%s4602_s8 + $0x74] sm:$0x1] }
  0x38   : > { %v536_v47 = vsel %vm4635_vm3, %v531_v29, %v535_v1  ;;  %v573_v50 = vrot.slane %v571_v36, 5  ;;  %v575_v52 = vshrl.u32 %v4788_v15, 16  ;;  %v554_v58 = vor.u32 %v553_v2, %v549_v18  ;;  %v4824_v1 = vld [vmem:[%s4602_s8 + $0x70] sm:$0xf]  ;;  %v4976_v16 = vld [vmem:[%s4602_s8 + $0xa0] sm:$0xf] }
  0x39   : > { %v4812_v53 = vcombine.low %v526_v26, %v536_v47  ;;  %v550_v54 = vsel %vm4635_vm3, %v545_v41, %v549_v18  ;;  %v581_v0 = vshll.u32 %v4802_v34, 16  ;;  %v568_v8 = vor.u32 %v567_v49, %v564_v46 }
  0x3a   : > { %v577_v17 = vrot.slane %v575_v52, 4  ;;  %v3558_v3 = vrot.slane %v4617_v11, 9  ;;  %v1343_v20 = vrot.slane %v4620_v13, 5  ;;  %v555_v18 = vrot.slane %v554_v58, 4 }
  0x3b   : > { %5765 = vst [vmem:[#allocation7_spill] sm:$0xff] %v4812_v53  ;;  %4034 = vmatmul.mubr.msk.bf16.gmra.mrb[8].mxu0 %vm810_vm2, %v4812_v53  ;;  %3901 = vmatprep.mubr.msk.bf16.mxu1 %vm810_vm2, %v4812_v53  ;;  %v583_v21 = vrot.slane %v581_v0, 5  ;;  %v586_v24 = vshrl.u32 %v4810_v42, 16  ;;  %v589_v26 = vshll.u32 %v4810_v42, 16  ;;  %v569_v29 = vrot.slane %v568_v8, 4 }
  0x3c   : > { %v578_v35 = vor.u32 %v577_v17, %v573_v50  ;;  %v1344_v11 = vsel %vm4819_vm6, %v3558_v3, %v1343_v20  ;;  %v1345_v13 = vrot.slane %v1343_v20, 4  ;;  %v560_v36 = vsel %vm4635_vm3, %v555_v18, %v559_v45  ;;  %v4851_v0 = vld [vmem:[%s4602_s8 + $0x78] sm:$0xf]  ;;  %v4867_v20 = vld [vmem:[%s4602_s8 + $0x7c] sm:$0xf] }
  0x3d   : > { %v588_v41 = vrot.slane %v586_v24, 4  ;;  %v591_v2 = vrot.slane %v589_v26, 5  ;;  %v595_v46 = vshll.u32 %v4824_v1, 16  ;;  %v4842_v47 = vcombine.low %v550_v54, %v560_v36 }
  0x3e   : > { %v574_v49 = vsel %vm4635_vm3, %v569_v29, %v573_v50  ;;  %v579_v52 = vrot.slane %v578_v35, 4  ;;  %v1347_v58 = vsel %vm4819_vm6, %v1345_v13, %v1346_v39  ;;  %v599_v3 = vshrl.u32 %v4824_v1, 16  ;;  %v4872_v29 = vld [vmem:[%s4602_s8 + $0x80] sm:$0x1] }
  0x3f   : > { %5768 = vst [vmem:[#allocation8_spill] sm:$0xff] %v4842_v47  ;;  %v4853_v45 = vcombine.low %v1344_v11, %v1347_v58  ;;  %v592_v8 = vor.u32 %v591_v2, %v588_v41  ;;  %v597_v17 = vrot.slane %v595_v46, 5  ;;  %4037 = vmatprep.mubr.msk.bf16.mxu0 %vm810_vm2, %v4842_v47  ;;  %3902 = vmatmul.mubr.msk.bf16.gmra.mrb[12].mxu1 %vm810_vm2, %v4842_v47  ;;  %v605_v39 = vshll.u32 %v4833_v22, 16  ;;  %v4898_v58 = vld [vmem:[%s4602_s8 + $0x84] sm:$0xf] }
  0x40   : > { %v584_v14 = vsel %vm4635_vm3, %v579_v52, %v583_v21  ;;  %v3559_v50 = vrot.slane %v4631_v27, 9  ;;  %v1352_v54 = vrot.slane %v1350_v59, 4  ;;  %v601_v26 = vrot.slane %v599_v3, 4  ;;  %v4969_v47 = vld [vmem:[%s4602_s8 + $0x9c] sm:$0xf] }
  0x41   : > { %5769 = vst [vmem:[#allocation9_spill] sm:$0xff] %v4853_v45  ;;  %v4869_v18 = vcombine.low %v574_v49, %v584_v14  ;;  %v593_v24 = vrot.slane %v592_v8, 4  ;;  %v610_v35 = vshrl.u32 %v4851_v0, 16  ;;  %v607_v11 = vrot.slane %v605_v39, 5 }
  0x42   : > { %v1351_v21 = vsel %vm4819_vm6, %v3559_v50, %v1350_v59  ;;  %v1354_v13 = vsel %vm4819_vm6, %v1352_v54, %v1353_v60  ;;  %v613_v36 = vshll.u32 %v4851_v0, 16  ;;  %v602_v2 = vor.u32 %v601_v26, %v597_v17  ;;  %v4904_v26 = vld [vmem:[%s4602_s8 + $0x88] sm:$0xf] }
  0x43   : > { %5770 = vst [vmem:[#allocation10_spill] sm:$0xff] %v4869_v18  ;;  %4038 = vmatmul.mubr.msk.bf16.gmra.mrb[12].mxu0 %vm810_vm2, %v4869_v18  ;;  %3905 = vmatprep.mubr.msk.bf16.mxu1 %vm810_vm2, %v4869_v18  ;;  %v598_v41 = vsel %vm4635_vm3, %v593_v24, %v597_v17  ;;  %v4890_v46 = vcombine.low %v1351_v21, %v1354_v13  ;;  %v612_v59 = vrot.slane %v610_v35, 4  ;;  %v619_v60 = vshll.u32 %v4867_v20, 16 }
  0x44   : > { %4059 = vmatprep.mubr.msk.bf16.mxu0 %vm810_vm2, %v4853_v45  ;;  %v615_v40 = vrot.slane %v613_v36, 5  ;;  %v623_v49 = vshrl.u32 %v4867_v20, 16  ;;  %v629_v52 = vshll.u32 %v4872_v29, 16  ;;  %v603_v8 = vrot.slane %v602_v2, 4 }
  0x45   : > { %5771 = vst [vmem:[#allocation11_spill] sm:$0xff] %v4890_v46  ;;  %v3560_v17 = vrot.slane %v4658_v51, 9  ;;  %v1357_v3 = vrot.slane %v4663_v56, 5  ;;  %v1360_v14 = vrot.slane %v4671_v61, 5  ;;  %v621_v50 = vrot.slane %v619_v60, 5 }
  0x46   : > { %v616_v39 = vor.u32 %v615_v40, %v612_v59  ;;  %v625_v54 = vrot.slane %v623_v49, 4  ;;  %v631_v24 = vrot.slane %v629_v52, 5  ;;  %v608_v35 = vsel %vm4635_vm3, %v603_v8, %v607_v11  ;;  %v4914_v59 = vld [vmem:[%s4602_s8 + $0x8c] sm:$0x1]  ;;  %v4924_v8 = vld [vmem:[%s5723_s1 + $0x38] sm:$0xff]  }
  0x47   : > { %v1358_v21 = vsel %vm4819_vm6, %v3560_v17, %v1357_v3  ;;  %v1359_v13 = vrot.slane %v1357_v3, 4  ;;  %v634_v36 = vshrl.u32 %v4898_v58, 16  ;;  %v4911_v2 = vcombine.low %v598_v41, %v608_v35  ;;  %5773 = vst [vmem:[#allocation13_spill] sm:$0xff] %v4924_v8 }
  0x48   : > { %v617_v18 = vrot.slane %v616_v39, 4  ;;  %v626_v61 = vor.u32 %v625_v54, %v621_v50  ;;  %v637_v40 = vshll.u32 %v4898_v58, 16  ;;  %v643_v11 = vshll.u32 %v4904_v26, 16  ;;  %v4933_v39 = vld [vmem:[%s4602_s8 + $0x90] sm:$0xf] }
  0x49   : > { %5772 = vst [vmem:[#allocation12_spill] sm:$0xff] %v4911_v2  ;;  %v1361_v60 = vsel %vm4819_vm6, %v1359_v13, %v1360_v14  ;;  %v636_v49 = vrot.slane %v634_v36, 4  ;;  %v647_v52 = vshrl.u32 %v4904_v26, 16  ;;  %3906 = vmatmul.mubr.msk.bf16.gmra.mrb[16].mxu1 %vm810_vm2, %v4911_v2  ;;  %v653_v13 = vshll.u32 %v4914_v59, 16  ;;  %v4952_v2 = vld [vmem:[%s4602_s8 + $0x98] sm:$0x1] }
  0x4a   : > { %v622_v41 = vsel %vm4635_vm3, %v617_v18, %v621_v50  ;;  %v627_v17 = vrot.slane %v626_v61, 4  ;;  %v4930_v3 = vcombine.low %v1358_v21, %v1361_v60  ;;  %v639_v14 = vrot.slane %v637_v40, 5  ;;  %v4947_v40 = vld [vmem:[%s4602_s8 + $0x94] sm:$0xf] }
  0x4b   : > { %4060 = vmatmul.mubr.msk.bf16.vlgmr.msra.gmra.mrb[0].mxu0 %vm810_vm2, %v4890_v46  ;;  %v645_v54 = vrot.slane %v643_v11, 5  ;;  %v649_v35 = vrot.slane %v647_v52, 4  ;;  %v3561_v36 = vrot.slane %v4677_v6, 9  ;;  %v1364_v21 = vrot.slane %v4689_v19, 5 }
  0x4c   : > { %5774 = vst [vmem:[#allocation14_spill] sm:$0xff] %v4930_v3  ;;  %4092 = vmatpush3.bf16.msra.mxu0 %v4718_v48  ;;  %v632_v18 = vsel %vm4635_vm3, %v627_v17, %v631_v24  ;;  %4063 = vmatprep.mubr.msk.bf16.mxu0 %vm810_vm2, %v4930_v3  ;;  %v640_v50 = vor.u32 %v639_v14, %v636_v49  ;;  %v1367_v61 = vrot.slane %v4696_v23, 5  ;;  %v655_v52 = vrot.slane %v653_v13, 5 }
  0x4d   : > { %v4949_v60 = vcombine.low %v622_v41, %v632_v18  ;;  %v650_v11 = vor.u32 %v649_v35, %v645_v54  ;;  %v658_v48 = vshrl.u32 %v4933_v39, 16  ;;  %4125 = vmatprep.subr.bf16.mxu0 %v4924_v8  ;;  %v1365_v49 = vsel %vm4819_vm6, %v3561_v36, %v1364_v21 }
  0x4e   : > { %v641_v24 = vrot.slane %v640_v50, 4  ;;  %v1366_v17 = vrot.slane %v1364_v21, 4  ;;  %v661_v23 = vshll.u32 %v4933_v39, 16  ;;  %v667_v35 = vshll.u32 %v4947_v40, 16 }
  0x4f   : > { %5775 = vst [vmem:[#allocation15_spill] sm:$0xff] %v4949_v60  ;;  %3909 = vmatprep.mubr.msk.bf16.mxu1 %vm810_vm2, %v4949_v60  ;;  %v651_v41 = vrot.slane %v650_v11, 4  ;;  %v660_v14 = vrot.slane %v658_v48, 4  ;;  %v671_v13 = vshrl.u32 %v4947_v40, 16  ;;  %v677_v21 = vshll.u32 %v4952_v2, 16 }
  0x50   : > { %v646_v18 = vsel %vm4635_vm3, %v641_v24, %v645_v54  ;;  %v1368_v50 = vsel %vm4819_vm6, %v1366_v17, %v1367_v61  ;;  %v663_v36 = vrot.slane %v661_v23, 5  ;;  %v669_v48 = vrot.slane %v667_v35, 5 }
  0x51   : > { %v656_v60 = vsel %vm4635_vm3, %v651_v41, %v655_v52  ;;  %v4973_v11 = vcombine.low %v1365_v49, %v1368_v50  ;;  %v673_v53 = vrot.slane %v671_v13, 4  ;;  %v679_v24 = vrot.slane %v677_v21, 5  ;;  %v4989_v41 = vld [vmem:[%s4602_s8 + $0xa4] sm:$0x1] }
  0x52   : > { %v4978_v31 = vcombine.low %v646_v18, %v656_v60  ;;  %v664_v54 = vor.u32 %v663_v36, %v660_v14  ;;  %v3562_v61 = vrot.slane %v4704_v37, 9  ;;  %v1371_v23 = vrot.slane %v4711_v43, 5 }
  0x53   : > { %5776 = vst [vmem:[#allocation16_spill] sm:$0xff] %v4973_v11  ;;  %4064 = vmatmul.mubr.msk.bf16.gmra.mrb[4].mxu0 %vm810_vm2, %v4973_v11  ;;  %v674_v17 = vor.u32 %v673_v53, %v669_v48  ;;  %v1374_v52 = vrot.slane %v4728_v57, 5  ;;  %v682_v49 = vshrl.u32 %v4969_v47, 16  ;;  %v685_v14 = vshll.u32 %v4969_v47, 16 }
  0x54   : > { %5777 = vst [vmem:[#allocation17_spill] sm:$0xff] %v4978_v31  ;;  %3910 = vmatmul.mubr.msk.bf16.gmra.mrb[20].mxu1 %vm810_vm2, %v4978_v31  ;;  %v665_v60 = vrot.slane %v664_v54, 4  ;;  %v691_v35 = vshll.u32 %v4976_v16, 16  ;;  %v695_v53 = vshrl.u32 %v4976_v16, 16  ;;  %v1372_v57 = vsel %vm4819_vm6, %v3562_v61, %v1371_v23 }
  0x55   : > { %v675_v13 = vrot.slane %v674_v17, 4  ;;  %v1373_v18 = vrot.slane %v1371_v23, 4  ;;  %v684_v50 = vrot.slane %v682_v49, 4  ;;  %v687_v21 = vrot.slane %v685_v14, 5  ;;  %v5008_v23 = vld [vmem:[%s4602_s8 + $0xac] sm:$0xf] }
  0x56   : > { %v670_v36 = vsel %vm4635_vm3, %v665_v60, %v669_v48  ;;  %v693_v54 = vrot.slane %v691_v35, 5  ;;  %v697_v31 = vrot.slane %v695_v53, 4  ;;  %v701_v17 = vshll.u32 %v4989_v41, 16 }
  0x57   : > { %v680_v44 = vsel %vm4635_vm3, %v675_v13, %v679_v24  ;;  %v1375_v11 = vsel %vm4819_vm6, %v1373_v18, %v1374_v52  ;;  %v3563_v61 = vrot.slane %v4733_v63, 9  ;;  %v688_v60 = vor.u32 %v687_v21, %v684_v50 }
  0x58   : > { %v5010_v49 = vcombine.low %v670_v36, %v680_v44  ;;  %v5012_v48 = vcombine.low %v1372_v57, %v1375_v11  ;;  %v698_v14 = vor.u32 %v697_v31, %v693_v54  ;;  %v703_v35 = vrot.slane %v701_v17, 5  ;;  %v5022_v11 = vld [vmem:[%s4602_s8 + $0xb0] sm:$0x1] }
  0x59   : > { %v1378_v53 = vrot.slane %v4740_v9, 5  ;;  %v1381_v24 = vrot.slane %v4756_v25, 5  ;;  %v706_v52 = vshrl.u32 %v4999_v10, 16  ;;  %v689_v44 = vrot.slane %v688_v60, 4 }
  0x5a   : > { %5778 = vst [vmem:[#allocation18_spill] sm:$0xff] %v5010_v49  ;;  %5779 = vst [vmem:[#allocation19_spill] sm:$0xff] %v5012_v48  ;;  %3913 = vmatprep.mubr.msk.bf16.mxu1 %vm810_vm2, %v5010_v49  ;;  %4067 = vmatprep.mubr.msk.bf16.mxu0 %vm810_vm2, %v5012_v48  ;;  %v699_v13 = vrot.slane %v698_v14, 4  ;;  %v709_v31 = vshll.u32 %v4999_v10, 16  ;;  %v715_v57 = vshll.u32 %v5008_v23, 16  ;;  %v719_v36 = vshrl.u32 %v5008_v23, 16 }
  0x5b   : > { %v1379_v25 = vsel %vm4819_vm6, %v3563_v61, %v1378_v53  ;;  %v1380_v18 = vrot.slane %v1378_v53, 4  ;;  %v708_v50 = vrot.slane %v706_v52, 4  ;;  %v694_v21 = vsel %vm4635_vm3, %v689_v44, %v693_v54  ;;  %v5034_v49 = vld [vmem:[%s4602_s8 + $0xb4] sm:$0xf]  ;;  %v5046_v44 = vld [vmem:[%s4602_s8 + $0xb8] sm:$0xf] }
  0x5c   : > { %v704_v17 = vsel %vm4635_vm3, %v699_v13, %v703_v35  ;;  %v711_v60 = vrot.slane %v709_v31, 5  ;;  %v717_v14 = vrot.slane %v715_v57, 5  ;;  %v721_v53 = vrot.slane %v719_v36, 4 }
  0x5d   : > { %v5036_v48 = vcombine.low %v694_v21, %v704_v17  ;;  %v1382_v61 = vsel %vm4819_vm6, %v1380_v18, %v1381_v24  ;;  %v725_v52 = vshll.u32 %v5022_v11, 16  ;;  %v3564_v54 = vrot.slane %v4761_v30, 9  ;;  %v5052_v24 = vld [vmem:[%s4602_s8 + $0xbc] sm:$0x1] }
  0x5e   : > { %v5041_v3 = vcombine.low %v1379_v25, %v1382_v61  ;;  %v712_v46 = vor.u32 %v711_v60, %v708_v50  ;;  %v1385_v35 = vrot.slane %v4766_v38, 5  ;;  %v722_v13 = vor.u32 %v721_v53, %v717_v14 }
  0x5f   : > { %5780 = vst [vmem:[#allocation20_spill] sm:$0xff] %v5036_v48  ;;  %3914 = vmatmul.mubr.msk.bf16.gmra.mrb[24].mxu1 %vm810_vm2, %v5036_v48  ;;  %v727_v31 = vrot.slane %v725_v52, 5  ;;  %v1388_v57 = vrot.slane %v4779_v55, 5  ;;  %v730_v18 = vshrl.u32 %v5034_v49, 16  ;;  %v733_v21 = vshll.u32 %v5034_v49, 16 }
  0x60   : > { %5781 = vst [vmem:[#allocation21_spill] sm:$0xff] %v5041_v3  ;;  %4068 = vmatmul.mubr.msk.bf16.gmra.mrb[8].mxu0 %vm810_vm2, %v5041_v3  ;;  %v713_v25 = vrot.slane %v712_v46, 4  ;;  %v1386_v50 = vsel %vm4819_vm6, %v3564_v54, %v1385_v35  ;;  %v1387_v36 = vrot.slane %v1385_v35, 4  ;;  %v723_v17 = vrot.slane %v722_v13, 4 }
  0x61   : > { %v732_v60 = vrot.slane %v730_v18, 4  ;;  %v739_v61 = vshll.u32 %v5046_v44, 16  ;;  %v743_v55 = vshrl.u32 %v5046_v44, 16  ;;  %v735_v48 = vrot.slane %v733_v21, 5 }
  0x62   : > { %v718_v53 = vsel %vm4635_vm3, %v713_v25, %v717_v14  ;;  %v1389_v52 = vsel %vm4819_vm6, %v1387_v36, %v1388_v57  ;;  %v749_v46 = vshll.u32 %v5052_v24, 16  ;;  %v728_v54 = vsel %vm4635_vm3, %v723_v17, %v727_v31 }
  0x63   : > { %v5069_v35 = vcombine.low %v1386_v50, %v1389_v52  ;;  %v741_v13 = vrot.slane %v739_v61, 5  ;;  %v745_v18 = vrot.slane %v743_v55, 4  ;;  %v5071_v3 = vcombine.low %v718_v53, %v728_v54 }
  0x64   : > { %v736_v45 = vor.u32 %v735_v48, %v732_v60  ;;  %v751_v8 = vrot.slane %v749_v46, 5  ;;  %v3565_v30 = vrot.slane %v4783_v62, 9  ;;  %v1392_v57 = vrot.slane %v4788_v15, 5 }
  0x65   : > { %4071 = vmatprep.mubr.msk.bf16.mxu0 %vm810_vm2, %v5069_v35  ;;  %v746_v14 = vor.u32 %v745_v18, %v741_v13  ;;  %v1395_v25 = vrot.slane %v4802_v34, 5  ;;  %v3566_v31 = vrot.slane %v4810_v42, 9  ;;  %3917 = vmatprep.mubr.msk.bf16.mxu1 %vm810_vm2, %v5071_v3  ;;  %v3524_v48 = vcombine.low %v4606_v4, %v4609_v5 }
  0x66   : > { %v737_v50 = vrot.slane %v736_v45, 4  ;;  %v1399_v36 = vrot.slane %v4824_v1, 5  ;;  %v1402_v21 = vrot.slane %v4833_v22, 5  ;;  %v1393_v60 = vsel %vm4819_vm6, %v3565_v30, %v1392_v57 }
  0x67   : > { %v747_v17 = vrot.slane %v746_v14, 4  ;;  %v1394_v61 = vrot.slane %v1392_v57, 4  ;;  %v1406_v34 = vrot.slane %v4867_v20, 5  ;;  %v3567_v4 = vrot.slane %v4851_v0, 9 }
  0x68   : > { %v742_v55 = vsel %vm4635_vm3, %v737_v50, %v741_v13  ;;  %v1400_v45 = vsel %vm4819_vm6, %v3566_v31, %v1399_v36  ;;  %v1401_v53 = vrot.slane %v1399_v36, 4  ;;  %v1409_v30 = vrot.slane %v4872_v29, 5 }
  0x69   : > { %v752_v5 = vsel %vm4635_vm3, %v747_v17, %v751_v8  ;;  %v1396_v22 = vsel %vm4819_vm6, %v1394_v61, %v1395_v25  ;;  %v1408_v52 = vrot.slane %v1406_v34, 4  ;;  %v3568_v14 = vrot.slane %v4898_v58, 9 }
  0x6a   : > { %v5098_v46 = vcombine.low %v742_v55, %v752_v5  ;;  %v5100_v54 = vcombine.low %v1393_v60, %v1396_v22  ;;  %v1403_v13 = vsel %vm4819_vm6, %v1401_v53, %v1402_v21  ;;  %v1413_v57 = vrot.slane %v4904_v26, 5  ;;  %v5142_v22 = vld [vmem:[%s5723_s1 + $0x18] sm:$0xff]  }
  0x6b   : > { %v5104_v18 = vcombine.low %v1400_v45, %v1403_v13  ;;  %v1416_v29 = vrot.slane %v4914_v59, 5  ;;  %v1407_v8 = vsel %vm4819_vm6, %v3567_v4, %v1406_v34  ;;  %v1410_v25 = vsel %vm4819_vm6, %v1408_v52, %v1409_v30 }
  0x6c   : > { %3918 = vmatmul.mubr.msk.bf16.gmra.mrb[28].mxu1 %vm810_vm2, %v5098_v46  ;;  %4072 = vmatmul.mubr.msk.bf16.gmra.mrb[12].mxu0 %vm810_vm2, %v5100_v54  ;;  %v1415_v31 = vrot.slane %v1413_v57, 4  ;;  %v1420_v50 = vrot.slane %v4947_v40, 5  ;;  %v1427_v36 = vrot.slane %v4976_v16, 5  ;;  %v1414_v21 = vsel %vm4819_vm6, %v3568_v14, %v1413_v57 }
  0x6d   : > { %3923 = vmatprep.mubr.msk.bf16.mxu1 %vm810_vm2, %v3524_v48  ;;  %4075 = vmatprep.mubr.msk.bf16.mxu0 %vm810_vm2, %v5104_v18  ;;  %v5126_v48 = vcombine.low %v1407_v8, %v1410_v25  ;;  %v3569_v17 = vrot.slane %v4933_v39, 9  ;;  %v1423_v61 = vrot.slane %v4952_v2, 5  ;;  %v5132_v34 = vcombine.low %v4631_v27, %v4644_v33 }
  0x6e   : > { %v1417_v59 = vsel %vm4819_vm6, %v1415_v31, %v1416_v29  ;;  %v1422_v60 = vrot.slane %v1420_v50, 4  ;;  %v3570_v55 = vrot.slane %v4969_v47, 9  ;;  %v1429_v53 = vrot.slane %v1427_v36, 4 }
  0x6f   : > { %v5135_v45 = vcombine.low %v1414_v21, %v1417_v59  ;;  %v1430_v4 = vrot.slane %v4989_v41, 5  ;;  %v1434_v5 = vrot.slane %v5008_v23, 5  ;;  %v1421_v27 = vsel %vm4819_vm6, %v3569_v17, %v1420_v50 }
  0x70   : > { %v1424_v33 = vsel %vm4819_vm6, %v1422_v60, %v1423_v61  ;;  %v5157_v2 = vcombine.low %v4658_v51, %v4663_v56  ;;  %v1428_v41 = vsel %vm4819_vm6, %v3570_v55, %v1427_v36  ;;  %v3571_v52 = vrot.slane %v4999_v10, 9 }
  0x71   : > { %v5164_v30 = vcombine.low %v4783_v62, %v4788_v15  ;;  %v1441_v13 = vrot.slane %v5046_v44, 5  ;;  %v5173_v51 = vcombine.low %v4810_v42, %v4824_v1  ;;  %v5177_v56 = vcombine.low %v4851_v0, %v4867_v20 }
  0x72   : > { %v5179_v14 = vcombine.low %v1421_v27, %v1424_v33  ;;  %v1436_v62 = vrot.slane %v1434_v5, 4  ;;  %v1437_v15 = vrot.slane %v5022_v11, 5  ;;  %v5184_v57 = vcombine.low %v4898_v58, %v4904_v26  ;;  %v5232_v11 = vld [vmem:[%s4602_s8 + $0xc0] sm:$0xf] }
  0x73   : > { %v5189_v42 = vcombine.low %v4933_v39, %v4947_v40  ;;  %v5193_v1 = vcombine.low %v4969_v47, %v4976_v16  ;;  %v5197_v0 = vcombine.low %v4999_v10, %v5008_v23  ;;  %v5201_v20 = vcombine.low %v5034_v49, %v5046_v44  ;;  %v5212_v40 = vld [vmem:[%s4602_s8 + $0xc4] sm:$0xf]  ;;  %v360_v44 = vld [vmem:[%s4602_s8 + $0xc8] sm:$0x1] }
  0x74   : > { %3924 = vmatmul.mubr.msk.bf16.vlgmr.msra.gmra.mrb[0].mxu1 %vm810_vm2, %v4641_v32  ;;  %4076 = vmatmul.mubr.msk.bf16.gmra.mrb[16].mxu0 %vm810_vm2, %v5126_v48  ;;  %v5205_v58 = vcombine.low %v4677_v6, %v4689_v19  ;;  %v3572_v39 = vrot.slane %v5034_v49, 9  ;;  %v1443_v16 = vrot.slane %v1441_v13, 4  ;;  %v1444_v47 = vrot.slane %v5052_v24, 5 }
  0x75   : > { %3956 = vmatpush3.bf16.msra.mxu1 %v4684_v12  ;;  %3927 = vmatprep.mubr.msk.bf16.mxu1 %vm810_vm2, %v5132_v34  ;;  %v1431_v12 = vsel %vm4819_vm6, %v1429_v53, %v1430_v4  ;;  %v1435_v6 = vsel %vm4819_vm6, %v3571_v52, %v1434_v5  ;;  %v1438_v19 = vsel %vm4819_vm6, %v1436_v62, %v1437_v15  ;;  %v2189_v10 = vrot.slane %v5212_v40, 5  ;;  %v5782_v52 = vld [vmem:[#allocation4_spill] sm:$0xff] }
  0x76   : > { %4079 = vmatprep.mubr.msk.bf16.mxu0 %vm810_vm2, %v5135_v45  ;;  %3989 = vmatprep.subr.bf16.mxu1 %v5142_v22  ;;  %v5207_v26 = vcombine.low %v1428_v41, %v1431_v12  ;;  %v1442_v23 = vsel %vm4819_vm6, %v3572_v39, %v1441_v13  ;;  %v1445_v49 = vsel %vm4819_vm6, %v1443_v16, %v1444_v47  ;;  %v1955_v25 = vshrl.u32 %v5232_v11, 16  ;;  %v5783_v16 = vld [vmem:[#allocation13_spill] sm:$0xff]  ;;  %v4503_v47 = vld [vmem:[%s4602_s8 + $0x4] sm:$0xf] }
  0x77   : > { %v5237_v24 = vcombine.low %v4704_v37, %v4711_v43  ;;  %v5239_v29 = vcombine.low %v1435_v6, %v1438_v19  ;;  %v5243_v8 = vcombine.low %v4733_v63, %v4740_v9  ;;  %v1958_v31 = vshll.u32 %v5232_v11, 16  ;;  %v4504_v19 = vld [vmem:[%s4602_s8 + $0x8] sm:$0x1] }
  0x78   : > { %v1964_v50 = vshll.u32 %v5212_v40, 16  ;;  %v1968_v36 = vshrl.u32 %v5212_v40, 16  ;;  %v5249_v21 = vcombine.low %v1442_v23, %v1445_v49  ;;  %v3648_v59 = vrot.slane %v5232_v11, 9  ;;  %v4505_v23 = vld [vmem:[%s4602_s8] sm:$0xf] }
  0x79   : > { %v2191_v37 = vrot.slane %v2189_v10, 4  ;;  %v2192_v43 = vrot.slane %v360_v44, 5  ;;  %v1957_v17 = vrot.slane %v1955_v25, 4  ;;  %v1960_v60 = vrot.slane %v1958_v31, 5 }
  0x7a   : > { %v1966_v61 = vrot.slane %v1964_v50, 5  ;;  %v1970_v55 = vrot.slane %v1968_v36, 4  ;;  %v1974_v53 = vshll.u32 %v360_v44, 16  ;;  %v2190_v4 = vsel %vm4819_vm6, %v3648_v59, %v2189_v10  ;;  %v5784_v36 = vld [vmem:[#allocation9_spill] sm:$0xff]  ;;  %v5785_v59 = vld [vmem:[#allocation11_spill] sm:$0xff] }
  0x7b   : > { %v1961_v63 = vor.u32 %v1960_v60, %v1957_v17  ;;  %v2193_v5 = vsel %vm4819_vm6, %v2191_v37, %v2192_v43  ;;  %v5266_v12 = vcombine.low %v5782_v52, %v4766_v38  ;;  %v4502_v38 = vld [vmem:[%s5723_s1 + $0x40] sm:$0xff]   ;;  %v1336_v6 = vrot.slane %v4503_v47, 5  ;;  %v5787_v17 = vld [vmem:[#allocation16_spill] sm:$0xff]  ;;  %v5788_v60 = vld [vmem:[#allocation19_spill] sm:$0xff] }
  0x7c   : > { %3928 = vmatmul.mubr.msk.bf16.gmra.mrb[4].mxu1 %vm810_vm2, %v5157_v2  ;;  %4080 = vmatmul.mubr.msk.bf16.gmra.mrb[20].mxu0 %vm810_vm2, %v5179_v14  ;;  %v1971_v9 = vor.u32 %v1970_v55, %v1966_v61  ;;  %v1976_v41 = vrot.slane %v1974_v53, 5  ;;  %v5268_v13 = vcombine.low %v2190_v4, %v2193_v5  ;;  %v1339_v10 = vrot.slane %v4504_v19, 5  ;;  %v4506_v37 = vld [vmem:[%s5723_s1 + $0x20] sm:$0xff]   ;;  %v5359_v55 = vld [vmem:[%s4602_s8 + $0xcc] sm:$0xf]  ;;  %v5792_v53 = vld [vmem:[#allocation5_spill] sm:$0xff] }
  0x7d   : > { %3931 = vmatprep.mubr.msk.bf16.mxu1 %vm810_vm2, %v5205_v58  ;;  %4083 = vmatprep.mubr.msk.bf16.mxu0 %vm810_vm2, %v5207_v26  ;;  %v1962_v27 = vrot.slane %v1961_v63, 4  ;;  %v3557_v49 = vrot.slane %v4505_v23, 9  ;;  %v1338_v44 = vrot.slane %v1336_v6, 4  ;;  %v5786_v43 = vld [vmem:[#allocation14_spill] sm:$0xff]  ;;  %v5362_v63 = vld [vmem:[%s4602_s8 + $0xd0] sm:$0xf] }
  0x7e   : > { %v1972_v33 = vrot.slane %v1971_v9, 4  ;;  %v5791_v9 = vld [vmem:[#allocation3_spill] sm:$0xff]  ;;  %v5793_v4 = vld [vmem:[#allocation6_spill] sm:$0xff]  ;;  %v363_v23 = vld [vmem:[%s4602_s8 + $0xd4] sm:$0x1]  ;;  %v2847_v28 = vrot.slane %v5362_v63, 5  ;;  %s302_s8 = scalar_lea.vmem %s5726_s4, %s5807_s18 }
  0x7f   : > { %v1967_v62 = vsel %vm4635_vm3, %v1962_v27, %v1966_v61  ;;  %v1337_v25 = vsel %vm4819_vm6, %v3557_v49, %v1336_v6  ;;  %v1340_v31 = vsel %vm4819_vm6, %v1338_v44, %v1339_v10  ;;  %v5789_v61 = vld [vmem:[#allocation21_spill] sm:$0xff]  ;;  %v5794_v5 = vld [vmem:[#allocation7_spill] sm:$0xff]  ;;  %v5795_v27 = vld [vmem:[#allocation8_spill] sm:$0xff] }
  0x80   : > { %v1977_v15 = vsel %vm4635_vm3, %v1972_v33, %v1976_v41  ;;  %v3575_v50 = vcombine.low %v1337_v25, %v1340_v31  ;;  %v5796_v33 = vld [vmem:[#allocation10_spill] sm:$0xff]  ;;  %v5797_v41 = vld [vmem:[#allocation12_spill] sm:$0xff]  ;;  %v5798_v52 = vld [vmem:[#allocation15_spill] sm:$0xff]  ;;  %v2632_v25 = vshll.u32 %v363_v23, 16 }
  0x81   : > { %v5274_v39 = vcombine.low %v1967_v62, %v1977_v15  ;;  %v5799_v62 = vld [vmem:[#allocation17_spill] sm:$0xff]  ;;  %v2613_v15 = vshrl.u32 %v5359_v55, 16  ;;  %v5800_v47 = vld [vmem:[#allocation18_spill] sm:$0xff]  ;;  %v5801_v49 = vld [vmem:[#allocation20_spill] sm:$0xff] }
  0x83   : > { %v2615_v6 = vrot.slane %v2613_v15, 4 }
  0x84   : > { %3932 = vmatmul.mubr.msk.bf16.gmra.mrb[8].mxu1 %vm810_vm2, %v5237_v24  ;;  %4084 = vmatmul.mubr.msk.bf16.gmra.mrb[24].mxu0 %vm810_vm2, %v5239_v29 }
  0x85   : > { %3935 = vmatprep.mubr.msk.bf16.mxu1 %vm810_vm2, %v5243_v8  ;;  %4087 = vmatprep.mubr.msk.bf16.mxu0 %vm810_vm2, %v5249_v21 }
  0x8c   : > { %3936 = vmatmul.mubr.msk.bf16.gmra.mrb[12].mxu1 %vm810_vm2, %v5266_v12  ;;  %4088 = vmatmul.mubr.msk.bf16.gmra.mrb[28].mxu0 %vm810_vm2, %v5268_v13 }
  0x8d   : > { %3939 = vmatprep.mubr.msk.bf16.mxu1 %vm810_vm2, %v5164_v30  ;;  %4093 = vmatprep.mubr.msk.bf16.mxu0 %vm810_vm2, %v5132_v34 }
  0x94   : > { %3940 = vmatmul.mubr.msk.bf16.gmra.mrb[16].mxu1 %vm810_vm2, %v5173_v51  ;;  %4094 = vmatmul.mubr.msk.bf16.vlgmr.msra.gmra.mrb[0].mxu0 %vm810_vm2, %v5157_v2 }
  0x95   : > { %4126 = vmatpush3.bf16.msra.mxu0 %v5783_v16  ;;  %3943 = vmatprep.mubr.msk.bf16.mxu1 %vm810_vm2, %v5177_v56  ;;  %v2626_v16 = vshrl.u32 %v5362_v63, 16 }
  0x96   : > { %4097 = vmatprep.mubr.msk.bf16.mxu0 %vm810_vm2, %v5205_v58  ;;  %4159 = vmatprep.subr.bf16.mxu0 %v4502_v38 }
  0x97   : > { %v2628_v10 = vrot.slane %v2626_v16, 4 }
  0x9c   : > { %3944 = vmatmul.mubr.msk.bf16.gmra.mrb[20].mxu1 %vm810_vm2, %v5184_v57  ;;  %4098 = vmatmul.mubr.msk.bf16.gmra.mrb[4].mxu0 %vm810_vm2, %v5237_v24 }
  0x9d   : > { %3947 = vmatprep.mubr.msk.bf16.mxu1 %vm810_vm2, %v5189_v42  ;;  %4101 = vmatprep.mubr.msk.bf16.mxu0 %vm810_vm2, %v5243_v8 }
  0xa4   : > { %3948 = vmatmul.mubr.msk.bf16.gmra.mrb[24].mxu1 %vm810_vm2, %v5193_v1  ;;  %4102 = vmatmul.mubr.msk.bf16.gmra.mrb[8].mxu0 %vm810_vm2, %v5266_v12 }
  0xa5   : > { %3951 = vmatprep.mubr.msk.bf16.mxu1 %vm810_vm2, %v5197_v0  ;;  %4105 = vmatprep.mubr.msk.bf16.mxu0 %vm810_vm2, %v5164_v30 }
  0xac   : > { %3952 = vmatmul.mubr.msk.bf16.gmra.mrb[28].mxu1 %vm810_vm2, %v5201_v20  ;;  %4106 = vmatmul.mubr.msk.bf16.gmra.mrb[12].mxu0 %vm810_vm2, %v5173_v51 }
  0xad   : > { %3957 = vmatprep.mubr.msk.bf16.mxu1 %vm810_vm2, %v3575_v50  ;;  %4109 = vmatprep.mubr.msk.bf16.mxu0 %vm810_vm2, %v5177_v56 }
  0xb4   : > { %3958 = vmatmul.mubr.msk.bf16.vlgmr.msra.gmra.mrb[0].mxu1 %vm810_vm2, %v5784_v36  ;;  %4110 = vmatmul.mubr.msk.bf16.gmra.mrb[16].mxu0 %vm810_vm2, %v5184_v57  ;;  %v2634_v36 = vrot.slane %v2632_v25, 5 }
  0xb5   : > { %3990 = vmatpush3.bf16.msra.mxu1 %v5142_v22  ;;  %3961 = vmatprep.mubr.msk.bf16.mxu1 %vm810_vm2, %v5785_v59  ;;  %v5348_v22 = vcombine.low %v5232_v11, %v5212_v40  ;;  %v3671_v40 = vcombine.low %v5359_v55, %v5362_v63  ;;  %v5790_v11 = vld [vmem:[#allocation2_spill] sm:$0xff] }
  0xb6   : > { %4113 = vmatprep.mubr.msk.bf16.mxu0 %vm810_vm2, %v5189_v42  ;;  %4193 = vmatprep.subr.bf16.mxu1 %v4506_v37 }
  0xbc   : > { %3962 = vmatmul.mubr.msk.bf16.gmra.mrb[4].mxu1 %vm810_vm2, %v5786_v43  ;;  %4114 = vmatmul.mubr.msk.bf16.gmra.mrb[20].mxu0 %vm810_vm2, %v5193_v1 }
  0xbd   : > { %3965 = vmatprep.mubr.msk.bf16.mxu1 %vm810_vm2, %v5787_v17  ;;  %4117 = vmatprep.mubr.msk.bf16.mxu0 %vm810_vm2, %v5197_v0 }
  0xc4   : > { %3966 = vmatmul.mubr.msk.bf16.gmra.mrb[8].mxu1 %vm810_vm2, %v5788_v60  ;;  %4118 = vmatmul.mubr.msk.bf16.gmra.mrb[24].mxu0 %vm810_vm2, %v5201_v20 }
  0xc5   : > { %3969 = vmatprep.mubr.msk.bf16.mxu1 %vm810_vm2, %v5789_v61  ;;  %4121 = vmatprep.mubr.msk.bf16.mxu0 %vm810_vm2, %v5348_v22 }
  0xcc   : > { %3970 = vmatmul.mubr.msk.bf16.gmra.mrb[12].mxu1 %vm810_vm2, %v5069_v35  ;;  %4122 = vmatmul.mubr.msk.bf16.gmra.mrb[28].mxu0 %vm810_vm2, %v3671_v40 }
  0xcd   : > { %3973 = vmatprep.mubr.msk.bf16.mxu1 %vm810_vm2, %v5100_v54  ;;  %4127 = vmatprep.mubr.msk.bf16.mxu0 %vm810_vm2, %v5790_v11 }
  0xd4   : > { %3974 = vmatmul.mubr.msk.bf16.gmra.mrb[16].mxu1 %vm810_vm2, %v5104_v18  ;;  %4128 = vmatmul.mubr.msk.bf16.vlgmr.msra.gmra.mrb[0].mxu0 %vm810_vm2, %v5791_v9 }
  0xd5   : > { %4160 = vmatpush3.bf16.msra.mxu0 %v4502_v38  ;;  %3977 = vmatprep.mubr.msk.bf16.mxu1 %vm810_vm2, %v5126_v48  ;;  %v2616_v38 = vshll.u32 %v5359_v55, 16 }
  0xd6   : > { %4131 = vmatprep.mubr.msk.bf16.mxu0 %vm810_vm2, %v5792_v53 }
  0xdc   : > { %3978 = vmatmul.mubr.msk.bf16.gmra.mrb[20].mxu1 %vm810_vm2, %v5135_v45  ;;  %4132 = vmatmul.mubr.msk.bf16.gmra.mrb[4].mxu0 %vm810_vm2, %v5793_v4 }
  0xdd   : > { %3981 = vmatprep.mubr.msk.bf16.mxu1 %vm810_vm2, %v5179_v14  ;;  %4135 = vmatprep.mubr.msk.bf16.mxu0 %vm810_vm2, %v5794_v5 }
  0xe4   : > { %3982 = vmatmul.mubr.msk.bf16.gmra.mrb[24].mxu1 %vm810_vm2, %v5207_v26  ;;  %4136 = vmatmul.mubr.msk.bf16.gmra.mrb[8].mxu0 %vm810_vm2, %v5795_v27 }
  0xe5   : > { %3985 = vmatprep.mubr.msk.bf16.mxu1 %vm810_vm2, %v5239_v29  ;;  %4139 = vmatprep.mubr.msk.bf16.mxu0 %vm810_vm2, %v5796_v33 }
  0xec   : > { %3986 = vmatmul.mubr.msk.bf16.gmra.mrb[28].mxu1 %vm810_vm2, %v5249_v21  ;;  %4140 = vmatmul.mubr.msk.bf16.gmra.mrb[12].mxu0 %vm810_vm2, %v5797_v41 }
  0xed   : > { %3991 = vmatprep.mubr.msk.bf16.mxu1 %vm810_vm2, %v4641_v32  ;;  %4143 = vmatprep.mubr.msk.bf16.mxu0 %vm810_vm2, %v5798_v52  ;;  %v2622_v32 = vshll.u32 %v5362_v63, 16 }
  0xef   : > { %v2624_v19 = vrot.slane %v2622_v32, 5 }
  0xf1   : > { %v2629_v44 = vor.u32 %v2628_v10, %v2624_v19 }
  0xf3   : > { %v2630_v50 = vrot.slane %v2629_v44, 4 }
  0xf4   : > { %3992 = vmatmul.mubr.msk.bf16.vlgmr.msra.gmra.mrb[0].mxu1 %vm810_vm2, %v5132_v34  ;;  %4144 = vmatmul.mubr.msk.bf16.gmra.mrb[16].mxu0 %vm810_vm2, %v5799_v62  ;;  %v2618_v34 = vrot.slane %v2616_v38, 5 }
  0xf5   : > { %4194 = vmatpush3.bf16.msra.mxu1 %v4506_v37  ;;  %3995 = vmatprep.mubr.msk.bf16.mxu1 %vm810_vm2, %v5157_v2 }
  0xf6   : > { %4147 = vmatprep.mubr.msk.bf16.mxu0 %vm810_vm2, %v5800_v47  ;;  %v2619_v2 = vor.u32 %v2618_v34, %v2615_v6 }
  0xf8   : > { %v2620_v31 = vrot.slane %v2619_v2, 4 }
  0xfc   : > { %3996 = vmatmul.mubr.msk.bf16.gmra.mrb[4].mxu1 %vm810_vm2, %v5205_v58  ;;  %4148 = vmatmul.mubr.msk.bf16.gmra.mrb[20].mxu0 %vm810_vm2, %v5801_v49  ;;  %v2625_v58 = vsel %vm4635_vm3, %v2620_v31, %v2624_v19 }
  0xfd   : > { %3999 = vmatprep.mubr.msk.bf16.mxu1 %vm810_vm2, %v5237_v24  ;;  %4151 = vmatprep.mubr.msk.bf16.mxu0 %vm810_vm2, %v5071_v3  ;;  %v2635_v24 = vsel %vm4635_vm3, %v2630_v50, %v2634_v36 }
  0xfe   : > { %v3691_v37 = vcombine.low %v2625_v58, %v2635_v24 }
 0x104   : > { %4000 = vmatmul.mubr.msk.bf16.gmra.mrb[8].mxu1 %vm810_vm2, %v5243_v8  ;;  %4152 = vmatmul.mubr.msk.bf16.gmra.mrb[24].mxu0 %vm810_vm2, %v5098_v46 }
 0x105   : > { %4003 = vmatprep.mubr.msk.bf16.mxu1 %vm810_vm2, %v5266_v12  ;;  %4155 = vmatprep.mubr.msk.bf16.mxu0 %vm810_vm2, %v5274_v39 }
 0x10c   : > { %4004 = vmatmul.mubr.msk.bf16.gmra.mrb[12].mxu1 %vm810_vm2, %v5164_v30  ;;  %4156 = vmatmul.mubr.msk.bf16.gmra.mrb[28].mxu0 %vm810_vm2, %v3691_v37 }
 0x10d   : > { %4007 = vmatprep.mubr.msk.bf16.mxu1 %vm810_vm2, %v5173_v51  ;;  %4161 = vmatprep.mubr.msk.bf16.mxu0 %vm810_vm2, %v5785_v59 }
 0x114   : > { %4008 = vmatmul.mubr.msk.bf16.gmra.mrb[16].mxu1 %vm810_vm2, %v5177_v56  ;;  %4162 = vmatmul.mubr.msk.bf16.vlgmr.msra.gmra.mrb[0].mxu0 %vm810_vm2, %v5786_v43 }
 0x115   : > { %4011 = vmatprep.mubr.msk.bf16.mxu1 %vm810_vm2, %v5184_v57  ;;  %4165 = vmatprep.mubr.msk.bf16.mxu0 %vm810_vm2, %v5787_v17 }
 0x11c   : > { %4012 = vmatmul.mubr.msk.bf16.gmra.mrb[20].mxu1 %vm810_vm2, %v5189_v42  ;;  %4166 = vmatmul.mubr.msk.bf16.gmra.mrb[4].mxu0 %vm810_vm2, %v5788_v60 }
 0x11d   : > { %4015 = vmatprep.mubr.msk.bf16.mxu1 %vm810_vm2, %v5193_v1  ;;  %4169 = vmatprep.mubr.msk.bf16.mxu0 %vm810_vm2, %v5789_v61 }
 0x124   : > { %4016 = vmatmul.mubr.msk.bf16.gmra.mrb[24].mxu1 %vm810_vm2, %v5197_v0  ;;  %4170 = vmatmul.mubr.msk.bf16.gmra.mrb[8].mxu0 %vm810_vm2, %v5069_v35  ;;  %v3709_v35 = vrot.slane %v5359_v55, 9 }
 0x125   : > { %4019 = vmatprep.mubr.msk.bf16.mxu1 %vm810_vm2, %v5201_v20  ;;  %4173 = vmatprep.mubr.msk.bf16.mxu0 %vm810_vm2, %v5100_v54  ;;  %v2849_v54 = vrot.slane %v2847_v28, 4 }
 0x12c   : > { %4020 = vmatmul.mubr.msk.bf16.gmra.mrb[28].mxu1 %vm810_vm2, %v5348_v22  ;;  %4174 = vmatmul.mubr.msk.bf16.gmra.mrb[12].mxu0 %vm810_vm2, %v5104_v18  ;;  %v2850_v18 = vrot.slane %v363_v23, 5 }
 0x12d   : > { %4041 = vmatprep.mubr.msk.bf16.mxu1 %vm810_vm2, %v5797_v41  ;;  %4177 = vmatprep.mubr.msk.bf16.mxu0 %vm810_vm2, %v5126_v48  ;;  %v2848_v48 = vsel %vm4819_vm6, %v3709_v35, %v2847_v28 }
 0x134   : > { %4042 = vmatmul.mubr.msk.bf16.vlgmr.msra.gmra.mrb[16].mxu1 %vm810_vm2, %v5798_v52  ;;  %4178 = vmatmul.mubr.msk.bf16.gmra.mrb[16].mxu0 %vm810_vm2, %v5135_v45  ;;  %v2851_v45 = vsel %vm4819_vm6, %v2849_v54, %v2850_v18 }
 0x135   : > { %4045 = vmatprep.mubr.msk.bf16.mxu1 %vm810_vm2, %v5799_v62  ;;  %4181 = vmatprep.mubr.msk.bf16.mxu0 %vm810_vm2, %v5179_v14  ;;  %v3712_v30 = vcombine.low %v2848_v48, %v2851_v45 }
 0x13c   : > { %4046 = vmatmul.mubr.msk.bf16.gmra.mrb[20].mxu1 %vm810_vm2, %v5800_v47  ;;  %4182 = vmatmul.mubr.msk.bf16.gmra.mrb[20].mxu0 %vm810_vm2, %v5207_v26 }
 0x13d   : > { %4049 = vmatprep.mubr.msk.bf16.mxu1 %vm810_vm2, %v5801_v49  ;;  %4185 = vmatprep.mubr.msk.bf16.mxu0 %vm810_vm2, %v5239_v29 }
 0x144   : > { %4050 = vmatmul.mubr.msk.bf16.gmra.mrb[24].mxu1 %vm810_vm2, %v5071_v3  ;;  %4186 = vmatmul.mubr.msk.bf16.gmra.mrb[24].mxu0 %vm810_vm2, %v5249_v21 }
 0x145   : > { %4053 = vmatprep.mubr.msk.bf16.mxu1 %vm810_vm2, %v5098_v46  ;;  %4189 = vmatprep.mubr.msk.bf16.mxu0 %vm810_vm2, %v5268_v13 }
 0x14c   : > { %4054 = vmatmul.mubr.msk.bf16.gmra.mrb[28].mxu1 %vm810_vm2, %v5274_v39  ;;  %4190 = vmatmul.mubr.msk.bf16.gmra.mrb[28].mxu0 %vm810_vm2, %v3712_v30  ;;  %v5530_v39 = vld [vmem:[%s5724_s2] ss:$0 sm:$0xff] }
 0x1c7   : > { %v3993_v3 = vpop.f32.mrb[0].mxu1 }
 0x1c8   : > { %v1795_v51 = vpop.f32.mrb[1].mxu1 }
 0x1c9   : > { %v3994_v56 = vpop.f32.mrb[2].mxu1 }
 0x1ca   : > { %v1798_v46 = vpop.f32.mrb[3].mxu1 }
 0x1cf   : > { %v3997_v14 = vpop.f32.mrb[4].mxu1 }
 0x1d0   : > { %v1811_v57 = vpop.f32.mrb[5].mxu1 }
 0x1d1   : > { %v3998_v42 = vpop.f32.mrb[6].mxu1 }
 0x1d2   : > { %v1814_v1 = vpop.f32.mrb[7].mxu1 }
 0x1d7   : > { %v5510_v0 = vpop.f32.mrb[8].mxu1 }
 0x1d8   : > { %v5512_v20 = vpop.f32.mrb[9].mxu1 }
 0x1d9   : > { %v5514_v7 = vpop.f32.mrb[10].mxu1 }
 0x1da   : > { %v5516_v26 = vpop.f32.mrb[11].mxu1 }
 0x1df   : > { %v5518_v29 = vpop.f32.mrb[12].mxu1 }
 0x1e0   : > { %v5520_v8 = vpop.f32.mrb[13].mxu1 }
 0x1e1   : > { %v5522_v21 = vpop.f32.mrb[14].mxu1 }
 0x1e2   : > { %v5524_v12 = vpop.f32.mrb[15].mxu1 }
 0x1e7   : > { %v4163_v13 = vpop.f32.mrb[0].mxu0 }
 0x1e8   : > { %v4195_v59 = vadd.f32 %v4163_v13, %v3993_v3  ;;  %v2901_v43 = vpop.f32.mrb[1].mxu0 }
 0x1e9   : > { %v4196_v17 = vadd.f32 %v2901_v43, %v1795_v51  ;;  %v4164_v22 = vpop.f32.mrb[2].mxu0 }
 0x1ea   : > { %v3069_v60 = vadd.f32 %v4195_v59, %v5530_v39  ;;  %v4197_v61 = vadd.f32 %v4164_v22, %v3994_v56  ;;  %v2904_v55 = vpop.f32.mrb[3].mxu0 }
 0x1eb   : > { %v3067_v63 = vadd.f32 %v4196_v17, %v5530_v39  ;;  %v4198_v40 = vadd.f32 %v2904_v55, %v1798_v46 }
 0x1ec   : > { %3101 = vst.msk [vmem:[%s5535_s30 + $0x10] sm:$0xff] %vm810_vm2, %v3069_v60  ;;  %v3070_v11 = vadd.f32 %v4197_v61, %v5530_v39  ;;  %v3204_v4 = vmul.f32 %v3069_v60, %v3069_v60  ;;  %v3134_v16 = vsel %vm810_vm2, %v3069_v60, 0.0 }
 0x1ed   : > { %3099 = vst.msk [vmem:[%s5535_s30] sm:$0xff] %vm810_vm2, %v3067_v63  ;;  %v3202_v9 = vmul.f32 %v3067_v63, %v3067_v63  ;;  %v3068_v53 = vadd.f32 %v4198_v40, %v5530_v39  ;;  %v3131_v5 = vsel %vm810_vm2, %v3067_v63, 0.0 }
 0x1ee   : > { %3102 = vst.msk [vmem:[%s5535_s30 + $0x18] sm:$0xff] %vm810_vm2, %v3070_v11  ;;  %v3205_v52 = vmul.f32 %v3070_v11, %v3070_v11  ;;  %v3237_v44 = vsel %vm810_vm2, %v3204_v4, 0.0  ;;  %v3136_v25 = vsel %vm810_vm2, %v3070_v11, 0.0 }
 0x1ef   : > { %3100 = vst.msk [vmem:[%s5535_s30 + $0x8] sm:$0xff] %vm810_vm2, %v3068_v53  ;;  %v3132_v27 = vsel %vm810_vm2, %v3068_v53, 0.0  ;;  %v3203_v33 = vmul.f32 %v3068_v53, %v3068_v53  ;;  %v4167_v41 = vpop.f32.mrb[4].mxu0  ;;  %v3234_v32 = vsel %vm810_vm2, %v3202_v9, 0.0 }
 0x1f0   : > { %v3133_v62 = vadd.f32 %v3132_v27, %v3131_v5  ;;  %v4199_v15 = vadd.f32 %v4167_v41, %v3997_v14  ;;  %v2917_v38 = vpop.f32.mrb[5].mxu0  ;;  %v3239_v36 = vsel %vm810_vm2, %v3205_v52, 0.0 }
 0x1f1   : > { %v3235_v47 = vsel %vm810_vm2, %v3203_v33, 0.0  ;;  %v4200_v6 = vadd.f32 %v2917_v38, %v1811_v57  ;;  %v4168_v34 = vpop.f32.mrb[6].mxu0 }
 0x1f2   : > { %v3135_v19 = vadd.f32 %v3134_v16, %v3133_v62  ;;  %v3236_v10 = vadd.f32 %v3235_v47, %v3234_v32  ;;  %v3073_v23 = vadd.f32 %v4199_v15, %v5530_v39  ;;  %v4201_v49 = vadd.f32 %v4168_v34, %v3998_v42  ;;  %v2920_v2 = vpop.f32.mrb[7].mxu0 }
 0x1f3   : > { %v3071_v31 = vadd.f32 %v4200_v6, %v5530_v39  ;;  %v4202_v50 = vadd.f32 %v2920_v2, %v1814_v1 }
 0x1f4   : > { %v3238_v58 = vadd.f32 %v3237_v44, %v3236_v10  ;;  %3105 = vst.msk [vmem:[%s5535_s30 + $0x30] sm:$0xff] %vm810_vm2, %v3073_v23  ;;  %v3137_v24 = vadd.f32 %v3136_v25, %v3135_v19  ;;  %v3074_v35 = vadd.f32 %v4201_v49, %v5530_v39  ;;  %v3208_v45 = vmul.f32 %v3073_v23, %v3073_v23 }
 0x1f5   : > { %3103 = vst.msk [vmem:[%s5535_s30 + $0x20] sm:$0xff] %vm810_vm2, %v3071_v31  ;;  %v3138_v37 = vsel %vm810_vm2, %v3071_v31, 0.0  ;;  %v3206_v28 = vmul.f32 %v3071_v31, %v3071_v31  ;;  %v3072_v54 = vadd.f32 %v4202_v50, %v5530_v39  ;;  %v3142_v1 = vsel %vm810_vm2, %v3073_v23, 0.0 }
 0x1f6   : > { %v3139_v18 = vadd.f32 %v3138_v37, %v3137_v24  ;;  %v3240_v48 = vadd.f32 %v3239_v36, %v3238_v58  ;;  %3106 = vst.msk [vmem:[%s5535_s30 + $0x38] sm:$0xff] %vm810_vm2, %v3074_v35  ;;  %v3209_v13 = vmul.f32 %v3074_v35, %v3074_v35 }
 0x1f7   : > { %v3241_v30 = vsel %vm810_vm2, %v3206_v28, 0.0  ;;  %3104 = vst.msk [vmem:[%s5535_s30 + $0x28] sm:$0xff] %vm810_vm2, %v3072_v54  ;;  %v3140_v3 = vsel %vm810_vm2, %v3072_v54, 0.0  ;;  %v4171_v51 = vpop.f32.mrb[8].mxu0  ;;  %v3207_v14 = vmul.f32 %v3072_v54, %v3072_v54 }
 0x1f8   : > { %v3242_v56 = vadd.f32 %v3241_v30, %v3240_v48  ;;  %v3141_v46 = vadd.f32 %v3140_v3, %v3139_v18  ;;  %v4203_v57 = vadd.f32 %v4171_v51, %v5510_v0  ;;  %v2933_v42 = vpop.f32.mrb[9].mxu0  ;;  %v3144_v0 = vsel %vm810_vm2, %v3074_v35, 0.0 }
 0x1f9   : > { %v4204_v59 = vadd.f32 %v2933_v42, %v5512_v20  ;;  %v4172_v43 = vpop.f32.mrb[10].mxu0  ;;  %v3243_v22 = vsel %vm810_vm2, %v3207_v14, 0.0  ;;  %v3245_v20 = vsel %vm810_vm2, %v3208_v45, 0.0  ;;  %v3247_v33 = vsel %vm810_vm2, %v3209_v13, 0.0 }
 0x1fa   : > { %v3143_v17 = vadd.f32 %v3142_v1, %v3141_v46  ;;  %v3077_v60 = vadd.f32 %v4203_v57, %v5530_v39  ;;  %v4205_v61 = vadd.f32 %v4172_v43, %v5514_v7  ;;  %v2936_v55 = vpop.f32.mrb[11].mxu0  ;;  %v3244_v63 = vadd.f32 %v3243_v22, %v3242_v56 }
 0x1fb   : > { %v3075_v40 = vadd.f32 %v4204_v59, %v5530_v39  ;;  %v4206_v11 = vadd.f32 %v2936_v55, %v5516_v26 }
 0x1fc   : > { %3109 = vst.msk [vmem:[%s5535_s30 + $0x50] sm:$0xff] %vm810_vm2, %v3077_v60  ;;  %v3145_v9 = vadd.f32 %v3144_v0, %v3143_v17  ;;  %v3078_v53 = vadd.f32 %v4205_v61, %v5530_v39  ;;  %v3246_v4 = vadd.f32 %v3245_v20, %v3244_v63  ;;  %v3212_v16 = vmul.f32 %v3077_v60, %v3077_v60 }
 0x1fd   : > { %3107 = vst.msk [vmem:[%s5535_s30 + $0x40] sm:$0xff] %vm810_vm2, %v3075_v40  ;;  %v3146_v7 = vsel %vm810_vm2, %v3075_v40, 0.0  ;;  %v3210_v5 = vmul.f32 %v3075_v40, %v3075_v40  ;;  %v3076_v27 = vadd.f32 %v4206_v11, %v5530_v39  ;;  %v3150_v34 = vsel %vm810_vm2, %v3077_v60, 0.0 }
 0x1fe   : > { %v3147_v41 = vadd.f32 %v3146_v7, %v3145_v9  ;;  %3110 = vst.msk [vmem:[%s5535_s30 + $0x58] sm:$0xff] %vm810_vm2, %v3078_v53  ;;  %v3248_v26 = vadd.f32 %v3247_v33, %v3246_v4  ;;  %v3213_v2 = vmul.f32 %v3078_v53, %v3078_v53 }
 0x1ff   : > { %v3249_v52 = vsel %vm810_vm2, %v3210_v5, 0.0  ;;  %3108 = vst.msk [vmem:[%s5535_s30 + $0x48] sm:$0xff] %vm810_vm2, %v3076_v27  ;;  %v3148_v62 = vsel %vm810_vm2, %v3076_v27, 0.0  ;;  %v3211_v15 = vmul.f32 %v3076_v27, %v3076_v27  ;;  %v4175_v38 = vpop.f32.mrb[12].mxu0 }
 0x200   : > { %v3149_v32 = vadd.f32 %v3148_v62, %v3147_v41  ;;  %v4207_v47 = vadd.f32 %v4175_v38, %v5518_v29  ;;  %v2949_v6 = vpop.f32.mrb[13].mxu0  ;;  %v3250_v19 = vadd.f32 %v3249_v52, %v3248_v26  ;;  %v3152_v29 = vsel %vm810_vm2, %v3078_v53, 0.0 }
 0x201   : > { %v3251_v10 = vsel %vm810_vm2, %v3211_v15, 0.0  ;;  %v4208_v23 = vadd.f32 %v2949_v6, %v5520_v8  ;;  %v4176_v49 = vpop.f32.mrb[14].mxu0  ;;  %v3253_v8 = vsel %vm810_vm2, %v3212_v16, 0.0  ;;  %v3255_v48 = vsel %vm810_vm2, %v3213_v2, 0.0 }
 0x202   : > { %v3151_v44 = vadd.f32 %v3150_v34, %v3149_v32  ;;  %v3081_v25 = vadd.f32 %v4207_v47, %v5530_v39  ;;  %v4209_v31 = vadd.f32 %v4176_v49, %v5522_v21  ;;  %v2952_v50 = vpop.f32.mrb[15].mxu0  ;;  %v3252_v36 = vadd.f32 %v3251_v10, %v3250_v19 }
 0x203   : > { %v3079_v58 = vadd.f32 %v4208_v23, %v5530_v39  ;;  %v4210_v24 = vadd.f32 %v2952_v50, %v5524_v12 }
 0x204   : > { %3113 = vst.msk [vmem:[%s5535_s30 + $0x70] sm:$0xff] %vm810_vm2, %v3081_v25  ;;  %v3153_v37 = vadd.f32 %v3152_v29, %v3151_v44  ;;  %v3082_v28 = vadd.f32 %v4209_v31, %v5530_v39  ;;  %v3254_v35 = vadd.f32 %v3253_v8, %v3252_v36  ;;  %v3216_v14 = vmul.f32 %v3081_v25, %v3081_v25 }
 0x205   : > { %3111 = vst.msk [vmem:[%s5535_s30 + $0x60] sm:$0xff] %vm810_vm2, %v3079_v58  ;;  %v3154_v21 = vsel %vm810_vm2, %v3079_v58, 0.0  ;;  %v3214_v54 = vmul.f32 %v3079_v58, %v3079_v58  ;;  %v3080_v18 = vadd.f32 %v4210_v24, %v5530_v39  ;;  %v3158_v59 = vsel %vm810_vm2, %v3081_v25, 0.0 }
 0x206   : > { %v3155_v45 = vadd.f32 %v3154_v21, %v3153_v37  ;;  %3114 = vst.msk [vmem:[%s5535_s30 + $0x78] sm:$0xff] %vm810_vm2, %v3082_v28  ;;  %v3256_v12 = vadd.f32 %v3255_v48, %v3254_v35  ;;  %v3217_v55 = vmul.f32 %v3082_v28, %v3082_v28  ;;  %v3160_v9 = vsel %vm810_vm2, %v3082_v28, 0.0 }
 0x207   : > { %v3257_v30 = vsel %vm810_vm2, %v3214_v54, 0.0  ;;  %3112 = vst.msk [vmem:[%s5535_s30 + $0x68] sm:$0xff] %vm810_vm2, %v3080_v18  ;;  %v3156_v3 = vsel %vm810_vm2, %v3080_v18, 0.0  ;;  %v3215_v51 = vmul.f32 %v3080_v18, %v3080_v18  ;;  %v4043_v56 = vpop.f32.mrb[16].mxu1  ;;  %v4179_v46 = vpop.f32.mrb[16].mxu0  ;;  %v3261_v5 = vsel %vm810_vm2, %v3216_v14, 0.0 }
 0x208   : > { %v3157_v57 = vadd.f32 %v3156_v3, %v3155_v45  ;;  %v4211_v42 = vadd.f32 %v4179_v46, %v4043_v56  ;;  %v2091_v1 = vpop.f32.mrb[17].mxu1  ;;  %v2965_v13 = vpop.f32.mrb[17].mxu0  ;;  %v3258_v43 = vadd.f32 %v3257_v30, %v3256_v12  ;;  %v3263_v15 = vsel %vm810_vm2, %v3217_v55, 0.0 }
 0x209   : > { %v3259_v17 = vsel %vm810_vm2, %v3215_v51, 0.0  ;;  %v4212_v22 = vadd.f32 %v2965_v13, %v2091_v1  ;;  %v4044_v60 = vpop.f32.mrb[18].mxu1  ;;  %v4180_v61 = vpop.f32.mrb[18].mxu0 }
 0x20a   : > { %v3159_v0 = vadd.f32 %v3158_v59, %v3157_v57  ;;  %v3085_v63 = vadd.f32 %v4211_v42, %v5530_v39  ;;  %v4213_v40 = vadd.f32 %v4180_v61, %v4044_v60  ;;  %v2094_v11 = vpop.f32.mrb[19].mxu1  ;;  %v2968_v20 = vpop.f32.mrb[19].mxu0  ;;  %v3260_v53 = vadd.f32 %v3259_v17, %v3258_v43 }
 0x20b   : > { %v3083_v4 = vadd.f32 %v4212_v22, %v5530_v39  ;;  %v4214_v7 = vadd.f32 %v2968_v20, %v2094_v11 }
 0x20c   : > { %3117 = vst.msk [vmem:[%s5535_s30 + $0x90] sm:$0xff] %vm810_vm2, %v3085_v63  ;;  %v3161_v27 = vadd.f32 %v3160_v9, %v3159_v0  ;;  %v3086_v33 = vadd.f32 %v4213_v40, %v5530_v39  ;;  %v3262_v41 = vadd.f32 %v3261_v5, %v3260_v53  ;;  %v3220_v10 = vmul.f32 %v3085_v63, %v3085_v63 }
 0x20d   : > { %3115 = vst.msk [vmem:[%s5535_s30 + $0x80] sm:$0xff] %vm810_vm2, %v3083_v4  ;;  %v3162_v26 = vsel %vm810_vm2, %v3083_v4, 0.0  ;;  %v3218_v52 = vmul.f32 %v3083_v4, %v3083_v4  ;;  %v3084_v62 = vadd.f32 %v4214_v7, %v5530_v39  ;;  %v3166_v25 = vsel %vm810_vm2, %v3085_v63, 0.0 }
 0x20e   : > { %v3163_v38 = vadd.f32 %v3162_v26, %v3161_v27  ;;  %3118 = vst.msk [vmem:[%s5535_s30 + $0x98] sm:$0xff] %vm810_vm2, %v3086_v33  ;;  %v3264_v16 = vadd.f32 %v3263_v15, %v3262_v41  ;;  %v3221_v24 = vmul.f32 %v3086_v33, %v3086_v33  ;;  %v3168_v54 = vsel %vm810_vm2, %v3086_v33, 0.0 }
 0x20f   : > { %v3265_v32 = vsel %vm810_vm2, %v3218_v52, 0.0  ;;  %3116 = vst.msk [vmem:[%s5535_s30 + $0x88] sm:$0xff] %vm810_vm2, %v3084_v62  ;;  %v3164_v47 = vsel %vm810_vm2, %v3084_v62, 0.0  ;;  %v3219_v6 = vmul.f32 %v3084_v62, %v3084_v62  ;;  %v4047_v34 = vpop.f32.mrb[20].mxu1  ;;  %v4183_v19 = vpop.f32.mrb[20].mxu0  ;;  %v3269_v12 = vsel %vm810_vm2, %v3220_v10, 0.0 }
 0x210   : > { %v3165_v23 = vadd.f32 %v3164_v47, %v3163_v38  ;;  %v4215_v49 = vadd.f32 %v4183_v19, %v4047_v34  ;;  %v2107_v2 = vpop.f32.mrb[21].mxu1  ;;  %v2981_v44 = vpop.f32.mrb[21].mxu0  ;;  %v3266_v31 = vadd.f32 %v3265_v32, %v3264_v16  ;;  %v3271_v57 = vsel %vm810_vm2, %v3221_v24, 0.0 }
 0x211   : > { %v3267_v50 = vsel %vm810_vm2, %v3219_v6, 0.0  ;;  %v4216_v29 = vadd.f32 %v2981_v44, %v2107_v2  ;;  %v4048_v36 = vpop.f32.mrb[22].mxu1  ;;  %v4184_v58 = vpop.f32.mrb[22].mxu0 }
 0x212   : > { %v3167_v8 = vadd.f32 %v3166_v25, %v3165_v23  ;;  %v3089_v37 = vadd.f32 %v4215_v49, %v5530_v39  ;;  %v4217_v28 = vadd.f32 %v4184_v58, %v4048_v36  ;;  %v2110_v35 = vpop.f32.mrb[23].mxu1  ;;  %v2984_v21 = vpop.f32.mrb[23].mxu0  ;;  %v3268_v18 = vadd.f32 %v3267_v50, %v3266_v31 }
 0x213   : > { %v3087_v48 = vadd.f32 %v4216_v29, %v5530_v39  ;;  %v4218_v45 = vadd.f32 %v2984_v21, %v2110_v35 }
 0x214   : > { %3121 = vst.msk [vmem:[%s5535_s30 + $0xb0] sm:$0xff] %vm810_vm2, %v3089_v37  ;;  %v3169_v30 = vadd.f32 %v3168_v54, %v3167_v8  ;;  %v3090_v3 = vadd.f32 %v4217_v28, %v5530_v39  ;;  %v3270_v51 = vadd.f32 %v3269_v12, %v3268_v18  ;;  %v3224_v60 = vmul.f32 %v3089_v37, %v3089_v37 }
 0x215   : > { %3119 = vst.msk [vmem:[%s5535_s30 + $0xa0] sm:$0xff] %vm810_vm2, %v3087_v48  ;;  %v3170_v56 = vsel %vm810_vm2, %v3087_v48, 0.0  ;;  %v3222_v46 = vmul.f32 %v3087_v48, %v3087_v48  ;;  %v3088_v14 = vadd.f32 %v4218_v45, %v5530_v39  ;;  %v3174_v40 = vsel %vm810_vm2, %v3089_v37, 0.0 }
 0x216   : > { %v3171_v42 = vadd.f32 %v3170_v56, %v3169_v30  ;;  %3122 = vst.msk [vmem:[%s5535_s30 + $0xb8] sm:$0xff] %vm810_vm2, %v3090_v3  ;;  %v3272_v1 = vadd.f32 %v3271_v57, %v3270_v51  ;;  %v3225_v7 = vmul.f32 %v3090_v3, %v3090_v3  ;;  %v3176_v52 = vsel %vm810_vm2, %v3090_v3, 0.0 }
 0x217   : > { %v3273_v13 = vsel %vm810_vm2, %v3222_v46, 0.0  ;;  %3120 = vst.msk [vmem:[%s5535_s30 + $0xa8] sm:$0xff] %vm810_vm2, %v3088_v14  ;;  %v3172_v59 = vsel %vm810_vm2, %v3088_v14, 0.0  ;;  %v3223_v43 = vmul.f32 %v3088_v14, %v3088_v14  ;;  %v4051_v17 = vpop.f32.mrb[24].mxu1  ;;  %v4187_v22 = vpop.f32.mrb[24].mxu0  ;;  %v3277_v16 = vsel %vm810_vm2, %v3224_v60, 0.0 }
 0x218   : > { %v3173_v61 = vadd.f32 %v3172_v59, %v3171_v42  ;;  %v4219_v55 = vadd.f32 %v4187_v22, %v4051_v17  ;;  %v2123_v0 = vpop.f32.mrb[25].mxu1  ;;  %v2997_v63 = vpop.f32.mrb[25].mxu0  ;;  %v3274_v11 = vadd.f32 %v3273_v13, %v3272_v1  ;;  %v3279_v23 = vsel %vm810_vm2, %v3225_v7, 0.0 }
 0x219   : > { %v3275_v20 = vsel %vm810_vm2, %v3223_v43, 0.0  ;;  %v4220_v9 = vadd.f32 %v2997_v63, %v2123_v0  ;;  %v4052_v53 = vpop.f32.mrb[26].mxu1  ;;  %v4188_v4 = vpop.f32.mrb[26].mxu0 }
 0x21a   : > { %v3175_v5 = vadd.f32 %v3174_v40, %v3173_v61  ;;  %v3093_v27 = vadd.f32 %v4219_v55, %v5530_v39  ;;  %v4221_v33 = vadd.f32 %v4188_v4, %v4052_v53  ;;  %v2126_v41 = vpop.f32.mrb[27].mxu1  ;;  %v3000_v26 = vpop.f32.mrb[27].mxu0  ;;  %v3276_v62 = vadd.f32 %v3275_v20, %v3274_v11 }
 0x21b   : > { %v3091_v15 = vadd.f32 %v4220_v9, %v5530_v39  ;;  %v4222_v38 = vadd.f32 %v3000_v26, %v2126_v41 }
 0x21c   : > { %3125 = vst.msk [vmem:[%s5535_s30 + $0xd0] sm:$0xff] %vm810_vm2, %v3093_v27  ;;  %v3177_v32 = vadd.f32 %v3176_v52, %v3175_v5  ;;  %v3094_v47 = vadd.f32 %v4221_v33, %v5530_v39  ;;  %v3278_v6 = vadd.f32 %v3277_v16, %v3276_v62  ;;  %v3228_v36 = vmul.f32 %v3093_v27, %v3093_v27 }
 0x21d   : > { %3123 = vst.msk [vmem:[%s5535_s30 + $0xc0] sm:$0xff] %vm810_vm2, %v3091_v15  ;;  %v3178_v34 = vsel %vm810_vm2, %v3091_v15, 0.0  ;;  %v3226_v19 = vmul.f32 %v3091_v15, %v3091_v15  ;;  %v3092_v10 = vadd.f32 %v4222_v38, %v5530_v39  ;;  %v3182_v28 = vsel %vm810_vm2, %v3093_v27, 0.0 }
 0x21e   : > { %v3179_v49 = vadd.f32 %v3178_v34, %v3177_v32  ;;  %3126 = vst.msk [vmem:[%s5535_s30 + $0xd8] sm:$0xff] %vm810_vm2, %v3094_v47  ;;  %v3280_v2 = vadd.f32 %v3279_v23, %v3278_v6  ;;  %v3229_v45 = vmul.f32 %v3094_v47, %v3094_v47  ;;  %v3184_v46 = vsel %vm810_vm2, %v3094_v47, 0.0 }
 0x21f   : > { %v3281_v44 = vsel %vm810_vm2, %v3226_v19, 0.0  ;;  %3124 = vst.msk [vmem:[%s5535_s30 + $0xc8] sm:$0xff] %vm810_vm2, %v3092_v10  ;;  %v3180_v25 = vsel %vm810_vm2, %v3092_v10, 0.0  ;;  %v3227_v31 = vmul.f32 %v3092_v10, %v3092_v10  ;;  %v4055_v50 = vpop.f32.mrb[28].mxu1  ;;  %v4191_v29 = vpop.f32.mrb[28].mxu0  ;;  %v3285_v1 = vsel %vm810_vm2, %v3228_v36, 0.0 }
 0x220   : > { %v3181_v58 = vadd.f32 %v3180_v25, %v3179_v49  ;;  %v4223_v24 = vadd.f32 %v4191_v29, %v4055_v50  ;;  %v2139_v8 = vpop.f32.mrb[29].mxu1  ;;  %v3013_v37 = vpop.f32.mrb[29].mxu0  ;;  %v3282_v35 = vadd.f32 %v3281_v44, %v3280_v2  ;;  %v3287_v61 = vsel %vm810_vm2, %v3229_v45, 0.0 }
 0x221   : > { %v3283_v21 = vsel %vm810_vm2, %v3227_v31, 0.0  ;;  %v4224_v54 = vadd.f32 %v3013_v37, %v2139_v8  ;;  %v4056_v18 = vpop.f32.mrb[30].mxu1  ;;  %v4192_v48 = vpop.f32.mrb[30].mxu0 }
 0x222   : > { %v3183_v12 = vadd.f32 %v3182_v28, %v3181_v58  ;;  %v3097_v30 = vadd.f32 %v4223_v24, %v5530_v39  ;;  %v4225_v3 = vadd.f32 %v4192_v48, %v4056_v18  ;;  %v2142_v51 = vpop.f32.mrb[31].mxu1  ;;  %v3016_v56 = vpop.f32.mrb[31].mxu0  ;;  %v3284_v14 = vadd.f32 %v3283_v21, %v3282_v35 }
 0x223   : > { %v3095_v57 = vadd.f32 %v4224_v54, %v5530_v39  ;;  %v4226_v42 = vadd.f32 %v3016_v56, %v2142_v51 }
 0x224   : > { %3129 = vst.msk [vmem:[%s5535_s30 + $0xf0] sm:$0xff] %vm810_vm2, %v3097_v30  ;;  %v3185_v13 = vadd.f32 %v3184_v46, %v3183_v12  ;;  %v3098_v59 = vadd.f32 %v4225_v3, %v5530_v39  ;;  %v3286_v43 = vadd.f32 %v3285_v1, %v3284_v14  ;;  %v3232_v20 = vmul.f32 %v3097_v30, %v3097_v30 }
 0x225   : > { %3127 = vst.msk [vmem:[%s5535_s30 + $0xe0] sm:$0xff] %vm810_vm2, %v3095_v57  ;;  %v3186_v17 = vsel %vm810_vm2, %v3095_v57, 0.0  ;;  %v3230_v22 = vmul.f32 %v3095_v57, %v3095_v57  ;;  %v3096_v60 = vadd.f32 %v4226_v42, %v5530_v39  ;;  %v3190_v53 = vsel %vm810_vm2, %v3097_v30, 0.0 }
 0x226   : > { %v3187_v55 = vadd.f32 %v3186_v17, %v3185_v13  ;;  %3130 = vst.msk [vmem:[%s5535_s30 + $0xf8] sm:$0xff] %vm810_vm2, %v3098_v59  ;;  %v3288_v0 = vadd.f32 %v3287_v61, %v3286_v43  ;;  %v3233_v7 = vmul.f32 %v3098_v59, %v3098_v59  ;;  %v3192_v27 = vsel %vm810_vm2, %v3098_v59, 0.0 }
 0x227   : > { %v3289_v63 = vsel %vm810_vm2, %v3230_v22, 0.0  ;;  %3128 = vst.msk [vmem:[%s5535_s30 + $0xe8] sm:$0xff] %vm810_vm2, %v3096_v60  ;;  %v3188_v40 = vsel %vm810_vm2, %v3096_v60, 0.0  ;;  %v3231_v11 = vmul.f32 %v3096_v60, %v3096_v60  ;;  %v3293_v41 = vsel %vm810_vm2, %v3232_v20, 0.0 }
 0x228   : > { %v3189_v9 = vadd.f32 %v3188_v40, %v3187_v55  ;;  %v3290_v4 = vadd.f32 %v3289_v63, %v3288_v0  ;;  %v3295_v62 = vsel %vm810_vm2, %v3233_v7, 0.0 }
 0x229   : > { %v3291_v39 = vsel %vm810_vm2, %v3231_v11, 0.0 }
 0x22a   : > { %v3191_v5 = vadd.f32 %v3190_v53, %v3189_v9  ;;  %v3292_v33 = vadd.f32 %v3291_v39, %v3290_v4 }
 0x22c   : > { %v3193_v26 = vadd.f32 %v3192_v27, %v3191_v5  ;;  %v3294_v52 = vadd.f32 %v3293_v41, %v3292_v33 }
 0x22e   : > { %v3194_v15 = vrot.slane %v3193_v26, 4  ;;  %v3296_v38 = vadd.f32 %v3295_v62, %v3294_v52 }
 0x230   : > { %v3195_v16 = vadd.f32 %v3194_v15, %v3193_v26  ;;  %v3297_v32 = vrot.slane %v3296_v38, 4 }
 0x232   : > { %v3196_v47 = vrot.slane %v3195_v16, 2  ;;  %v3298_v6 = vadd.f32 %v3297_v32, %v3296_v38 }
 0x234   : > { %v3197_v34 = vadd.f32 %v3196_v47, %v3195_v16  ;;  %v3299_v19 = vrot.slane %v3298_v6, 2 }
 0x236   : > { %v3198_v10 = vrot.slane %v3197_v34, 1  ;;  %v3300_v23 = vadd.f32 %v3299_v19, %v3298_v6 }
 0x238   : > { %v3199_v49 = vadd.f32 %v3198_v10, %v3197_v34  ;;  %v3301_v2 = vrot.slane %v3300_v23, 1 }
 0x23a   : > { %3201 = vst.msk [vmem:[%s302_s8] sm:$0x1] %vm3200_vm7, %v3199_v49  ;;  %v3302_v44 = vadd.f32 %v3301_v2, %v3300_v23 }
 0x23c   : > { %3303 = vst.msk [vmem:[%s308_s11] sm:$0x1] %vm3200_vm7, %v3302_v44 }
 0x23d PF: > { %s16_s20 = sadd.s32 1, %s4529_s20   ;;  %s5802_s18 = smov %s4525_s19 }
 0x23e   : > { %p13_p5 = scmp.ge.s32.totalorder %s16_s20, 4   ;;  %s5803_s19 = smov %s5805_s21 }
 0x240   :  { %15 = sbr.rel (!%p13_p5) target bundleno = 2 (0x2), region = 100 }

</bundles_post_ra>
